<compile_context>
chip_gen: v6e
topology: v6e:2x2x1
jax: 0.10.0
libtpu: 0.0.40
codegen_flags: <defaults>
</compile_context>

<pallas_src>
import functools

import jax
import jax.numpy as jnp
from jax.experimental import pallas as pl
from jax.experimental.pallas import tpu as pltpu

# --- module constants (from price.py) ----------------------------------------
LWS = 100             # left_window_size / sample_length
NUM_COL = 1
IN_LEN = LWS * NUM_COL            # 100
RWS = 10              # right_window_size / prediction_length
OUT_LEN = RWS * NUM_COL           # 10
HIDDEN = 512
OUT_PAD = 128         # lane-dense padded output width (zeros beyond OUT_LEN)


def _default_batch_tile() -> int:
    """128-row tiles fill a v5e MXU; 256 fills v6e/v7x."""
    try:
        kind = jax.devices()[0].device_kind.lower()
    except Exception:  # pragma: no cover - defensive
        kind = ""
    return 128 if "v5" in kind else 256


# --- Pallas kernel: fused 3-layer MLP on one batch tile ----------------------
def mlp_kernel(x_ref, w1_ref, b1_ref, w2_ref, b2_ref, w3_ref, b3_ref, o_ref):
    # x_ref : (TILE_B, IN_LEN)        f32
    # w1_ref: (IN_LEN, HIDDEN)  bf16   b1_ref: (1, HIDDEN)   f32
    # w2_ref: (HIDDEN, HIDDEN)  bf16   b2_ref: (1, HIDDEN)   f32
    # w3_ref: (HIDDEN, OUT_PAD) bf16   b3_ref: (1, OUT_PAD)  f32
    # o_ref : (TILE_B, OUT_PAD) f32
    x = x_ref[...]

    h1 = jnp.dot(x.astype(jnp.bfloat16), w1_ref[...],
                 preferred_element_type=jnp.float32) + b1_ref[...]
    h1 = jnp.maximum(h1, 0.0)                         # ReLU (f32)

    h2 = jnp.dot(h1.astype(jnp.bfloat16), w2_ref[...],
                 preferred_element_type=jnp.float32) + b2_ref[...]
    h2 = jnp.maximum(h2, 0.0)                         # ReLU (f32)

    out = jnp.dot(h2.astype(jnp.bfloat16), w3_ref[...],
                  preferred_element_type=jnp.float32) + b3_ref[...]
    o_ref[...] = out.astype(o_ref.dtype)


# --- wrappers -----------------------------------------------------------------
def neural_network_forward_batched(xb, kernel_params, *, tile_b=None):
    """Run the MLP on a batch of flattened windows.

    xb: (B, IN_LEN) f32. Returns (B, OUT_LEN) f32.
    """
    w1, b1, w2, b2, w3p, b3p = kernel_params
    if tile_b is None:
        tile_b = _default_batch_tile()

    B = xb.shape[0]
    padded_b = ((B + tile_b - 1) // tile_b) * tile_b
    if padded_b != B:
        xb = jnp.pad(xb, ((0, padded_b - B), (0, 0)))
    grid = (padded_b // tile_b,)

    flops = 2 * padded_b * (IN_LEN * HIDDEN + HIDDEN * HIDDEN + HIDDEN * OUT_PAD)
    bytes_accessed = (
        (w1.size + w2.size + w3p.size) * 2          # bf16 weights
        + (b1.size + b2.size + b3p.size) * 4        # f32 biases
        + padded_b * IN_LEN * 4                     # input
        + padded_b * OUT_PAD * 4                    # output
    )

    out = pl.pallas_call(
        mlp_kernel,
        out_shape=jax.ShapeDtypeStruct((padded_b, OUT_PAD), jnp.float32),
        grid=grid,
        in_specs=[
            pl.BlockSpec((tile_b, IN_LEN), lambda b: (b, 0)),      # x tile
            pl.BlockSpec((IN_LEN, HIDDEN), lambda b: (0, 0)),      # w1 (resident)
            pl.BlockSpec((1, HIDDEN), lambda b: (0, 0)),           # b1
            pl.BlockSpec((HIDDEN, HIDDEN), lambda b: (0, 0)),      # w2 (resident)
            pl.BlockSpec((1, HIDDEN), lambda b: (0, 0)),           # b2
            pl.BlockSpec((HIDDEN, OUT_PAD), lambda b: (0, 0)),     # w3 (resident)
            pl.BlockSpec((1, OUT_PAD), lambda b: (0, 0)),          # b3
        ],
        out_specs=pl.BlockSpec((tile_b, OUT_PAD), lambda b: (b, 0)),
        compiler_params=pltpu.CompilerParams(
            dimension_semantics=("parallel",)),
        cost_estimate=pl.CostEstimate(
            flops=flops, transcendentals=0, bytes_accessed=bytes_accessed),
    )(xb, w1, b1, w2, b2, w3p, b3p)

    return out[:B, :OUT_LEN]


def neural_network_forward(x, kernel_params, *, tile_b=None):
    """Mirrors NeuralNetwork.forward exactly: flatten whole input -> logits (10,)."""
    x_flat = jnp.reshape(x, (1, IN_LEN)).astype(jnp.float32)
    return neural_network_forward_batched(x_flat, kernel_params, tile_b=tile_b)[0]


# --- parameters ---------------------------------------------------------------
def init_params(key):
    """Deterministic synthetic parameters (PyTorch-style uniform fan-in init), f32."""
    keys = jax.random.split(key, 6)

    def linear(kw, kb, fan_in, fan_out):
        bound = 1.0 / jnp.sqrt(jnp.float32(fan_in))
        # Stored as (in_features, out_features) for the row-vector layout.
        w = jax.random.uniform(kw, (fan_in, fan_out), jnp.float32, -bound, bound)
        b = jax.random.uniform(kb, (1, fan_out), jnp.float32, -bound, bound)
        return w, b

    w1, b1 = linear(keys[0], keys[1], IN_LEN, HIDDEN)
    w2, b2 = linear(keys[2], keys[3], HIDDEN, HIDDEN)
    w3, b3 = linear(keys[4], keys[5], HIDDEN, OUT_LEN)
    return (w1, b1, w2, b2, w3, b3)


def prepare_params(params):
    """One-time (outside the hot path): bf16 weights + zero-padded lane-dense layer 3."""
    w1, b1, w2, b2, w3, b3 = params
    w3p = jnp.zeros((HIDDEN, OUT_PAD), jnp.float32).at[:, :OUT_LEN].set(w3)
    b3p = jnp.zeros((1, OUT_PAD), jnp.float32).at[:, :OUT_LEN].set(b3)
    return (
        w1.astype(jnp.bfloat16), b1.astype(jnp.float32),
        w2.astype(jnp.bfloat16), b2.astype(jnp.float32),
        w3p.astype(jnp.bfloat16), b3p.astype(jnp.float32),
    )


def reference_forward_batched(xb, params):
    """Pure-JAX reference doing the same bf16-weight / f32-accumulate math."""
    w1, b1, w2, b2, w3, b3 = params
    w1b, w2b, w3b = (w.astype(jnp.bfloat16) for w in (w1, w2, w3))
    h = jnp.dot(xb.astype(jnp.bfloat16), w1b,
                preferred_element_type=jnp.float32) + b1
    h = jnp.maximum(h, 0.0)
    h = jnp.dot(h.astype(jnp.bfloat16), w2b,
                preferred_element_type=jnp.float32) + b2
    h = jnp.maximum(h, 0.0)
    return jnp.dot(h.astype(jnp.bfloat16), w3b,
                   preferred_element_type=jnp.float32) + b3


if __name__ == "__main__":
    key = jax.random.PRNGKey(0)
    k_params, k_x = jax.random.split(key)

    params = init_params(k_params)
    kernel_params = prepare_params(params)

    tile_b = _default_batch_tile()

    # Batch of input windows, each (sample_length, numCol) = (100, 1).
    B = 512   # multiple of both 128 and 256 -> clean grid on all TPU gens
    xb = jax.random.normal(k_x, (B, LWS, NUM_COL), dtype=jnp.float32)
    xb_flat = xb.reshape(B, IN_LEN)

    fwd = jax.jit(functools.partial(neural_network_forward_batched, tile_b=tile_b))
    logits_b = fwd(xb_flat, kernel_params)
    jax.block_until_ready(logits_b)

    # Single-window path: exactly the PyTorch forward (flatten whole input).
    logits_1 = neural_network_forward(xb[0], kernel_params, tile_b=tile_b)
    jax.block_until_ready(logits_1)

    # Correctness vs. pure-JAX reference of the same (bf16 weights, f32 acc) math.
    ref_b = reference_forward_batched(xb_flat, params)
    assert logits_b.shape == (B, OUT_LEN)
    assert logits_1.shape == (OUT_LEN,)
    assert jnp.allclose(logits_b, ref_b, atol=1e-2, rtol=1e-2)
    assert jnp.allclose(logits_1, ref_b[0], atol=1e-2, rtol=1e-2)

    print("KERNEL_OK")
</pallas_src>

<mosaic_0001>
module attributes {stable_mosaic.version = 11 : i64} {
  func.func @mlp_kernel(%arg0: i32, %arg1: memref<256x100xf32, #tpu.memory_space<vmem>>, %arg2: memref<100x512xbf16, #tpu.memory_space<vmem>>, %arg3: memref<1x512xf32, #tpu.memory_space<vmem>>, %arg4: memref<512x512xbf16, #tpu.memory_space<vmem>>, %arg5: memref<1x512xf32, #tpu.memory_space<vmem>>, %arg6: memref<512x128xbf16, #tpu.memory_space<vmem>>, %arg7: memref<1x128xf32, #tpu.memory_space<vmem>>, %arg8: memref<256x128xf32, #tpu.memory_space<vmem>>) attributes {dimension_semantics = [#tpu.dimension_semantics<parallel>], iteration_bounds = array<i64: 2>, scalar_prefetch = 0 : i64, scratch_operands = 0 : i64, tpu.core_type = #tpu.core_type<tc>, window_params = [{transform_indices = @transform_0, window_bounds = array<i64: 256, 100>}, {pipeline_mode = #tpu.pipeline_mode<synchronous>, transform_indices = @transform_1, window_bounds = array<i64: 100, 512>}, {pipeline_mode = #tpu.pipeline_mode<synchronous>, transform_indices = @transform_2, window_bounds = array<i64: 1, 512>}, {pipeline_mode = #tpu.pipeline_mode<synchronous>, transform_indices = @transform_3, window_bounds = array<i64: 512, 512>}, {pipeline_mode = #tpu.pipeline_mode<synchronous>, transform_indices = @transform_4, window_bounds = array<i64: 1, 512>}, {pipeline_mode = #tpu.pipeline_mode<synchronous>, transform_indices = @transform_5, window_bounds = array<i64: 512, 128>}, {pipeline_mode = #tpu.pipeline_mode<synchronous>, transform_indices = @transform_6, window_bounds = array<i64: 1, 128>}, {transform_indices = @transform_7, window_bounds = array<i64: 256, 128>}]} {
    %c0 = arith.constant 0 : index
    %c0_0 = arith.constant 0 : index
    %0 = vector.load %arg1[%c0, %c0_0] : memref<256x100xf32, #tpu.memory_space<vmem>>, vector<256x100xf32>
    %1 = arith.truncf %0 : vector<256x100xf32> to vector<256x100xbf16>
    %c0_1 = arith.constant 0 : index
    %c0_2 = arith.constant 0 : index
    %2 = vector.load %arg2[%c0_1, %c0_2] : memref<100x512xbf16, #tpu.memory_space<vmem>>, vector<100x512xbf16>
    %cst = arith.constant dense<0.000000e+00> : vector<256x512xf32>
    %3 = tpu.matmul %1, %2, %cst {dimension_numbers = #tpu.dot_dimension_numbers<[1], [0], [0], [1], [0, 0, 1, 1], [], []>} : vector<256x100xbf16>, vector<100x512xbf16>, vector<256x512xf32> -> vector<256x512xf32>
    %c0_3 = arith.constant 0 : index
    %c0_4 = arith.constant 0 : index
    %4 = vector.load %arg3[%c0_3, %c0_4] : memref<1x512xf32, #tpu.memory_space<vmem>>, vector<1x512xf32>
    %5 = vector.broadcast %4 : vector<1x512xf32> to vector<256x512xf32>
    %6 = arith.addf %3, %5 : vector<256x512xf32>
    %cst_5 = arith.constant 0.000000e+00 : f32
    %7 = vector.broadcast %cst_5 : f32 to vector<256x512xf32>
    %8 = arith.maximumf %6, %7 : vector<256x512xf32>
    %9 = arith.truncf %8 : vector<256x512xf32> to vector<256x512xbf16>
    %c0_6 = arith.constant 0 : index
    %c0_7 = arith.constant 0 : index
    %10 = vector.load %arg4[%c0_6, %c0_7] : memref<512x512xbf16, #tpu.memory_space<vmem>>, vector<512x512xbf16>
    %cst_8 = arith.constant dense<0.000000e+00> : vector<256x512xf32>
    %11 = tpu.matmul %9, %10, %cst_8 {dimension_numbers = #tpu.dot_dimension_numbers<[1], [0], [0], [1], [0, 0, 1, 1], [], []>} : vector<256x512xbf16>, vector<512x512xbf16>, vector<256x512xf32> -> vector<256x512xf32>
    %c0_9 = arith.constant 0 : index
    %c0_10 = arith.constant 0 : index
    %12 = vector.load %arg5[%c0_9, %c0_10] : memref<1x512xf32, #tpu.memory_space<vmem>>, vector<1x512xf32>
    %13 = vector.broadcast %12 : vector<1x512xf32> to vector<256x512xf32>
    %14 = arith.addf %11, %13 : vector<256x512xf32>
    %cst_11 = arith.constant 0.000000e+00 : f32
    %15 = vector.broadcast %cst_11 : f32 to vector<256x512xf32>
    %16 = arith.maximumf %14, %15 : vector<256x512xf32>
    %17 = arith.truncf %16 : vector<256x512xf32> to vector<256x512xbf16>
    %c0_12 = arith.constant 0 : index
    %c0_13 = arith.constant 0 : index
    %18 = vector.load %arg6[%c0_12, %c0_13] : memref<512x128xbf16, #tpu.memory_space<vmem>>, vector<512x128xbf16>
    %cst_14 = arith.constant dense<0.000000e+00> : vector<256x128xf32>
    %19 = tpu.matmul %17, %18, %cst_14 {dimension_numbers = #tpu.dot_dimension_numbers<[1], [0], [0], [1], [0, 0, 1, 1], [], []>} : vector<256x512xbf16>, vector<512x128xbf16>, vector<256x128xf32> -> vector<256x128xf32>
    %c0_15 = arith.constant 0 : index
    %c0_16 = arith.constant 0 : index
    %20 = vector.load %arg7[%c0_15, %c0_16] : memref<1x128xf32, #tpu.memory_space<vmem>>, vector<1x128xf32>
    %21 = vector.broadcast %20 : vector<1x128xf32> to vector<256x128xf32>
    %22 = arith.addf %19, %21 : vector<256x128xf32>
    %c0_17 = arith.constant 0 : index
    %c0_18 = arith.constant 0 : index
    %23 = vector.load %arg8[%c0_17, %c0_18] : memref<256x128xf32, #tpu.memory_space<vmem>>, vector<256x128xf32>
    tpu.vector_store %arg8[%c0_17, %c0_18], %22 {strides = array<i32>} : memref<256x128xf32, #tpu.memory_space<vmem>>, vector<256x128xf32>,
    return
  }
  func.func @transform_0(%arg0: i32) -> (i32, i32) {
    %c0_i32 = arith.constant 0 : i32
    %c0_i32_0 = arith.constant 0 : i32
    return %arg0, %c0_i32 : i32, i32
  }
  func.func @transform_1(%arg0: i32) -> (i32, i32) {
    %c0_i32 = arith.constant 0 : i32
    %c0_i32_0 = arith.constant 0 : i32
    %c0_i32_1 = arith.constant 0 : i32
    return %c0_i32, %c0_i32_0 : i32, i32
  }
  func.func @transform_2(%arg0: i32) -> (i32, i32) {
    %c0_i32 = arith.constant 0 : i32
    %c0_i32_0 = arith.constant 0 : i32
    %c0_i32_1 = arith.constant 0 : i32
    return %c0_i32, %c0_i32_0 : i32, i32
  }
  func.func @transform_3(%arg0: i32) -> (i32, i32) {
    %c0_i32 = arith.constant 0 : i32
    %c0_i32_0 = arith.constant 0 : i32
    %c0_i32_1 = arith.constant 0 : i32
    return %c0_i32, %c0_i32_0 : i32, i32
  }
  func.func @transform_4(%arg0: i32) -> (i32, i32) {
    %c0_i32 = arith.constant 0 : i32
    %c0_i32_0 = arith.constant 0 : i32
    %c0_i32_1 = arith.constant 0 : i32
    return %c0_i32, %c0_i32_0 : i32, i32
  }
  func.func @transform_5(%arg0: i32) -> (i32, i32) {
    %c0_i32 = arith.constant 0 : i32
    %c0_i32_0 = arith.constant 0 : i32
    %c0_i32_1 = arith.constant 0 : i32
    return %c0_i32, %c0_i32_0 : i32, i32
  }
  func.func @transform_6(%arg0: i32) -> (i32, i32) {
    %c0_i32 = arith.constant 0 : i32
    %c0_i32_0 = arith.constant 0 : i32
    %c0_i32_1 = arith.constant 0 : i32
    return %c0_i32, %c0_i32_0 : i32, i32
  }
  func.func @transform_7(%arg0: i32) -> (i32, i32) {
    %c0_i32 = arith.constant 0 : i32
    %c0_i32_0 = arith.constant 0 : i32
    return %arg0, %c0_i32 : i32, i32
  }
}

</mosaic_0001>

<bundles_post_ra>
// kernel: neural_network_forward_batched.1
= control target key start
LH: loop header
LB: loop body
LE: loop exit
PB: predicated region body
PF: predicated region fallthrough
CT: control target
= control target key end

     0   :  { %12 = vsyncpa [#allocation3], 0  ;;  %s4431_s24 = smov 0   ;;  %s5877_s0 = inlined_call_operand.vmem [shape: f32[512,100], index: 0, kind: input, shape index: {}]   ;;  %s5878_s1 = inlined_call_operand.vmem [shape: bf16[100,512], index: 1, kind: input, shape index: {}]   ;;  %s5879_s2 = inlined_call_operand.vmem [shape: f32[1,512], index: 2, kind: input, shape index: {}]   ;;  %s5880_s3 = inlined_call_operand.hbm [shape: bf16[512,512], index: 3, kind: input, shape index: {}]   ;;  %s5881_s4 = inlined_call_operand.vmem [shape: f32[1,512], index: 4, kind: input, shape index: {}]   ;;  %s5882_s5 = inlined_call_operand.vmem [shape: bf16[512,128], index: 5, kind: input, shape index: {}]   ;;  %s5883_s6 = inlined_call_operand.vmem [shape: f32[1,128], index: 6, kind: input, shape index: {}]   ;;  %s5884_s7 = inlined_call_operand.vmem [shape: f32[512,128], index: 7, kind: output, shape index: {}]  }
   0x1 LB: > { %s3603_s25 = sadd.s32 4294967295, %s4385_s24   ;;  %p3605_p0 = scmp.ge.s32.totalorder %s4385_s24, 1  ;;  %s4385_s24 = sphi %s4431_s24, %s18_s24  }
   0x2   : > { %p201_p1 = scmp.lt.s32.totalorder %s4385_s24, 3  ;;  %s4387_s26 = smov [#allocation2]  }
   0x3   : > { %s219_s27 = sshll.u32 %s4387_s26, 4  ;;  %p4445_p3 = scmp.eq.s32.totalorder %s3603_s25, 0  ;;  %s220_s27 = int_to_ptr.vmem [resolvable:$true] %s219_s27 }
   0x4   : > { %p4439_p2 = pnand %p3605_p0, %p201_p1  ;;  %s4360_s30 = scalar_lea.vmem %s220_s27, 16384 }
   0x5   : > { %p4361_p7 = scmp.ne.s32.totalorder %s220_s27, %s4360_s30  ;;  %p4368_p10 = scmp.lt.s32.totalorder %s220_s27, %s220_s27 }
   0x6   : > { %p4067_p4 = pneg %p4439_p2  ;;  %p4369_p11 = scmp.lt.s32.totalorder %s4360_s30, %s4360_s30 }
   0x8   : > { %p4068_p5 = pnand %p4445_p3, %p4067_p4  ;;  %p4370_p12 = por %p4369_p11, %p4368_p10 }
   0xa   : > { %p4351_p6 = pneg %p4068_p5 }
   0xc   : > { %p4363_p8 = pnand %p4361_p7, %p4351_p6 }
   0xe   : > { %p4364_p9 = pneg %p4363_p8 }
  0x10   : > { %p4371_p13 = pnand %p4370_p12, %p4364_p9 }
  0x12   : > { %4374 = shalt.err (!%p4371_p13)
}
  0x13   : > { %s4388_s8 = smov 256   ;;  %s4389_s9 = smov 16  }
  0x14   : > { %4070 = dma.hbm_to_vmem [thread:$0]  (!%p4068_p5), %s5880_s3, 16384, %s220_s27, [#allocation3], %s4388_s8, %s4388_s8, %s4389_s9  }
  0x15   : > { %253 = sbr.rel (%p4439_p2) target bundleno = 924 (0x39c), region = 48 }
  0x1a   : > { %4380 = dma.done.wait (%p4445_p3), [#allocation3], 16384  }
  0x1b   : > { %4382 = vsyncadd (%p4445_p3), [#allocation3], 4294950912  ;;  %v4390_v0 = vmov 0   ;;  %v370_v1 = vld [vmem:[%s5878_s1 + $0xc0] sm:$0x33]  ;;  %vm573_vm0 = vcmask 1041408  }
  0x1c   : > { %618 = vmatprep.mubr.bf16.mxu0 %v4390_v0  ;;  %811 = vmatprep.mubr.bf16.mxu1 %v4390_v0  ;;  %v371_v2 = vld [vmem:[%s5878_s1 + $0xc8] sm:$0x33]  ;;  %v3639_v3 = vcombine.high %v370_v1, %v370_v1  ;;  %v3638_v5 = vcombine.low %v370_v1, %v370_v1  ;;  %v4089_v7 = vld [vmem:[%s5878_s1 + $0xa4] ss:$16 sps:$4 sm:$0xff]   ;;  %v4093_v11 = vld [vmem:[%s5878_s1 + $0xa0] ss:$16 sps:$4 sm:$0xff]  }
  0x1d   : > { %v3641_v4 = vcombine.high %v371_v2, %v371_v2  ;;  %v3640_v6 = vcombine.low %v371_v2, %v371_v2  ;;  %v4091_v8 = vld [vmem:[%s5878_s1 + $0xac] ss:$16 sps:$4 sm:$0xff]   ;;  %v4094_v12 = vld [vmem:[%s5878_s1 + $0xa8] ss:$16 sps:$4 sm:$0xff]   ;;  %v4095_v13 = vld [vmem:[%s5878_s1 + $0x84] ss:$16 sps:$4 sm:$0xff]  }
  0x1e   : > { %3642 = vmatprep.subr.msk.bf16.mxu0 %vm573_vm0, %v3639_v3  ;;  %v575_v9 = vsel %vm573_vm0, %v3638_v5, 0  ;;  %v4097_v14 = vld [vmem:[%s5878_s1 + $0x8c] ss:$16 sps:$4 sm:$0xff]   ;;  %v4099_v15 = vld [vmem:[%s5878_s1 + $0x80] ss:$16 sps:$4 sm:$0xff]   ;;  %s3610_s9 = sshll.u32 %s3603_s25, 5 }
  0x1f   : > { %3659 = vmatprep.subr.msk.bf16.mxu1 %vm573_vm0, %v3641_v4  ;;  %v581_v10 = vsel %vm573_vm0, %v3640_v6, 0  ;;  %589 = vmatpush1.bf16.msra.mxu0 %v575_v9  ;;  %v4100_v16 = vld [vmem:[%s5878_s1 + $0x88] ss:$16 sps:$4 sm:$0xff]   ;;  %v4101_v17 = vld [vmem:[%s5878_s1 + $0x64] ss:$16 sps:$4 sm:$0xff]   ;;  %p286_p0 = scmp.lt.s32.totalorder %s3610_s9, 63 }
  0x20   : > { %782 = vmatpush1.bf16.msra.mxu1 %v581_v10  ;;  %590 = vmatprep.subr.bf16.mxu0 %v4089_v7  ;;  %v4103_v18 = vld [vmem:[%s5878_s1 + $0x6c] ss:$16 sps:$4 sm:$0xff]   ;;  %v4105_v19 = vld [vmem:[%s5878_s1 + $0x60] ss:$16 sps:$4 sm:$0xff]   ;;  %v4106_v20 = vld [vmem:[%s5878_s1 + $0x68] ss:$16 sps:$4 sm:$0xff]  }
  0x21   : > { %783 = vmatprep.subr.bf16.mxu1 %v4091_v8  ;;  %v4107_v21 = vld [vmem:[%s5878_s1 + $0x44] ss:$16 sps:$4 sm:$0xff]   ;;  %v4109_v22 = vld [vmem:[%s5878_s1 + $0x4c] ss:$16 sps:$4 sm:$0xff]   ;;  %s5993_s9 = smov (!%p286_p0, %s3610_s9), 63  ;;  %vm524_vm1 = vcmask 818176  }
  0x22   : > { %v4111_v23 = vld [vmem:[%s5878_s1 + $0x40] ss:$16 sps:$4 sm:$0xff]   ;;  %v4112_v24 = vld [vmem:[%s5878_s1 + $0x48] ss:$16 sps:$4 sm:$0xff]   ;;  %v4113_v25 = vld [vmem:[%s5878_s1 + $0x24] ss:$16 sps:$4 sm:$0xff]  }
  0x23   : > { %591 = vmatpush1.bf16.msra.mxu0 %v4093_v11  ;;  %v4115_v26 = vld [vmem:[%s5878_s1 + $0x2c] ss:$16 sps:$4 sm:$0xff]   ;;  %s3611_s11 = sshll.u32 %s5993_s9, 3  ;;  %v4117_v27 = vld [vmem:[%s5878_s1 + $0x20] ss:$16 sps:$4 sm:$0xff]  }
  0x24   : > { %784 = vmatpush1.bf16.msra.mxu1 %v4094_v12  ;;  %592 = vmatprep.subr.bf16.mxu0 %v4095_v13  ;;  %v4118_v28 = vld [vmem:[%s5878_s1 + $0x28] ss:$16 sps:$4 sm:$0xff]   ;;  %v4119_v29 = vld [vmem:[%s5878_s1 + $0x4] ss:$16 sps:$4 sm:$0xff]   ;;  %v4121_v30 = vld [vmem:[%s5878_s1 + $0xc] ss:$16 sps:$4 sm:$0xff]   ;;  %s4546_s21 = scalar_lea.vmem %s5877_s0, %s3611_s11  ;;  %s5744_s18 = scalar_lea.vmem %s5884_s7, %s3611_s11 }
  0x25   : > { %785 = vmatprep.subr.bf16.mxu1 %v4097_v14  ;;  %v4123_v31 = vld [vmem:[%s5878_s1] ss:$16 sps:$4 sm:$0xff]   ;;  %v4124_v32 = vld [vmem:[%s5878_s1 + $0x8] ss:$16 sps:$4 sm:$0xff]   ;;  %v4127_v35 = vld [vmem:[#allocation2 + $0xe4] ss:$16 sps:$4 sm:$0xff]  }
  0x26   : > { %v298_v33 = vld [vmem:[%s4546_s21] sm:$0xff]  ;;  %v299_v34 = vld [vmem:[%s4546_s21 + $0x8] sm:$0xff]  ;;  %v300_v42 = vld [vmem:[%s4546_s21 + $0x10] sm:$0xff] }
  0x27   : > { %593 = vmatpush1.bf16.msra.mxu0 %v4099_v15  ;;  %v4130_v36 = vld [vmem:[#allocation2 + $0x2e4] ss:$16 sps:$4 sm:$0xff]   ;;  %v330_v37 = vpack.c.bf16 %v299_v34, %v298_v33  ;;  %v4125_v38 = vld [vmem:[#allocation2 + $0xe0] ss:$16 sps:$4 sm:$0xff]   ;;  %v301_v43 = vld [vmem:[%s4546_s21 + $0x18] sm:$0xff] }
  0x28   : > { %786 = vmatpush1.bf16.msra.mxu1 %v4100_v16  ;;  %594 = vmatprep.subr.bf16.mxu0 %v4101_v17  ;;  %v4128_v39 = vld [vmem:[#allocation2 + $0x2e0] ss:$16 sps:$4 sm:$0xff]   ;;  %v4133_v40 = vld [vmem:[#allocation2 + $0xc4] ss:$16 sps:$4 sm:$0xff]   ;;  %v331_v48 = vpack.c.bf16 %v301_v43, %v300_v42  ;;  %v303_v54 = vld [vmem:[%s4546_s21 + $0x28] sm:$0xff] }
  0x29   : > { %787 = vmatprep.subr.bf16.mxu1 %v4103_v18  ;;  %v4136_v41 = vld [vmem:[#allocation2 + $0x2c4] ss:$16 sps:$4 sm:$0xff]   ;;  %v4131_v44 = vld [vmem:[#allocation2 + $0xc0] ss:$16 sps:$4 sm:$0xff]   ;;  %v305_v2 = vld [vmem:[%s4546_s21 + $0x38] sm:$0xff] }
  0x2a   : > { %v4134_v45 = vld [vmem:[#allocation2 + $0x2c0] ss:$16 sps:$4 sm:$0xff]   ;;  %v4139_v46 = vld [vmem:[#allocation2 + $0xa4] ss:$16 sps:$4 sm:$0xff]   ;;  %v307_v13 = vld [vmem:[%s4546_s21 + $0x48] sm:$0xff] }
  0x2b   : > { %595 = vmatpush1.bf16.msra.mxu0 %v4105_v19  ;;  %v4142_v47 = vld [vmem:[#allocation2 + $0x2a4] ss:$16 sps:$4 sm:$0xff]   ;;  %v4137_v49 = vld [vmem:[#allocation2 + $0xa0] ss:$16 sps:$4 sm:$0xff]  }
  0x2c   : > { %788 = vmatpush1.bf16.msra.mxu1 %v4106_v20  ;;  %596 = vmatprep.subr.bf16.mxu0 %v4107_v21  ;;  %v4140_v50 = vld [vmem:[#allocation2 + $0x2a0] ss:$16 sps:$4 sm:$0xff]   ;;  %v4145_v51 = vld [vmem:[#allocation2 + $0x84] ss:$16 sps:$4 sm:$0xff]  }
  0x2d   : > { %789 = vmatprep.subr.bf16.mxu1 %v4109_v22  ;;  %v4148_v52 = vld [vmem:[#allocation2 + $0x284] ss:$16 sps:$4 sm:$0xff]   ;;  %v4143_v55 = vld [vmem:[#allocation2 + $0x80] ss:$16 sps:$4 sm:$0xff]  }
  0x2e   : > { %v302_v53 = vld [vmem:[%s4546_s21 + $0x20] sm:$0xff]  ;;  %v304_v1 = vld [vmem:[%s4546_s21 + $0x30] sm:$0xff] }
  0x2f   : > { %597 = vmatpush1.bf16.msra.mxu0 %v4111_v23  ;;  %v4146_v56 = vld [vmem:[#allocation2 + $0x280] ss:$16 sps:$4 sm:$0xff]   ;;  %v4151_v57 = vld [vmem:[#allocation2 + $0x64] ss:$16 sps:$4 sm:$0xff]   ;;  %v332_v59 = vpack.c.bf16 %v303_v54, %v302_v53  ;;  %v333_v7 = vpack.c.bf16 %v305_v2, %v304_v1 }
  0x30   : > { %790 = vmatpush1.bf16.msra.mxu1 %v4112_v24  ;;  %598 = vmatprep.subr.bf16.mxu0 %v4113_v25  ;;  %v4154_v58 = vld [vmem:[#allocation2 + $0x264] ss:$16 sps:$4 sm:$0xff]   ;;  %v4149_v60 = vld [vmem:[#allocation2 + $0x60] ss:$16 sps:$4 sm:$0xff]   ;;  %v309_v24 = vld [vmem:[%s4546_s21 + $0x58] sm:$0xff] }
  0x31   : > { %791 = vmatprep.subr.bf16.mxu1 %v4115_v26  ;;  %v4152_v61 = vld [vmem:[#allocation2 + $0x260] ss:$16 sps:$4 sm:$0xff]   ;;  %v4157_v62 = vld [vmem:[#allocation2 + $0x44] ss:$16 sps:$4 sm:$0xff]  }
  0x32   : > { %v4160_v63 = vld [vmem:[#allocation2 + $0x244] ss:$16 sps:$4 sm:$0xff]   ;;  %v4155_v3 = vld [vmem:[#allocation2 + $0x40] ss:$16 sps:$4 sm:$0xff]  }
  0x33   : > { %599 = vmatpush1.bf16.msra.mxu0 %v4117_v27  ;;  %v4158_v4 = vld [vmem:[#allocation2 + $0x240] ss:$16 sps:$4 sm:$0xff]   ;;  %v4163_v5 = vld [vmem:[#allocation2 + $0x24] ss:$16 sps:$4 sm:$0xff]  }
  0x34   : > { %792 = vmatpush1.bf16.msra.mxu1 %v4118_v28  ;;  %600 = vmatprep.subr.bf16.mxu0 %v4119_v29  ;;  %v4166_v6 = vld [vmem:[#allocation2 + $0x224] ss:$16 sps:$4 sm:$0xff]   ;;  %v4161_v8 = vld [vmem:[#allocation2 + $0x20] ss:$16 sps:$4 sm:$0xff]  }
  0x35   : > { %793 = vmatprep.subr.bf16.mxu1 %v4121_v30  ;;  %v4164_v9 = vld [vmem:[#allocation2 + $0x220] ss:$16 sps:$4 sm:$0xff]   ;;  %v4169_v10 = vld [vmem:[#allocation2 + $0x4] ss:$16 sps:$4 sm:$0xff]  }
  0x36   : > { %v4172_v11 = vld [vmem:[#allocation2 + $0x204] ss:$16 sps:$4 sm:$0xff]   ;;  %v4167_v14 = vld [vmem:[#allocation2] ss:$16 sps:$4 sm:$0xff]  }
  0x37   : > { %601 = vmatpush1.bf16.msra.mxu0 %v4123_v31  ;;  %v306_v12 = vld [vmem:[%s4546_s21 + $0x40] sm:$0xff]  ;;  %v308_v23 = vld [vmem:[%s4546_s21 + $0x50] sm:$0xff] }
  0x38   : > { %794 = vmatpush1.bf16.msra.mxu1 %v4124_v32  ;;  %1954 = vmatprep.subr.bf16.mxu0 %v4127_v35  ;;  %v4170_v15 = vld [vmem:[#allocation2 + $0x200] ss:$16 sps:$4 sm:$0xff]   ;;  %v4175_v16 = vld [vmem:[#allocation2 + $0x1e4] ss:$16 sps:$4 sm:$0xff]   ;;  %v334_v18 = vpack.c.bf16 %v307_v13, %v306_v12  ;;  %v335_v29 = vpack.c.bf16 %v309_v24, %v308_v23  ;;  %v311_v35 = vld [vmem:[%s4546_s21 + $0x68] sm:$0xff] }
  0x39   : > { %2147 = vmatprep.subr.bf16.mxu1 %v4130_v36  ;;  %v4178_v17 = vld [vmem:[#allocation2 + $0x3e4] ss:$16 sps:$4 sm:$0xff]   ;;  %v4173_v19 = vld [vmem:[#allocation2 + $0x1e0] ss:$16 sps:$4 sm:$0xff]   ;;  %v325_v13 = vld [vmem:[%s4546_s21 + $0xd8] sm:$0xff] }
  0x3a   : > { %3643 = vmatmul.mubr.msk.bf16.vlgmr.msra.gmra.mxu0 %vm524_vm1, %v330_v37  ;;  %v4176_v20 = vld [vmem:[#allocation2 + $0x3e0] ss:$16 sps:$4 sm:$0xff]   ;;  %v4181_v21 = vld [vmem:[#allocation2 + $0x1c4] ss:$16 sps:$4 sm:$0xff]  }
  0x3b   : > { %3660 = vmatmul.mubr.msk.bf16.vlgmr.msra.gmra.mxu1 %vm524_vm1, %v330_v37  ;;  %628 = vmatprep.mubr.bf16.mxu0 %v4390_v0  ;;  %v4184_v22 = vld [vmem:[#allocation2 + $0x3c4] ss:$16 sps:$4 sm:$0xff]   ;;  %v4179_v25 = vld [vmem:[#allocation2 + $0x1c0] ss:$16 sps:$4 sm:$0xff]  }
  0x3c   : > { %821 = vmatprep.mubr.bf16.mxu1 %v4390_v0  ;;  %1955 = vmatpush1.bf16.msra.mxu0 %v4125_v38  ;;  %v4182_v26 = vld [vmem:[#allocation2 + $0x3c0] ss:$16 sps:$4 sm:$0xff]   ;;  %v4187_v27 = vld [vmem:[#allocation2 + $0x1a4] ss:$16 sps:$4 sm:$0xff]  }
  0x3d   : > { %2148 = vmatpush1.bf16.msra.mxu1 %v4128_v39  ;;  %1956 = vmatprep.subr.bf16.mxu0 %v4133_v40  ;;  %v4190_v28 = vld [vmem:[#allocation2 + $0x3a4] ss:$16 sps:$4 sm:$0xff]   ;;  %v4185_v30 = vld [vmem:[#allocation2 + $0x1a0] ss:$16 sps:$4 sm:$0xff]  }
  0x3e   : > { %2149 = vmatprep.subr.bf16.mxu1 %v4136_v41  ;;  %v4188_v31 = vld [vmem:[#allocation2 + $0x3a0] ss:$16 sps:$4 sm:$0xff]   ;;  %v4193_v32 = vld [vmem:[#allocation2 + $0x184] ss:$16 sps:$4 sm:$0xff]  }
  0x3f   : > { %v4196_v33 = vld [vmem:[#allocation2 + $0x384] ss:$16 sps:$4 sm:$0xff]   ;;  %v4191_v36 = vld [vmem:[#allocation2 + $0x180] ss:$16 sps:$4 sm:$0xff]  }
  0x40   : > { %1957 = vmatpush1.bf16.msra.mxu0 %v4131_v44  ;;  %v310_v34 = vld [vmem:[%s4546_s21 + $0x60] sm:$0xff]  ;;  %v324_v12 = vld [vmem:[%s4546_s21 + $0xd0] sm:$0xff] }
  0x41   : > { %2150 = vmatpush1.bf16.msra.mxu1 %v4134_v45  ;;  %1958 = vmatprep.subr.bf16.mxu0 %v4139_v46  ;;  %v4194_v37 = vld [vmem:[#allocation2 + $0x380] ss:$16 sps:$4 sm:$0xff]   ;;  %v4199_v38 = vld [vmem:[#allocation2 + $0x164] ss:$16 sps:$4 sm:$0xff]   ;;  %v336_v40 = vpack.c.bf16 %v311_v35, %v310_v34  ;;  %v313_v46 = vld [vmem:[%s4546_s21 + $0x78] sm:$0xff] }
  0x42   : > { %2151 = vmatprep.subr.bf16.mxu1 %v4142_v47  ;;  %3644 = vmatmul.mubr.msk.bf16.gmra.mxu0 %vm524_vm1, %v331_v48  ;;  %v4202_v39 = vld [vmem:[#allocation2 + $0x364] ss:$16 sps:$4 sm:$0xff]   ;;  %v4197_v41 = vld [vmem:[#allocation2 + $0x160] ss:$16 sps:$4 sm:$0xff]  }
  0x43   : > { %3661 = vmatmul.mubr.msk.bf16.gmra.mxu1 %vm524_vm1, %v331_v48  ;;  %638 = vmatprep.mubr.bf16.mxu0 %v4390_v0  ;;  %v4200_v42 = vld [vmem:[#allocation2 + $0x360] ss:$16 sps:$4 sm:$0xff]   ;;  %v4205_v43 = vld [vmem:[#allocation2 + $0x144] ss:$16 sps:$4 sm:$0xff]  }
  0x44   : > { %831 = vmatprep.mubr.bf16.mxu1 %v4390_v0  ;;  %1959 = vmatpush1.bf16.msra.mxu0 %v4137_v49  ;;  %v4208_v44 = vld [vmem:[#allocation2 + $0x344] ss:$16 sps:$4 sm:$0xff]   ;;  %v4203_v47 = vld [vmem:[#allocation2 + $0x140] ss:$16 sps:$4 sm:$0xff]  }
  0x45   : > { %2152 = vmatpush1.bf16.msra.mxu1 %v4140_v50  ;;  %1960 = vmatprep.subr.bf16.mxu0 %v4145_v51  ;;  %v312_v45 = vld [vmem:[%s4546_s21 + $0x70] sm:$0xff]  ;;  %v314_v54 = vld [vmem:[%s4546_s21 + $0x80] sm:$0xff] }
  0x46   : > { %2153 = vmatprep.subr.bf16.mxu1 %v4148_v52  ;;  %v4206_v48 = vld [vmem:[#allocation2 + $0x340] ss:$16 sps:$4 sm:$0xff]   ;;  %v4211_v49 = vld [vmem:[#allocation2 + $0x124] ss:$16 sps:$4 sm:$0xff]   ;;  %v337_v51 = vpack.c.bf16 %v313_v46, %v312_v45 }
  0x47   : > { %v4214_v50 = vld [vmem:[#allocation2 + $0x324] ss:$16 sps:$4 sm:$0xff]   ;;  %v4209_v52 = vld [vmem:[#allocation2 + $0x120] ss:$16 sps:$4 sm:$0xff]  }
  0x48   : > { %1961 = vmatpush1.bf16.msra.mxu0 %v4143_v55  ;;  %v4212_v53 = vld [vmem:[#allocation2 + $0x320] ss:$16 sps:$4 sm:$0xff]   ;;  %v315_v55 = vld [vmem:[%s4546_s21 + $0x88] sm:$0xff] }
  0x49   : > { %2154 = vmatpush1.bf16.msra.mxu1 %v4146_v56  ;;  %1962 = vmatprep.subr.bf16.mxu0 %v4151_v57  ;;  %v338_v56 = vpack.c.bf16 %v315_v55, %v314_v54  ;;  %v316_v57 = vld [vmem:[%s4546_s21 + $0x90] sm:$0xff] }
  0x4a   : > { %2155 = vmatprep.subr.bf16.mxu1 %v4154_v58  ;;  %3645 = vmatmul.mubr.msk.bf16.gmra.mxu0 %vm524_vm1, %v332_v59  ;;  %v317_v58 = vld [vmem:[%s4546_s21 + $0x98] sm:$0xff]  ;;  %v4215_v1 = vld [vmem:[#allocation2 + $0x100] ss:$16 sps:$4 sm:$0xff]  }
  0x4b   : > { %3662 = vmatmul.mubr.msk.bf16.gmra.mxu1 %vm524_vm1, %v332_v59  ;;  %648 = vmatprep.mubr.bf16.mxu0 %v4390_v0  ;;  %v339_v59 = vpack.c.bf16 %v317_v58, %v316_v57  ;;  %v4218_v2 = vld [vmem:[#allocation2 + $0x300] ss:$16 sps:$4 sm:$0xff]  }
  0x4c   : > { %841 = vmatprep.mubr.bf16.mxu1 %v4390_v0  ;;  %1963 = vmatpush1.bf16.msra.mxu0 %v4149_v60  ;;  %v318_v60 = vld [vmem:[%s4546_s21 + $0xa0] sm:$0xff] }
  0x4d   : > { %2156 = vmatpush1.bf16.msra.mxu1 %v4152_v61  ;;  %1964 = vmatprep.subr.bf16.mxu0 %v4157_v62  ;;  %v319_v61 = vld [vmem:[%s4546_s21 + $0xa8] sm:$0xff]  ;;  %v4217_v62 = vld [vmem:[#allocation2 + $0x104] ss:$16 sps:$4 sm:$0xff]  }
  0x4e   : > { %2157 = vmatprep.subr.bf16.mxu1 %v4160_v63  ;;  %v4220_v63 = vld [vmem:[#allocation2 + $0x304] ss:$16 sps:$4 sm:$0xff]  }
  0x50   : > { %1965 = vmatpush1.bf16.msra.mxu0 %v4155_v3  ;;  %v340_v3 = vpack.c.bf16 %v319_v61, %v318_v60  ;;  %v4221_v61 = vld [vmem:[#allocation2 + $0xe8] ss:$16 sps:$4 sm:$0xff]  }
  0x51   : > { %2158 = vmatpush1.bf16.msra.mxu1 %v4158_v4  ;;  %1966 = vmatprep.subr.bf16.mxu0 %v4163_v5  ;;  %v320_v4 = vld [vmem:[%s4546_s21 + $0xb0] sm:$0xff]  ;;  %v321_v5 = vld [vmem:[%s4546_s21 + $0xb8] sm:$0xff] }
  0x52   : > { %2159 = vmatprep.subr.bf16.mxu1 %v4166_v6  ;;  %3646 = vmatmul.mubr.msk.bf16.gmra.mxu0 %vm524_vm1, %v333_v7  ;;  %v4223_v6 = vld [vmem:[#allocation2 + $0xec] ss:$16 sps:$4 sm:$0xff]  }
  0x53   : > { %3663 = vmatmul.mubr.msk.bf16.gmra.mxu1 %vm524_vm1, %v333_v7  ;;  %658 = vmatprep.mubr.bf16.mxu0 %v4390_v0  ;;  %v4226_v7 = vld [vmem:[#allocation2 + $0x2ec] ss:$16 sps:$4 sm:$0xff]  }
  0x54   : > { %851 = vmatprep.mubr.bf16.mxu1 %v4390_v0  ;;  %1967 = vmatpush1.bf16.msra.mxu0 %v4161_v8  ;;  %v341_v8 = vpack.c.bf16 %v321_v5, %v320_v4  ;;  %v4229_v5 = vld [vmem:[#allocation2 + $0xcc] ss:$16 sps:$4 sm:$0xff]  }
  0x55   : > { %2160 = vmatpush1.bf16.msra.mxu1 %v4164_v9  ;;  %1968 = vmatprep.subr.bf16.mxu0 %v4169_v10  ;;  %v322_v9 = vld [vmem:[%s4546_s21 + $0xc0] sm:$0xff]  ;;  %v323_v10 = vld [vmem:[%s4546_s21 + $0xc8] sm:$0xff] }
  0x56   : > { %2161 = vmatprep.subr.bf16.mxu1 %v4172_v11  ;;  %v342_v11 = vpack.c.bf16 %v323_v10, %v322_v9 }
  0x58   : > { %1969 = vmatpush1.bf16.msra.mxu0 %v4167_v14  ;;  %v343_v14 = vpack.c.bf16 %v325_v13, %v324_v12 }
  0x59   : > { %2162 = vmatpush1.bf16.msra.mxu1 %v4170_v15  ;;  %1970 = vmatprep.subr.bf16.mxu0 %v4175_v16  ;;  %v326_v15 = vld [vmem:[%s4546_s21 + $0xe0] sm:$0xff]  ;;  %v327_v16 = vld [vmem:[%s4546_s21 + $0xe8] sm:$0xff] }
  0x5a   : > { %2163 = vmatprep.subr.bf16.mxu1 %v4178_v17  ;;  %3647 = vmatmul.mubr.msk.bf16.gmra.mxu0 %vm524_vm1, %v334_v18  ;;  %v344_v17 = vpack.c.bf16 %v327_v16, %v326_v15  ;;  %v4227_v16 = vld [vmem:[#allocation2 + $0xc8] ss:$16 sps:$4 sm:$0xff]  }
  0x5b   : > { %3664 = vmatmul.mubr.msk.bf16.gmra.mxu1 %vm524_vm1, %v334_v18  ;;  %668 = vmatprep.mubr.bf16.mxu0 %v4390_v0  ;;  %v328_v18 = vld [vmem:[%s4546_s21 + $0xf0] sm:$0xff] }
  0x5c   : > { %861 = vmatprep.mubr.bf16.mxu1 %v4390_v0  ;;  %1971 = vmatpush2.bf16.msra.mxu0 %v4173_v19  ;;  %v329_v19 = vld [vmem:[%s4546_s21 + $0xf8] sm:$0xff] }
  0x5d   : > { %2164 = vmatpush2.bf16.msra.mxu1 %v4176_v20  ;;  %1972 = vmatprep.subr.bf16.mxu0 %v4181_v21  ;;  %v345_v20 = vpack.c.bf16 %v329_v19, %v328_v18  ;;  %v374_v21 = vlaneseq }
  0x5e   : > { %2165 = vmatprep.subr.bf16.mxu1 %v4184_v22 }
  0x5f   : > { %v4648_v22 = vshrl.u32 %v374_v21, 7  ;;  %v4230_v21 = vld [vmem:[#allocation2 + $0x2c8] ss:$16 sps:$4 sm:$0xff]  }
  0x60   : > { %1973 = vmatpush2.bf16.msra.mxu0 %v4179_v25 }
  0x61   : > { %2166 = vmatpush2.bf16.msra.mxu1 %v4182_v26  ;;  %1974 = vmatprep.subr.bf16.mxu0 %v4187_v27  ;;  %5917 = vst [vmem:[#allocation5_spill] sm:$0xff] %v4648_v22  ;;  %v5888_v23 = vsub.s32 1, %v4648_v22  ;;  %v5886_v24 = vsub.s32 3, %v4648_v22  ;;  %v5887_v25 = vsub.s32 0, %v4648_v22  ;;  %v5885_v26 = vsub.s32 2, %v4648_v22 }
  0x62   : > { %2167 = vmatprep.subr.bf16.mxu1 %v4190_v28  ;;  %3648 = vmatmul.mubr.msk.bf16.gmra.mxu0 %vm524_vm1, %v335_v29 }
  0x63   : > { %3665 = vmatmul.mubr.msk.bf16.gmra.mxu1 %vm524_vm1, %v335_v29  ;;  %678 = vmatprep.mubr.bf16.mxu0 %v4390_v0 }
  0x64   : > { %871 = vmatprep.mubr.bf16.mxu1 %v4390_v0  ;;  %1975 = vmatpush2.bf16.msra.mxu0 %v4185_v30 }
  0x65   : > { %2168 = vmatpush2.bf16.msra.mxu1 %v4188_v31  ;;  %1976 = vmatprep.subr.bf16.mxu0 %v4193_v32 }
  0x66   : > { %2169 = vmatprep.subr.bf16.mxu1 %v4196_v33 }
  0x68   : > { %1977 = vmatpush2.bf16.msra.mxu0 %v4191_v36 }
  0x69   : > { %2170 = vmatpush2.bf16.msra.mxu1 %v4194_v37  ;;  %1978 = vmatprep.subr.bf16.mxu0 %v4199_v38 }
  0x6a   : > { %2171 = vmatprep.subr.bf16.mxu1 %v4202_v39  ;;  %3649 = vmatmul.mubr.msk.bf16.gmra.mxu0 %vm524_vm1, %v336_v40 }
  0x6b   : > { %3666 = vmatmul.mubr.msk.bf16.gmra.mxu1 %vm524_vm1, %v336_v40  ;;  %688 = vmatprep.mubr.bf16.mxu0 %v4390_v0 }
  0x6c   : > { %881 = vmatprep.mubr.bf16.mxu1 %v4390_v0  ;;  %1979 = vmatpush2.bf16.msra.mxu0 %v4197_v41 }
  0x6d   : > { %2172 = vmatpush2.bf16.msra.mxu1 %v4200_v42  ;;  %1980 = vmatprep.subr.bf16.mxu0 %v4205_v43 }
  0x6e   : > { %2173 = vmatprep.subr.bf16.mxu1 %v4208_v44 }
  0x70   : > { %1981 = vmatpush2.bf16.msra.mxu0 %v4203_v47 }
  0x71   : > { %2174 = vmatpush2.bf16.msra.mxu1 %v4206_v48  ;;  %1982 = vmatprep.subr.bf16.mxu0 %v4211_v49 }
  0x72   : > { %2175 = vmatprep.subr.bf16.mxu1 %v4214_v50  ;;  %3650 = vmatmul.mubr.msk.bf16.gmra.mxu0 %vm524_vm1, %v337_v51 }
  0x73   : > { %3667 = vmatmul.mubr.msk.bf16.gmra.mxu1 %vm524_vm1, %v337_v51  ;;  %698 = vmatprep.mubr.bf16.mxu0 %v4390_v0 }
  0x74   : > { %891 = vmatprep.mubr.bf16.mxu1 %v4390_v0  ;;  %1983 = vmatpush2.bf16.msra.mxu0 %v4209_v52 }
  0x75   : > { %2176 = vmatpush2.bf16.msra.mxu1 %v4212_v53  ;;  %1984 = vmatprep.subr.bf16.mxu0 %v4217_v62  ;;  %v4224_v62 = vld [vmem:[#allocation2 + $0x2e8] ss:$16 sps:$4 sm:$0xff]  }
  0x76   : > { %2177 = vmatprep.subr.bf16.mxu1 %v4220_v63 }
  0x78   : > { %1985 = vmatpush2.bf16.msra.mxu0 %v4215_v1 }
  0x79   : > { %2178 = vmatpush2.bf16.msra.mxu1 %v4218_v2  ;;  %2340 = vmatprep.subr.bf16.mxu0 %v4223_v6  ;;  %v4232_v6 = vld [vmem:[#allocation2 + $0x2cc] ss:$16 sps:$4 sm:$0xff]  }
  0x7a   : > { %3651 = vmatmul.mubr.msk.bf16.gmra.mxu0 %vm524_vm1, %v338_v56  ;;  %2533 = vmatprep.subr.bf16.mxu1 %v4226_v7 }
  0x7b   : > { %3668 = vmatmul.mubr.msk.bf16.gmra.mxu1 %vm524_vm1, %v338_v56  ;;  %708 = vmatprep.mubr.bf16.mxu0 %v4390_v0 }
  0x7c   : > { %901 = vmatprep.mubr.bf16.mxu1 %v4390_v0 }
  0x82   : > { %3652 = vmatmul.mubr.msk.bf16.gmra.mxu0 %vm524_vm1, %v339_v59 }
  0x83   : > { %3669 = vmatmul.mubr.msk.bf16.gmra.mxu1 %vm524_vm1, %v339_v59  ;;  %718 = vmatprep.mubr.bf16.mxu0 %v4390_v0 }
  0x84   : > { %911 = vmatprep.mubr.bf16.mxu1 %v4390_v0 }
  0x8a   : > { %3653 = vmatmul.mubr.msk.bf16.gmra.mxu0 %vm524_vm1, %v340_v3 }
  0x8b   : > { %3670 = vmatmul.mubr.msk.bf16.gmra.mxu1 %vm524_vm1, %v340_v3  ;;  %728 = vmatprep.mubr.bf16.mxu0 %v4390_v0 }
  0x8c   : > { %921 = vmatprep.mubr.bf16.mxu1 %v4390_v0 }
  0x92   : > { %3654 = vmatmul.mubr.msk.bf16.gmra.mxu0 %vm524_vm1, %v341_v8 }
  0x93   : > { %3671 = vmatmul.mubr.msk.bf16.gmra.mxu1 %vm524_vm1, %v341_v8  ;;  %738 = vmatprep.mubr.bf16.mxu0 %v4390_v0 }
  0x94   : > { %931 = vmatprep.mubr.bf16.mxu1 %v4390_v0 }
  0x9a   : > { %3655 = vmatmul.mubr.msk.bf16.gmra.mxu0 %vm524_vm1, %v342_v11 }
  0x9b   : > { %3672 = vmatmul.mubr.msk.bf16.gmra.mxu1 %vm524_vm1, %v342_v11  ;;  %748 = vmatprep.mubr.bf16.mxu0 %v4390_v0 }
  0x9c   : > { %941 = vmatprep.mubr.bf16.mxu1 %v4390_v0 }
  0xa2   : > { %3656 = vmatmul.mubr.msk.bf16.gmra.mxu0 %vm524_vm1, %v343_v14 }
  0xa3   : > { %3673 = vmatmul.mubr.msk.bf16.gmra.mxu1 %vm524_vm1, %v343_v14  ;;  %758 = vmatprep.mubr.bf16.mxu0 %v4390_v0 }
  0xa4   : > { %951 = vmatprep.mubr.bf16.mxu1 %v4390_v0 }
  0xaa   : > { %3657 = vmatmul.mubr.msk.bf16.gmra.mxu0 %vm524_vm1, %v344_v17 }
  0xab   : > { %3674 = vmatmul.mubr.msk.bf16.gmra.mxu1 %vm524_vm1, %v344_v17  ;;  %768 = vmatprep.mubr.bf16.mxu0 %v4390_v0 }
  0xac   : > { %961 = vmatprep.mubr.bf16.mxu1 %v4390_v0  ;;  %v372_v0 = vld [vmem:[%s5879_s2] sm:$0xf] }
  0xad   : > { %v4659_v29 = vrot.slane %v372_v0, %v5888_v23  ;;  %v4663_v30 = vrot.slane %v372_v0, %v5886_v24  ;;  %v4667_v31 = vrot.slane %v372_v0, %v5887_v25  ;;  %v4671_v32 = vrot.slane %v372_v0, %v5885_v26  ;;  %v4235_v0 = vld [vmem:[#allocation2 + $0xac] ss:$16 sps:$4 sm:$0xff]  }
  0xb2   : > { %3658 = vmatmul.mubr.msk.bf16.gmra.mxu0 %vm524_vm1, %v345_v20 }
  0xb3   : > { %3675 = vmatmul.mubr.msk.bf16.gmra.mxu1 %vm524_vm1, %v345_v20 }
  0xfa   : > { %v620_v27 = vpop.f32.mrf.mxu0 }
  0xfb   : > { %v813_v28 = vpop.f32.mrf.mxu1  ;;  %v621_v41 = vadd.f32 %v620_v27, %v4667_v31 }
  0xfc   : > { %v622_v33 = vpop.f32.mrf.mxu0  ;;  %v814_v42 = vadd.f32 %v813_v28, %v4671_v32 }
  0xfd   : > { %v815_v34 = vpop.f32.mrf.mxu1  ;;  %v623_v37 = vadd.f32 %v622_v33, %v4659_v29  ;;  %v972_v55 = vmax.f32 %v621_v41, 0.0  ;;  %v4233_v41 = vld [vmem:[#allocation2 + $0xa8] ss:$16 sps:$4 sm:$0xff]  }
  0xfe   : > { %v624_v35 = vpop.f32.mrf.mxu0  ;;  %v816_v38 = vadd.f32 %v815_v34, %v4663_v30  ;;  %v974_v56 = vmax.f32 %v814_v42, 0.0  ;;  %v4238_v42 = vld [vmem:[#allocation2 + $0x2ac] ss:$16 sps:$4 sm:$0xff]  }
  0xff   : > { %v817_v36 = vpop.f32.mrf.mxu1  ;;  %v625_v39 = vadd.f32 %v624_v35, %v4667_v31  ;;  %v973_v51 = vmax.f32 %v623_v37, 0.0 }
 0x100   : > { %v818_v40 = vadd.f32 %v817_v36, %v4671_v32  ;;  %v626_v43 = vpop.f32.mrf.mxu0  ;;  %v975_v52 = vmax.f32 %v816_v38, 0.0 }
 0x101   : > { %v819_v44 = vpop.f32.mrf.mxu1  ;;  %v627_v45 = vadd.f32 %v626_v43, %v4659_v29  ;;  %v976_v47 = vmax.f32 %v625_v39, 0.0 }
 0x102   : > { %v820_v46 = vadd.f32 %v819_v44, %v4663_v30  ;;  %v978_v48 = vmax.f32 %v818_v40, 0.0  ;;  %v630_v49 = vpop.f32.mrf.mxu0 }
 0x103   : > { %v823_v50 = vpop.f32.mrf.mxu1  ;;  %v977_v53 = vmax.f32 %v627_v45, 0.0  ;;  %v4685_v63 = vpack.c.bf16 %v976_v47, %v972_v55  ;;  %v631_v10 = vadd.f32 %v630_v49, %v4667_v31  ;;  %v4241_v49 = vld [vmem:[#allocation2 + $0x8c] ss:$16 sps:$4 sm:$0xff]  }
 0x104   : > { %v979_v54 = vmax.f32 %v820_v46, 0.0  ;;  %v632_v57 = vpop.f32.mrf.mxu0  ;;  %v4687_v1 = vpack.c.bf16 %v978_v48, %v974_v56  ;;  %v824_v11 = vadd.f32 %v823_v50, %v4671_v32  ;;  %v4236_v48 = vld [vmem:[#allocation2 + $0x2a8] ss:$16 sps:$4 sm:$0xff]  }
 0x105   : > { %v825_v58 = vpop.f32.mrf.mxu1  ;;  %v4681_v59 = vpack.c.bf16 %v977_v53, %v973_v51  ;;  %v633_v2 = vadd.f32 %v632_v57, %v4659_v29  ;;  %v980_v35 = vmax.f32 %v631_v10, 0.0  ;;  %v4244_v53 = vld [vmem:[#allocation2 + $0x28c] ss:$16 sps:$4 sm:$0xff]  }
 0x106   : > { %v4683_v60 = vpack.c.bf16 %v979_v54, %v975_v52  ;;  %v634_v3 = vpop.f32.mrf.mxu0  ;;  %v826_v7 = vadd.f32 %v825_v58, %v4663_v30  ;;  %v982_v36 = vmax.f32 %v824_v11, 0.0 }
 0x107   : > { %v827_v4 = vpop.f32.mrf.mxu1  ;;  %v635_v8 = vadd.f32 %v634_v3, %v4667_v31  ;;  %1986 = vmatprep.mubr.bf16.mxu0 %v4681_v59  ;;  %v981_v27 = vmax.f32 %v633_v2, 0.0 }
 0x108   : > { %v828_v9 = vadd.f32 %v827_v4, %v4671_v32  ;;  %2179 = vmatprep.mubr.bf16.mxu1 %v4683_v60  ;;  %v636_v12 = vpop.f32.mrf.mxu0  ;;  %1987 = vmatmul.mubr.bf16.vlgmr.msra.gmra.mxu0 %v4685_v63  ;;  %v983_v28 = vmax.f32 %v826_v7, 0.0  ;;  %v4247_v7 = vld [vmem:[#allocation2 + $0x6c] ss:$16 sps:$4 sm:$0xff]  }
 0x109   : > { %v829_v13 = vpop.f32.mrf.mxu1  ;;  %2180 = vmatmul.mubr.bf16.vlgmr.msra.gmra.mxu1 %v4687_v1  ;;  %v637_v14 = vadd.f32 %v636_v12, %v4659_v29  ;;  %2341 = vmatpush1.bf16.msra.mxu0 %v4221_v61  ;;  %v984_v17 = vmax.f32 %v635_v8, 0.0 }
 0x10a   : > { %v830_v15 = vadd.f32 %v829_v13, %v4663_v30  ;;  %2534 = vmatpush1.bf16.msra.mxu1 %v4224_v62  ;;  %v986_v18 = vmax.f32 %v828_v9, 0.0  ;;  %v640_v19 = vpop.f32.mrf.mxu0  ;;  %2342 = vmatprep.subr.bf16.mxu0 %v4229_v5  ;;  %v4239_v62 = vld [vmem:[#allocation2 + $0x88] ss:$16 sps:$4 sm:$0xff]  }
 0x10b   : > { %v833_v20 = vpop.f32.mrf.mxu1  ;;  %2535 = vmatprep.subr.bf16.mxu1 %v4232_v6  ;;  %v985_v33 = vmax.f32 %v637_v14, 0.0  ;;  %v4705_v43 = vpack.c.bf16 %v984_v17, %v980_v35  ;;  %v641_v54 = vadd.f32 %v640_v19, %v4667_v31  ;;  %v4242_v6 = vld [vmem:[#allocation2 + $0x288] ss:$16 sps:$4 sm:$0xff]   ;;  %v4250_v19 = vld [vmem:[#allocation2 + $0x26c] ss:$16 sps:$4 sm:$0xff]  }
 0x10c   : > { %v987_v34 = vmax.f32 %v830_v15, 0.0  ;;  %v642_v37 = vpop.f32.mrf.mxu0  ;;  %v4707_v44 = vpack.c.bf16 %v986_v18, %v982_v36  ;;  %v834_v55 = vadd.f32 %v833_v20, %v4671_v32  ;;  %v4245_v18 = vld [vmem:[#allocation2 + $0x68] ss:$16 sps:$4 sm:$0xff]  }
 0x10d   : > { %v835_v38 = vpop.f32.mrf.mxu1  ;;  %v4701_v39 = vpack.c.bf16 %v985_v33, %v981_v27  ;;  %2343 = vmatpush1.bf16.msra.mxu0 %v4227_v16  ;;  %v643_v45 = vadd.f32 %v642_v37, %v4659_v29  ;;  %v988_v12 = vmax.f32 %v641_v54, 0.0  ;;  %v4248_v33 = vld [vmem:[#allocation2 + $0x268] ss:$16 sps:$4 sm:$0xff]  }
 0x10e   : > { %v4703_v40 = vpack.c.bf16 %v987_v34, %v983_v28  ;;  %v644_v46 = vpop.f32.mrf.mxu0  ;;  %2536 = vmatpush1.bf16.msra.mxu1 %v4230_v21  ;;  %2344 = vmatprep.subr.bf16.mxu0 %v4235_v0  ;;  %v836_v50 = vadd.f32 %v835_v38, %v4663_v30  ;;  %v990_v13 = vmax.f32 %v834_v55, 0.0  ;;  %v4253_v34 = vld [vmem:[#allocation2 + $0x4c] ss:$16 sps:$4 sm:$0xff]   ;;  %v4254_v54 = vld [vmem:[#allocation2 + $0x248] ss:$16 sps:$4 sm:$0xff]  }
 0x10f   : > { %v837_v47 = vpop.f32.mrf.mxu1  ;;  %v645_v51 = vadd.f32 %v644_v46, %v4667_v31  ;;  %1996 = vmatprep.mubr.bf16.mxu0 %v4701_v39  ;;  %2537 = vmatprep.subr.bf16.mxu1 %v4238_v42  ;;  %v989_v8 = vmax.f32 %v643_v45, 0.0  ;;  %v4256_v38 = vld [vmem:[#allocation2 + $0x24c] ss:$16 sps:$4 sm:$0xff]  }
 0x110   : > { %v838_v52 = vadd.f32 %v837_v47, %v4671_v32  ;;  %2189 = vmatprep.mubr.bf16.mxu1 %v4703_v40  ;;  %v646_v56 = vpop.f32.mrf.mxu0  ;;  %1997 = vmatmul.mubr.bf16.gmra.mxu0 %v4705_v43  ;;  %v991_v9 = vmax.f32 %v836_v50, 0.0  ;;  %v4259_v55 = vld [vmem:[#allocation2 + $0x2c] ss:$16 sps:$4 sm:$0xff]  }
 0x111   : > { %v839_v57 = vpop.f32.mrf.mxu1  ;;  %2190 = vmatmul.mubr.bf16.gmra.mxu1 %v4707_v44  ;;  %v647_v58 = vadd.f32 %v646_v56, %v4659_v29  ;;  %2345 = vmatpush1.bf16.msra.mxu0 %v4233_v41  ;;  %v992_v2 = vmax.f32 %v645_v51, 0.0 }
 0x112   : > { %v840_v61 = vadd.f32 %v839_v57, %v4663_v30  ;;  %v994_v3 = vmax.f32 %v838_v52, 0.0  ;;  %v650_v4 = vpop.f32.mrf.mxu0  ;;  %2538 = vmatpush1.bf16.msra.mxu1 %v4236_v48  ;;  %2346 = vmatprep.subr.bf16.mxu0 %v4241_v49  ;;  %v4251_v49 = vld [vmem:[#allocation2 + $0x48] ss:$16 sps:$4 sm:$0xff]  }
 0x113   : > { %v843_v5 = vpop.f32.mrf.mxu1  ;;  %v993_v10 = vmax.f32 %v647_v58, 0.0  ;;  %2539 = vmatprep.subr.bf16.mxu1 %v4244_v53  ;;  %v4725_v20 = vpack.c.bf16 %v992_v2, %v988_v12  ;;  %v651_v41 = vadd.f32 %v650_v4, %v4667_v31 }
 0x114   : > { %v995_v11 = vmax.f32 %v840_v61, 0.0  ;;  %v652_v14 = vpop.f32.mrf.mxu0  ;;  %v4727_v21 = vpack.c.bf16 %v994_v3, %v990_v13  ;;  %v844_v42 = vadd.f32 %v843_v5, %v4671_v32 }
 0x115   : > { %v845_v15 = vpop.f32.mrf.mxu1  ;;  %v4721_v16 = vpack.c.bf16 %v993_v10, %v989_v8  ;;  %2347 = vmatpush1.bf16.msra.mxu0 %v4239_v62  ;;  %v653_v0 = vadd.f32 %v652_v14, %v4659_v29  ;;  %v996_v62 = vmax.f32 %v651_v41, 0.0  ;;  %v4262_v8 = vld [vmem:[#allocation2 + $0x22c] ss:$16 sps:$4 sm:$0xff]   ;;  %v4260_v14 = vld [vmem:[#allocation2 + $0x228] ss:$16 sps:$4 sm:$0xff]  }
 0x116   : > { %v4723_v17 = vpack.c.bf16 %v995_v11, %v991_v9  ;;  %v654_v27 = vpop.f32.mrf.mxu0  ;;  %2540 = vmatpush1.bf16.msra.mxu1 %v4242_v6  ;;  %2348 = vmatprep.subr.bf16.mxu0 %v4247_v7  ;;  %v846_v35 = vadd.f32 %v845_v15, %v4663_v30  ;;  %v998_v2 = vmax.f32 %v844_v42, 0.0  ;;  %v4257_v7 = vld [vmem:[#allocation2 + $0x28] ss:$16 sps:$4 sm:$0xff]   ;;  %v4265_v15 = vld [vmem:[#allocation2 + $0xc] ss:$16 sps:$4 sm:$0xff]  }
 0x117   : > { %v847_v28 = vpop.f32.mrf.mxu1  ;;  %v655_v36 = vadd.f32 %v654_v27, %v4667_v31  ;;  %2006 = vmatprep.mubr.bf16.mxu0 %v4721_v16  ;;  %2541 = vmatprep.subr.bf16.mxu1 %v4250_v19  ;;  %v997_v56 = vmax.f32 %v653_v0, 0.0  ;;  %v4268_v27 = vld [vmem:[#allocation2 + $0x20c] ss:$16 sps:$4 sm:$0xff]  }
 0x118   : > { %v848_v37 = vadd.f32 %v847_v28, %v4671_v32  ;;  %2199 = vmatprep.mubr.bf16.mxu1 %v4723_v17  ;;  %v656_v45 = vpop.f32.mrf.mxu0  ;;  %2007 = vmatmul.mubr.bf16.gmra.mxu0 %v4725_v20  ;;  %v999_v57 = vmax.f32 %v846_v35, 0.0 }
 0x119   : > { %v849_v46 = vpop.f32.mrf.mxu1  ;;  %2200 = vmatmul.mubr.bf16.gmra.mxu1 %v4727_v21  ;;  %v657_v47 = vadd.f32 %v656_v45, %v4659_v29  ;;  %2349 = vmatpush1.bf16.msra.mxu0 %v4245_v18  ;;  %v1000_v50 = vmax.f32 %v655_v36, 0.0 }
 0x11a   : > { %v850_v48 = vadd.f32 %v849_v46, %v4663_v30  ;;  %v1002_v51 = vmax.f32 %v848_v37, 0.0  ;;  %v660_v52 = vpop.f32.mrf.mxu0  ;;  %2542 = vmatpush1.bf16.msra.mxu1 %v4248_v33  ;;  %2350 = vmatprep.subr.bf16.mxu0 %v4253_v34 }
 0x11b   : > { %v853_v53 = vpop.f32.mrf.mxu1  ;;  %v1001_v58 = vmax.f32 %v657_v47, 0.0  ;;  %2543 = vmatprep.subr.bf16.mxu1 %v4256_v38  ;;  %v4745_v9 = vpack.c.bf16 %v1000_v50, %v996_v62  ;;  %v661_v28 = vadd.f32 %v660_v52, %v4667_v31  ;;  %v4263_v38 = vld [vmem:[#allocation2 + $0x8] ss:$16 sps:$4 sm:$0xff]   ;;  %v4274_v62 = vld [vmem:[#allocation2 + $0x3ec] ss:$16 sps:$4 sm:$0xff]  }
 0x11c   : > { %v1003_v61 = vmax.f32 %v850_v48, 0.0  ;;  %v662_v3 = vpop.f32.mrf.mxu0  ;;  %v4747_v10 = vpack.c.bf16 %v1002_v51, %v998_v2  ;;  %v854_v33 = vadd.f32 %v853_v53, %v4671_v32  ;;  %v4266_v47 = vld [vmem:[#allocation2 + $0x208] ss:$16 sps:$4 sm:$0xff]   ;;  %v4271_v48 = vld [vmem:[#allocation2 + $0x1ec] ss:$16 sps:$4 sm:$0xff]  }
 0x11d   : > { %v855_v4 = vpop.f32.mrf.mxu1  ;;  %v4741_v5 = vpack.c.bf16 %v1001_v58, %v997_v56  ;;  %2351 = vmatpush1.bf16.msra.mxu0 %v4251_v49  ;;  %v663_v11 = vadd.f32 %v662_v3, %v4659_v29  ;;  %v1004_v53 = vmax.f32 %v661_v28, 0.0 }
 0x11e   : > { %v4743_v6 = vpack.c.bf16 %v1003_v61, %v999_v57  ;;  %v664_v12 = vpop.f32.mrf.mxu0  ;;  %2544 = vmatpush1.bf16.msra.mxu1 %v4254_v54  ;;  %2352 = vmatprep.subr.bf16.mxu0 %v4259_v55  ;;  %v856_v18 = vadd.f32 %v855_v4, %v4663_v30  ;;  %v1006_v54 = vmax.f32 %v854_v33, 0.0  ;;  %v4269_v61 = vld [vmem:[#allocation2 + $0x1e8] ss:$16 sps:$4 sm:$0xff]  }
 0x11f   : > { %v857_v13 = vpop.f32.mrf.mxu1  ;;  %v665_v19 = vadd.f32 %v664_v12, %v4667_v31  ;;  %2016 = vmatprep.mubr.bf16.mxu0 %v4741_v5  ;;  %2545 = vmatprep.subr.bf16.mxu1 %v4262_v8  ;;  %v1005_v49 = vmax.f32 %v663_v11, 0.0  ;;  %v4272_v11 = vld [vmem:[#allocation2 + $0x3e8] ss:$16 sps:$4 sm:$0xff]   ;;  %v4277_v12 = vld [vmem:[#allocation2 + $0x1cc] ss:$16 sps:$4 sm:$0xff]  }
 0x120   : > { %v858_v0 = vadd.f32 %v857_v13, %v4671_v32  ;;  %2209 = vmatprep.mubr.bf16.mxu1 %v4743_v6  ;;  %v666_v34 = vpop.f32.mrf.mxu0  ;;  %2017 = vmatmul.mubr.bf16.gmra.mxu0 %v4745_v9  ;;  %v1007_v50 = vmax.f32 %v856_v18, 0.0  ;;  %v4280_v18 = vld [vmem:[#allocation2 + $0x3cc] ss:$16 sps:$4 sm:$0xff]  }
 0x121   : > { %v859_v35 = vpop.f32.mrf.mxu1  ;;  %2210 = vmatmul.mubr.bf16.gmra.mxu1 %v4747_v10  ;;  %v667_v36 = vadd.f32 %v666_v34, %v4659_v29  ;;  %2353 = vmatpush1.bf16.msra.mxu0 %v4257_v7  ;;  %v1008_v41 = vmax.f32 %v665_v19, 0.0 }
 0x122   : > { %v860_v37 = vadd.f32 %v859_v35, %v4663_v30  ;;  %v1010_v42 = vmax.f32 %v858_v0, 0.0  ;;  %v670_v45 = vpop.f32.mrf.mxu0  ;;  %2546 = vmatpush1.bf16.msra.mxu1 %v4260_v14  ;;  %2354 = vmatprep.subr.bf16.mxu0 %v4265_v15  ;;  %v4275_v35 = vld [vmem:[#allocation2 + $0x1c8] ss:$16 sps:$4 sm:$0xff]  }
 0x123   : > { %v863_v46 = vpop.f32.mrf.mxu1  ;;  %v1009_v51 = vmax.f32 %v667_v36, 0.0  ;;  %2547 = vmatprep.subr.bf16.mxu1 %v4268_v27  ;;  %v4765_v2 = vpack.c.bf16 %v1008_v41, %v1004_v53  ;;  %v671_v19 = vadd.f32 %v670_v45, %v4667_v31  ;;  %v4283_v45 = vld [vmem:[#allocation2 + $0x1ac] ss:$16 sps:$4 sm:$0xff]  }
 0x124   : > { %v1011_v52 = vmax.f32 %v860_v37, 0.0  ;;  %v672_v55 = vpop.f32.mrf.mxu0  ;;  %v4767_v3 = vpack.c.bf16 %v1010_v42, %v1006_v54  ;;  %v864_v0 = vadd.f32 %v863_v46, %v4671_v32  ;;  %v4278_v42 = vld [vmem:[#allocation2 + $0x3c8] ss:$16 sps:$4 sm:$0xff]  }
 0x125   : > { %v865_v56 = vpop.f32.mrf.mxu1  ;;  %v4761_v57 = vpack.c.bf16 %v1009_v51, %v1005_v49  ;;  %2355 = vmatpush1.bf16.msra.mxu0 %v4263_v38  ;;  %v673_v4 = vadd.f32 %v672_v55, %v4659_v29 }
 0x126   : > { %v4763_v58 = vpack.c.bf16 %v1011_v52, %v1007_v50  ;;  %v674_v7 = vpop.f32.mrf.mxu0  ;;  %2548 = vmatpush1.bf16.msra.mxu1 %v4266_v47  ;;  %2356 = vmatprep.subr.bf16.mxu0 %v4271_v48  ;;  %v866_v13 = vadd.f32 %v865_v56, %v4663_v30  ;;  %v1012_v50 = vmax.f32 %v671_v19, 0.0  ;;  %v1014_v51 = vmax.f32 %v864_v0, 0.0  ;;  %v4281_v56 = vld [vmem:[#allocation2 + $0x1a8] ss:$16 sps:$4 sm:$0xff]   ;;  %v4292_v19 = vld [vmem:[#allocation2 + $0x38c] ss:$16 sps:$4 sm:$0xff]  }
 0x127   : > { %v867_v8 = vpop.f32.mrf.mxu1  ;;  %v675_v14 = vadd.f32 %v674_v7, %v4667_v31  ;;  %2026 = vmatprep.mubr.bf16.mxu0 %v4761_v57  ;;  %2549 = vmatprep.subr.bf16.mxu1 %v4274_v62  ;;  %v1013_v46 = vmax.f32 %v673_v4, 0.0 }
 0x128   : > { %v868_v15 = vadd.f32 %v867_v8, %v4671_v32  ;;  %2219 = vmatprep.mubr.bf16.mxu1 %v4763_v58  ;;  %v676_v27 = vpop.f32.mrf.mxu0  ;;  %2027 = vmatmul.mubr.bf16.gmra.mxu0 %v4765_v2  ;;  %v1015_v47 = vmax.f32 %v866_v13, 0.0  ;;  %v4289_v13 = vld [vmem:[#allocation2 + $0x18c] ss:$16 sps:$4 sm:$0xff]  }
 0x129   : > { %v869_v28 = vpop.f32.mrf.mxu1  ;;  %2220 = vmatmul.mubr.bf16.gmra.mxu1 %v4767_v3  ;;  %v677_v33 = vadd.f32 %v676_v27, %v4659_v29  ;;  %2357 = vmatpush2.bf16.msra.mxu0 %v4269_v61  ;;  %v1016_v36 = vmax.f32 %v675_v14, 0.0  ;;  %v4286_v61 = vld [vmem:[#allocation2 + $0x3ac] ss:$16 sps:$4 sm:$0xff]  }
 0x12a   : > { %v870_v34 = vadd.f32 %v869_v28, %v4663_v30  ;;  %v1018_v37 = vmax.f32 %v868_v15, 0.0  ;;  %v680_v38 = vpop.f32.mrf.mxu0  ;;  %2550 = vmatpush2.bf16.msra.mxu1 %v4272_v11  ;;  %2358 = vmatprep.subr.bf16.mxu0 %v4277_v12  ;;  %v4284_v12 = vld [vmem:[#allocation2 + $0x3a8] ss:$16 sps:$4 sm:$0xff]  }
 0x12b   : > { %v873_v41 = vpop.f32.mrf.mxu1  ;;  %v1017_v48 = vmax.f32 %v677_v33, 0.0  ;;  %2551 = vmatprep.subr.bf16.mxu1 %v4280_v18  ;;  %v4785_v62 = vpack.c.bf16 %v1016_v36, %v1012_v50  ;;  %v681_v0 = vadd.f32 %v680_v38, %v4667_v31  ;;  %v4287_v36 = vld [vmem:[#allocation2 + $0x188] ss:$16 sps:$4 sm:$0xff]  }
 0x12c   : > { %v1019_v49 = vmax.f32 %v870_v34, 0.0  ;;  %v682_v52 = vpop.f32.mrf.mxu0  ;;  %v4787_v7 = vpack.c.bf16 %v1018_v37, %v1014_v51  ;;  %v874_v27 = vadd.f32 %v873_v41, %v4671_v32  ;;  %v4290_v38 = vld [vmem:[#allocation2 + $0x388] ss:$16 sps:$4 sm:$0xff]   ;;  %v4295_v41 = vld [vmem:[#allocation2 + $0x16c] ss:$16 sps:$4 sm:$0xff]  }
 0x12d   : > { %v875_v53 = vpop.f32.mrf.mxu1  ;;  %v4781_v54 = vpack.c.bf16 %v1017_v48, %v1013_v46  ;;  %2359 = vmatpush2.bf16.msra.mxu0 %v4275_v35  ;;  %v683_v4 = vadd.f32 %v682_v52, %v4659_v29  ;;  %v1020_v51 = vmax.f32 %v681_v0, 0.0  ;;  %v4301_v0 = vld [vmem:[#allocation2 + $0x14c] ss:$16 sps:$4 sm:$0xff]  }
 0x12e   : > { %v4783_v55 = vpack.c.bf16 %v1019_v49, %v1015_v47  ;;  %v684_v8 = vpop.f32.mrf.mxu0  ;;  %2552 = vmatpush2.bf16.msra.mxu1 %v4278_v42  ;;  %2360 = vmatprep.subr.bf16.mxu0 %v4283_v45  ;;  %v876_v14 = vadd.f32 %v875_v53, %v4663_v30  ;;  %v1022_v52 = vmax.f32 %v874_v27, 0.0 }
 0x12f   : > { %v877_v11 = vpop.f32.mrf.mxu1  ;;  %v685_v15 = vadd.f32 %v684_v8, %v4667_v31  ;;  %2036 = vmatprep.mubr.bf16.mxu0 %v4781_v54  ;;  %2553 = vmatprep.subr.bf16.mxu1 %v4286_v61  ;;  %v1021_v47 = vmax.f32 %v683_v4, 0.0 }
 0x130   : > { %v878_v18 = vadd.f32 %v877_v11, %v4671_v32  ;;  %2229 = vmatprep.mubr.bf16.mxu1 %v4783_v55  ;;  %v686_v28 = vpop.f32.mrf.mxu0  ;;  %2037 = vmatmul.mubr.bf16.gmra.mxu0 %v4785_v62  ;;  %v1023_v48 = vmax.f32 %v876_v14, 0.0  ;;  %v4293_v11 = vld [vmem:[#allocation2 + $0x168] ss:$16 sps:$4 sm:$0xff]  }
 0x131   : > { %v879_v33 = vpop.f32.mrf.mxu1  ;;  %2230 = vmatmul.mubr.bf16.gmra.mxu1 %v4787_v7  ;;  %v687_v34 = vadd.f32 %v686_v28, %v4659_v29  ;;  %2361 = vmatpush2.bf16.msra.mxu0 %v4281_v56  ;;  %v1024_v37 = vmax.f32 %v685_v15, 0.0  ;;  %v4298_v15 = vld [vmem:[#allocation2 + $0x36c] ss:$16 sps:$4 sm:$0xff]  }
 0x132   : > { %v880_v35 = vadd.f32 %v879_v33, %v4663_v30  ;;  %v1026_v42 = vmax.f32 %v878_v18, 0.0  ;;  %v690_v45 = vpop.f32.mrf.mxu0  ;;  %2554 = vmatpush2.bf16.msra.mxu1 %v4284_v12  ;;  %2362 = vmatprep.subr.bf16.mxu0 %v4289_v13 }
 0x133   : > { %v883_v46 = vpop.f32.mrf.mxu1  ;;  %v1025_v49 = vmax.f32 %v687_v34, 0.0  ;;  %2555 = vmatprep.subr.bf16.mxu1 %v4292_v19  ;;  %v4805_v12 = vpack.c.bf16 %v1024_v37, %v1020_v51  ;;  %v4296_v19 = vld [vmem:[#allocation2 + $0x368] ss:$16 sps:$4 sm:$0xff]   ;;  %v4304_v34 = vld [vmem:[#allocation2 + $0x34c] ss:$16 sps:$4 sm:$0xff]  }
 0x134   : > { %v1027_v50 = vmax.f32 %v880_v35, 0.0  ;;  %v692_v53 = vpop.f32.mrf.mxu0  ;;  %v4807_v13 = vpack.c.bf16 %v1026_v42, %v1022_v52  ;;  %v691_v35 = vadd.f32 %v690_v45, %v4667_v31  ;;  %v4302_v45 = vld [vmem:[#allocation2 + $0x348] ss:$16 sps:$4 sm:$0xff]  }
 0x135   : > { %v885_v8 = vpop.f32.mrf.mxu1  ;;  %v4801_v56 = vpack.c.bf16 %v1025_v49, %v1021_v47  ;;  %2363 = vmatpush2.bf16.msra.mxu0 %v4287_v36  ;;  %v693_v4 = vadd.f32 %v692_v53, %v4659_v29  ;;  %v884_v36 = vadd.f32 %v883_v46, %v4671_v32  ;;  %v4299_v47 = vld [vmem:[#allocation2 + $0x148] ss:$16 sps:$4 sm:$0xff]   ;;  %v4307_v46 = vld [vmem:[#allocation2 + $0x12c] ss:$16 sps:$4 sm:$0xff]  }
 0x136   : > { %v4803_v61 = vpack.c.bf16 %v1027_v50, %v1023_v48  ;;  %v694_v14 = vpop.f32.mrf.mxu0  ;;  %2556 = vmatpush2.bf16.msra.mxu1 %v4290_v38  ;;  %2364 = vmatprep.subr.bf16.mxu0 %v4295_v41  ;;  %v886_v27 = vadd.f32 %v885_v8, %v4663_v30 }
 0x137   : > { %v887_v18 = vpop.f32.mrf.mxu1  ;;  %v695_v28 = vadd.f32 %v694_v14, %v4667_v31  ;;  %2046 = vmatprep.mubr.bf16.mxu0 %v4801_v56  ;;  %2557 = vmatprep.subr.bf16.mxu1 %v4298_v15  ;;  %v1029_v52 = vmax.f32 %v693_v4, 0.0 }
 0x138   : > { %v888_v33 = vadd.f32 %v887_v18, %v4671_v32  ;;  %2239 = vmatprep.mubr.bf16.mxu1 %v4803_v61  ;;  %v696_v37 = vpop.f32.mrf.mxu0  ;;  %2047 = vmatmul.mubr.bf16.gmra.mxu0 %v4805_v12  ;;  %v1031_v53 = vmax.f32 %v886_v27, 0.0  ;;  %v1028_v18 = vmax.f32 %v691_v35, 0.0  ;;  %v4313_v35 = vld [vmem:[#allocation2 + $0x10c] ss:$16 sps:$4 sm:$0xff]  }
 0x139   : > { %v889_v42 = vpop.f32.mrf.mxu1  ;;  %2240 = vmatmul.mubr.bf16.gmra.mxu1 %v4807_v13  ;;  %v697_v38 = vadd.f32 %v696_v37, %v4659_v29  ;;  %2365 = vmatpush2.bf16.msra.mxu0 %v4293_v11  ;;  %v1032_v48 = vmax.f32 %v695_v28, 0.0  ;;  %v1030_v37 = vmax.f32 %v884_v36, 0.0  ;;  %v4305_v28 = vld [vmem:[#allocation2 + $0x128] ss:$16 sps:$4 sm:$0xff]  }
 0x13a   : > { %v890_v41 = vadd.f32 %v889_v42, %v4663_v30  ;;  %v1034_v49 = vmax.f32 %v888_v33, 0.0  ;;  %v700_v50 = vpop.f32.mrf.mxu0  ;;  %2558 = vmatpush2.bf16.msra.mxu1 %v4296_v19  ;;  %2366 = vmatprep.subr.bf16.mxu0 %v4301_v0  ;;  %v4310_v33 = vld [vmem:[#allocation2 + $0x32c] ss:$16 sps:$4 sm:$0xff]  }
 0x13b   : > { %v893_v51 = vpop.f32.mrf.mxu1  ;;  %v1033_v8 = vmax.f32 %v697_v38, 0.0  ;;  %2559 = vmatprep.subr.bf16.mxu1 %v4304_v34  ;;  %v4825_v19 = vpack.c.bf16 %v1032_v48, %v1028_v18  ;;  %v4308_v34 = vld [vmem:[#allocation2 + $0x328] ss:$16 sps:$4 sm:$0xff]   ;;  %v4316_v48 = vld [vmem:[#allocation2 + $0x30c] ss:$16 sps:$4 sm:$0xff]  }
 0x13c   : > { %v1035_v14 = vmax.f32 %v890_v41, 0.0  ;;  %v702_v26 = vpop.f32.mrf.mxu0  ;;  %v4827_v0 = vpack.c.bf16 %v1034_v49, %v1030_v37  ;;  %v701_v49 = vadd.f32 %v700_v50, %v4667_v31  ;;  %v4314_v50 = vld [vmem:[#allocation2 + $0x308] ss:$16 sps:$4 sm:$0xff]  }
 0x13d   : > { %v895_v42 = vpop.f32.mrf.mxu1  ;;  %v4821_v11 = vpack.c.bf16 %v1033_v8, %v1029_v52  ;;  %2367 = vmatpush2.bf16.msra.mxu0 %v4299_v47  ;;  %v703_v4 = vadd.f32 %v702_v26, %v4659_v29  ;;  %v894_v26 = vadd.f32 %v893_v51, %v4671_v32  ;;  %v4311_v8 = vld [vmem:[#allocation2 + $0x108] ss:$16 sps:$4 sm:$0xff]  }
 0x13e   : > { %v4823_v15 = vpack.c.bf16 %v1035_v14, %v1031_v53  ;;  %v704_v27 = vpop.f32.mrf.mxu0  ;;  %2560 = vmatpush2.bf16.msra.mxu1 %v4302_v45  ;;  %2368 = vmatprep.subr.bf16.mxu0 %v4307_v46  ;;  %v896_v36 = vadd.f32 %v895_v42, %v4663_v30  ;;  %v1036_v25 = vmax.f32 %v701_v49, 0.0 }
 0x13f   : > { %v897_v38 = vpop.f32.mrf.mxu1  ;;  %v705_v41 = vadd.f32 %v704_v27, %v4667_v31  ;;  %2056 = vmatprep.mubr.bf16.mxu0 %v4821_v11  ;;  %2561 = vmatprep.subr.bf16.mxu1 %v4310_v33  ;;  %v1037_v51 = vmax.f32 %v703_v4, 0.0  ;;  %v1038_v23 = vmax.f32 %v894_v26, 0.0 }
 0x140   : > { %v898_v47 = vadd.f32 %v897_v38, %v4671_v32  ;;  %2249 = vmatprep.mubr.bf16.mxu1 %v4823_v15  ;;  %v706_v52 = vpop.f32.mrf.mxu0  ;;  %2057 = vmatmul.mubr.bf16.gmra.mxu0 %v4825_v19  ;;  %v1039_v27 = vmax.f32 %v896_v36, 0.0 }
 0x141   : > { %v899_v45 = vpop.f32.mrf.mxu1  ;;  %2250 = vmatmul.mubr.bf16.gmra.mxu1 %v4827_v0  ;;  %v707_v46 = vadd.f32 %v706_v52, %v4659_v29  ;;  %2369 = vmatpush2.bf16.msra.mxu0 %v4305_v28  ;;  %v1040_v14 = vmax.f32 %v705_v41, 0.0 }
 0x142   : > { %v900_v53 = vadd.f32 %v899_v45, %v4663_v30  ;;  %v1042_v18 = vmax.f32 %v898_v47, 0.0  ;;  %v710_v37 = vpop.f32.mrf.mxu0  ;;  %2562 = vmatpush2.bf16.msra.mxu1 %v4308_v34  ;;  %2370 = vmatprep.subr.bf16.mxu0 %v4313_v35 }
 0x143   : > { %v903_v42 = vpop.f32.mrf.mxu1  ;;  %v1041_v38 = vmax.f32 %v707_v46, 0.0  ;;  %2563 = vmatprep.subr.bf16.mxu1 %v4316_v48  ;;  %v4845_v33 = vpack.c.bf16 %v1040_v14, %v1036_v25 }
 0x144   : > { %v1043_v24 = vmax.f32 %v900_v53, 0.0  ;;  %v712_v52 = vpop.f32.mrf.mxu0  ;;  %v4847_v41 = vpack.c.bf16 %v1042_v18, %v1038_v23  ;;  %v904_v23 = vadd.f32 %v903_v42, %v4671_v32 }
 0x145   : > { %v905_v22 = vpop.f32.mrf.mxu1  ;;  %v4841_v45 = vpack.c.bf16 %v1041_v38, %v1037_v51  ;;  %2371 = vmatpush2.bf16.msra.mxu0 %v4311_v8  ;;  %v713_v34 = vadd.f32 %v712_v52, %v4659_v29 }
 0x146   : > { %v4843_v28 = vpack.c.bf16 %v1043_v24, %v1039_v27  ;;  %5918 = vst [vmem:[#allocation6_spill] sm:$0xff] %v4847_v41  ;;  %v714_v4 = vpop.f32.mrf.mxu0  ;;  %2564 = vmatpush2.bf16.msra.mxu1 %v4314_v50  ;;  %v906_v36 = vadd.f32 %v905_v22, %v4663_v30  ;;  %v711_v24 = vadd.f32 %v710_v37, %v4667_v31  ;;  %v1046_v42 = vmax.f32 %v904_v23, 0.0 }
 0x147   : > { %v907_v35 = vpop.f32.mrf.mxu1  ;;  %v715_v47 = vadd.f32 %v714_v4, %v4667_v31  ;;  %2066 = vmatprep.mubr.bf16.mxu0 %v4841_v45  ;;  %v1045_v18 = vmax.f32 %v713_v34, 0.0 }
 0x148   : > { %v908_v48 = vadd.f32 %v907_v35, %v4671_v32  ;;  %2259 = vmatprep.mubr.bf16.mxu1 %v4843_v28  ;;  %v716_v25 = vpop.f32.mrf.mxu0  ;;  %2067 = vmatmul.mubr.bf16.gmra.mxu0 %v4845_v33  ;;  %v1047_v50 = vmax.f32 %v906_v36, 0.0  ;;  %v1044_v27 = vmax.f32 %v711_v24, 0.0 }
 0x149   : > { %v909_v49 = vpop.f32.mrf.mxu1  ;;  %2260 = vmatmul.mubr.bf16.gmra.mxu1 %v4847_v41  ;;  %v717_v22 = vadd.f32 %v716_v25, %v4659_v29  ;;  %v1048_v46 = vmax.f32 %v715_v47, 0.0 }
 0x14a   : > { %v910_v26 = vadd.f32 %v909_v49, %v4663_v30  ;;  %v1050_v53 = vmax.f32 %v908_v48, 0.0  ;;  %v720_v8 = vpop.f32.mrf.mxu0 }
 0x14b   : > { %v913_v14 = vpop.f32.mrf.mxu1  ;;  %v1049_v51 = vmax.f32 %v717_v22, 0.0  ;;  %v4865_v41 = vpack.c.bf16 %v1048_v46, %v1044_v27  ;;  %v721_v23 = vadd.f32 %v720_v8, %v4667_v31 }
 0x14c   : > { %v1051_v37 = vmax.f32 %v910_v26, 0.0  ;;  %v722_v38 = vpop.f32.mrf.mxu0  ;;  %v4867_v25 = vpack.c.bf16 %v1050_v53, %v1046_v42  ;;  %v914_v22 = vadd.f32 %v913_v14, %v4671_v32 }
 0x14d   : > { %v915_v52 = vpop.f32.mrf.mxu1  ;;  %v4861_v4 = vpack.c.bf16 %v1049_v51, %v1045_v18  ;;  %5921 = vst [vmem:[#allocation9_spill] sm:$0xff] %v4865_v41  ;;  %v723_v47 = vadd.f32 %v722_v38, %v4659_v29 }
 0x14e   : > { %v4863_v35 = vpack.c.bf16 %v1051_v37, %v1047_v50  ;;  %5922 = vst [vmem:[#allocation10_spill] sm:$0xff] %v4867_v25  ;;  %v724_v48 = vpop.f32.mrf.mxu0  ;;  %v916_v34 = vadd.f32 %v915_v52, %v4663_v30  ;;  %v1054_v14 = vmax.f32 %v914_v22, 0.0 }
 0x14f   : > { %5919 = vst [vmem:[#allocation7_spill] sm:$0xff] %v4861_v4  ;;  %v917_v49 = vpop.f32.mrf.mxu1  ;;  %v725_v36 = vadd.f32 %v724_v48, %v4667_v31  ;;  %2076 = vmatprep.mubr.bf16.mxu0 %v4861_v4  ;;  %v1053_v42 = vmax.f32 %v723_v47, 0.0  ;;  %v1052_v48 = vmax.f32 %v721_v23, 0.0 }
 0x150   : > { %5920 = vst [vmem:[#allocation8_spill] sm:$0xff] %v4863_v35  ;;  %v918_v24 = vadd.f32 %v917_v49, %v4671_v32  ;;  %2269 = vmatprep.mubr.bf16.mxu1 %v4863_v35  ;;  %v726_v26 = vpop.f32.mrf.mxu0  ;;  %2077 = vmatmul.mubr.bf16.gmra.mxu0 %v4865_v41  ;;  %v1055_v38 = vmax.f32 %v916_v34, 0.0 }
 0x151   : > { %v919_v46 = vpop.f32.mrf.mxu1  ;;  %2270 = vmatmul.mubr.bf16.gmra.mxu1 %v4867_v25  ;;  %v727_v53 = vadd.f32 %v726_v26, %v4659_v29  ;;  %v1056_v50 = vmax.f32 %v725_v36, 0.0 }
 0x152   : > { %v920_v18 = vadd.f32 %v919_v46, %v4663_v30  ;;  %v1058_v51 = vmax.f32 %v918_v24, 0.0  ;;  %v730_v37 = vpop.f32.mrf.mxu0 }
 0x153   : > { %v923_v27 = vpop.f32.mrf.mxu1  ;;  %v1057_v52 = vmax.f32 %v727_v53, 0.0  ;;  %v4885_v25 = vpack.c.bf16 %v1056_v50, %v1052_v48  ;;  %v731_v22 = vadd.f32 %v730_v37, %v4667_v31 }
 0x154   : > { %v1059_v8 = vmax.f32 %v920_v18, 0.0  ;;  %v732_v49 = vpop.f32.mrf.mxu0  ;;  %v4887_v26 = vpack.c.bf16 %v1058_v51, %v1054_v14  ;;  %v924_v53 = vadd.f32 %v923_v27, %v4671_v32  ;;  %v4317_v27 = vld [vmem:[%s5882_s5 + $0x78] sm:$0xff]  }
 0x155   : > { %v925_v35 = vpop.f32.mrf.mxu1  ;;  %v4881_v4 = vpack.c.bf16 %v1057_v52, %v1053_v42  ;;  %5925 = vst [vmem:[#allocation13_spill] sm:$0xff] %v4885_v25  ;;  %v733_v36 = vadd.f32 %v732_v49, %v4659_v29  ;;  %3839 = vmatprep.subr.bf16.mxu0 %v4317_v27 }
 0x156   : > { %v4883_v41 = vpack.c.bf16 %v1059_v8, %v1055_v38  ;;  %5926 = vst [vmem:[#allocation14_spill] sm:$0xff] %v4887_v26  ;;  %v734_v24 = vpop.f32.mrf.mxu0  ;;  %v926_v47 = vadd.f32 %v925_v35, %v4663_v30 }
 0x157   : > { %5923 = vst [vmem:[#allocation11_spill] sm:$0xff] %v4881_v4  ;;  %v927_v46 = vpop.f32.mrf.mxu1  ;;  %v735_v34 = vadd.f32 %v734_v24, %v4667_v31  ;;  %2086 = vmatprep.mubr.bf16.mxu0 %v4881_v4  ;;  %v1061_v48 = vmax.f32 %v733_v36, 0.0  ;;  %v4319_v24 = vld [vmem:[%s5882_s5 + $0xf8] sm:$0xff]  }
 0x158   : > { %5924 = vst [vmem:[#allocation12_spill] sm:$0xff] %v4883_v41  ;;  %v928_v23 = vadd.f32 %v927_v46, %v4671_v32  ;;  %2279 = vmatprep.mubr.bf16.mxu1 %v4883_v41  ;;  %v736_v18 = vpop.f32.mrf.mxu0  ;;  %2087 = vmatmul.mubr.bf16.gmra.mxu0 %v4885_v25  ;;  %v1063_v14 = vmax.f32 %v926_v47, 0.0  ;;  %v1060_v46 = vmax.f32 %v731_v22, 0.0 }
 0x159   : > { %v929_v50 = vpop.f32.mrf.mxu1  ;;  %2280 = vmatmul.mubr.bf16.gmra.mxu1 %v4887_v26  ;;  %v737_v35 = vadd.f32 %v736_v18, %v4659_v29  ;;  %v1064_v42 = vmax.f32 %v735_v34, 0.0  ;;  %v1062_v18 = vmax.f32 %v924_v53, 0.0  ;;  %3951 = vmatprep.subr.bf16.mxu1 %v4319_v24 }
 0x15a   : > { %v930_v51 = vadd.f32 %v929_v50, %v4663_v30  ;;  %v1066_v38 = vmax.f32 %v928_v23, 0.0  ;;  %v740_v52 = vpop.f32.mrf.mxu0 }
 0x15b   : > { %v933_v8 = vpop.f32.mrf.mxu1  ;;  %v1065_v49 = vmax.f32 %v737_v35, 0.0  ;;  %v4911_v36 = vpack.c.bf16 %v1064_v42, %v1060_v46  ;;  %v741_v42 = vadd.f32 %v740_v52, %v4667_v31 }
 0x15c   : > { %v1067_v37 = vmax.f32 %v930_v51, 0.0  ;;  %v742_v26 = vpop.f32.mrf.mxu0  ;;  %v4913_v47 = vpack.c.bf16 %v1066_v38, %v1062_v18  ;;  %v934_v38 = vadd.f32 %v933_v8, %v4671_v32 }
 0x15d   : > { %v935_v50 = vpop.f32.mrf.mxu1  ;;  %v4907_v34 = vpack.c.bf16 %v1065_v49, %v1061_v48  ;;  %5929 = vst [vmem:[#allocation17_spill] sm:$0xff] %v4911_v36  ;;  %v743_v35 = vadd.f32 %v742_v26, %v4659_v29 }
 0x15e   : > { %v4909_v23 = vpack.c.bf16 %v1067_v37, %v1063_v14  ;;  %5930 = vst [vmem:[#allocation18_spill] sm:$0xff] %v4913_v47  ;;  %v744_v51 = vpop.f32.mrf.mxu0  ;;  %v936_v41 = vadd.f32 %v935_v50, %v4663_v30  ;;  %v1070_v8 = vmax.f32 %v934_v38, 0.0 }
 0x15f   : > { %5927 = vst [vmem:[#allocation15_spill] sm:$0xff] %v4907_v34  ;;  %v937_v25 = vpop.f32.mrf.mxu1  ;;  %v745_v22 = vadd.f32 %v744_v51, %v4667_v31  ;;  %2096 = vmatprep.mubr.bf16.mxu0 %v4907_v34  ;;  %v1069_v46 = vmax.f32 %v743_v35, 0.0  ;;  %v1068_v51 = vmax.f32 %v741_v42, 0.0 }
 0x160   : > { %5928 = vst [vmem:[#allocation16_spill] sm:$0xff] %v4909_v23  ;;  %v938_v53 = vadd.f32 %v937_v25, %v4671_v32  ;;  %2289 = vmatprep.mubr.bf16.mxu1 %v4909_v23  ;;  %v746_v48 = vpop.f32.mrf.mxu0  ;;  %2097 = vmatmul.mubr.bf16.gmra.mxu0 %v4911_v36  ;;  %v1071_v18 = vmax.f32 %v936_v41, 0.0 }
 0x161   : > { %v939_v14 = vpop.f32.mrf.mxu1  ;;  %2290 = vmatmul.mubr.bf16.gmra.mxu1 %v4913_v47  ;;  %v747_v26 = vadd.f32 %v746_v48, %v4659_v29  ;;  %v1072_v37 = vmax.f32 %v745_v22, 0.0 }
 0x162   : > { %v940_v49 = vadd.f32 %v939_v14, %v4663_v30  ;;  %v1074_v25 = vmax.f32 %v938_v53, 0.0  ;;  %v750_v27 = vpop.f32.mrf.mxu0 }
 0x163   : > { %v943_v24 = vpop.f32.mrf.mxu1  ;;  %v1073_v50 = vmax.f32 %v747_v26, 0.0  ;;  %v4931_v47 = vpack.c.bf16 %v1072_v37, %v1068_v51  ;;  %v751_v38 = vadd.f32 %v750_v27, %v4667_v31 }
 0x164   : > { %v1075_v52 = vmax.f32 %v940_v49, 0.0  ;;  %v752_v23 = vpop.f32.mrf.mxu0  ;;  %v4933_v48 = vpack.c.bf16 %v1074_v25, %v1070_v8  ;;  %v944_v26 = vadd.f32 %v943_v24, %v4671_v32 }
 0x165   : > { %v945_v34 = vpop.f32.mrf.mxu1  ;;  %v4927_v4 = vpack.c.bf16 %v1073_v50, %v1069_v46  ;;  %5933 = vst [vmem:[#allocation21_spill] sm:$0xff] %v4931_v47  ;;  %v753_v22 = vadd.f32 %v752_v23, %v4659_v29 }
 0x166   : > { %v4929_v36 = vpack.c.bf16 %v1075_v52, %v1071_v18  ;;  %5934 = vst [vmem:[#allocation22_spill] sm:$0xff] %v4933_v48  ;;  %v754_v53 = vpop.f32.mrf.mxu0  ;;  %v946_v41 = vadd.f32 %v945_v34, %v4663_v30  ;;  %v1078_v24 = vmax.f32 %v944_v26, 0.0 }
 0x167   : > { %5931 = vst [vmem:[#allocation19_spill] sm:$0xff] %v4927_v4  ;;  %v947_v14 = vpop.f32.mrf.mxu1  ;;  %v755_v35 = vadd.f32 %v754_v53, %v4667_v31  ;;  %2106 = vmatprep.mubr.bf16.mxu0 %v4927_v4  ;;  %v1077_v52 = vmax.f32 %v753_v22, 0.0  ;;  %v1076_v53 = vmax.f32 %v751_v38, 0.0 }
 0x168   : > { %5932 = vst [vmem:[#allocation20_spill] sm:$0xff] %v4929_v36  ;;  %v948_v42 = vadd.f32 %v947_v14, %v4671_v32  ;;  %2299 = vmatprep.mubr.bf16.mxu1 %v4929_v36  ;;  %v756_v49 = vpop.f32.mrf.mxu0  ;;  %2107 = vmatmul.mubr.bf16.gmra.mxu0 %v4931_v47  ;;  %v1079_v51 = vmax.f32 %v946_v41, 0.0 }
 0x169   : > { %v949_v37 = vpop.f32.mrf.mxu1  ;;  %2300 = vmatmul.mubr.bf16.gmra.mxu1 %v4933_v48  ;;  %v757_v34 = vadd.f32 %v756_v49, %v4659_v29  ;;  %v1080_v25 = vmax.f32 %v755_v35, 0.0 }
 0x16a   : > { %v950_v23 = vadd.f32 %v949_v37, %v4663_v30  ;;  %v1082_v46 = vmax.f32 %v948_v42, 0.0  ;;  %v760_v18 = vpop.f32.mrf.mxu0 }
 0x16b   : > { %v953_v50 = vpop.f32.mrf.mxu1  ;;  %v1081_v8 = vmax.f32 %v757_v34, 0.0  ;;  %v4951_v48 = vpack.c.bf16 %v1080_v25, %v1076_v53  ;;  %v761_v26 = vadd.f32 %v760_v18, %v4667_v31 }
 0x16c   : > { %v1083_v27 = vmax.f32 %v950_v23, 0.0  ;;  %v762_v14 = vpop.f32.mrf.mxu0  ;;  %v4953_v49 = vpack.c.bf16 %v1082_v46, %v1078_v24  ;;  %v954_v34 = vadd.f32 %v953_v50, %v4671_v32 }
 0x16d   : > { %v955_v36 = vpop.f32.mrf.mxu1  ;;  %v4947_v4 = vpack.c.bf16 %v1081_v8, %v1077_v52  ;;  %5937 = vst [vmem:[#allocation25_spill] sm:$0xff] %v4951_v48  ;;  %v763_v35 = vadd.f32 %v762_v14, %v4659_v29 }
 0x16e   : > { %v4949_v47 = vpack.c.bf16 %v1083_v27, %v1079_v51  ;;  %5938 = vst [vmem:[#allocation26_spill] sm:$0xff] %v4953_v49  ;;  %v764_v42 = vpop.f32.mrf.mxu0  ;;  %v956_v22 = vadd.f32 %v955_v36, %v4663_v30  ;;  %v1086_v50 = vmax.f32 %v954_v34, 0.0 }
 0x16f   : > { %5935 = vst [vmem:[#allocation23_spill] sm:$0xff] %v4947_v4  ;;  %v957_v37 = vpop.f32.mrf.mxu1  ;;  %v765_v41 = vadd.f32 %v764_v42, %v4667_v31  ;;  %2116 = vmatprep.mubr.bf16.mxu0 %v4947_v4  ;;  %v1085_v53 = vmax.f32 %v763_v35, 0.0  ;;  %v1084_v42 = vmax.f32 %v761_v26, 0.0 }
 0x170   : > { %5936 = vst [vmem:[#allocation24_spill] sm:$0xff] %v4949_v47  ;;  %v958_v38 = vadd.f32 %v957_v37, %v4671_v32  ;;  %2309 = vmatprep.mubr.bf16.mxu1 %v4949_v47  ;;  %v766_v23 = vpop.f32.mrf.mxu0  ;;  %2117 = vmatmul.mubr.bf16.gmra.mxu0 %v4951_v48  ;;  %v1087_v24 = vmax.f32 %v956_v22, 0.0 }
 0x171   : > { %v959_v25 = vpop.f32.mrf.mxu1  ;;  %2310 = vmatmul.mubr.bf16.gmra.mxu1 %v4953_v49  ;;  %v767_v36 = vadd.f32 %v766_v23, %v4659_v29  ;;  %v1088_v52 = vmax.f32 %v765_v41, 0.0 }
 0x172   : > { %v960_v46 = vadd.f32 %v959_v25, %v4663_v30  ;;  %v1090_v51 = vmax.f32 %v958_v38, 0.0  ;;  %v770_v8 = vpop.f32.mrf.mxu0 }
 0x173   : > { %v963_v27 = vpop.f32.mrf.mxu1  ;;  %v1089_v14 = vmax.f32 %v767_v36, 0.0  ;;  %v4971_v49 = vpack.c.bf16 %v1088_v52, %v1084_v42  ;;  %v771_v34 = vadd.f32 %v770_v8, %v4667_v31 }
 0x174   : > { %v1091_v18 = vmax.f32 %v960_v46, 0.0  ;;  %v772_v37 = vpop.f32.mrf.mxu0  ;;  %v4973_v23 = vpack.c.bf16 %v1090_v51, %v1086_v50  ;;  %v964_v36 = vadd.f32 %v963_v27, %v4671_v32 }
 0x175   : > { %v965_v47 = vpop.f32.mrf.mxu1  ;;  %v4967_v4 = vpack.c.bf16 %v1089_v14, %v1085_v53  ;;  %v773_v41 = vadd.f32 %v772_v37, %v4659_v29  ;;  %v1092_v37 = vmax.f32 %v771_v34, 0.0  ;;  %v4340_v34 = vld [vmem:[%s5882_s5 + $0xa0] sm:$0xff]  }
 0x176   : > { %v4969_v48 = vpack.c.bf16 %v1091_v18, %v1087_v24  ;;  %v774_v38 = vpop.f32.mrf.mxu0  ;;  %v966_v35 = vadd.f32 %v965_v47, %v4663_v30 }
 0x177   : > { %v967_v25 = vpop.f32.mrf.mxu1  ;;  %v775_v22 = vadd.f32 %v774_v38, %v4667_v31  ;;  %2126 = vmatprep.mubr.bf16.mxu0 %v4967_v4  ;;  %v1093_v14 = vmax.f32 %v773_v41, 0.0  ;;  %v1094_v31 = vmax.f32 %v964_v36, 0.0  ;;  %v4321_v41 = vld [vmem:[%s5882_s5 + $0x70] sm:$0xff]   ;;  %v4335_v36 = vld [vmem:[%s5882_s5 + $0x48] sm:$0xff]  }
 0x178   : > { %v968_v26 = vadd.f32 %v967_v25, %v4671_v32  ;;  %2319 = vmatprep.mubr.bf16.mxu1 %v4969_v48  ;;  %v776_v46 = vpop.f32.mrf.mxu0  ;;  %2127 = vmatmul.mubr.bf16.gmra.mxu0 %v4971_v49  ;;  %v1095_v18 = vmax.f32 %v966_v35, 0.0  ;;  %v4323_v25 = vld [vmem:[%s5882_s5 + $0xf0] sm:$0xff]   ;;  %v4327_v35 = vld [vmem:[%s5882_s5 + $0x60] sm:$0xff]  }
 0x179   : > { %v969_v52 = vpop.f32.mrf.mxu1  ;;  %2320 = vmatmul.mubr.bf16.gmra.mxu1 %v4973_v23  ;;  %v777_v47 = vadd.f32 %v776_v46, %v4659_v29  ;;  %v1096_v53 = vmax.f32 %v775_v22, 0.0  ;;  %v4318_v29 = vld [vmem:[%s5882_s5 + $0x38] sm:$0xff]   ;;  %v4339_v22 = vld [vmem:[%s5882_s5 + $0xe0] sm:$0xff]  }
 0x17a   : > { %v970_v51 = vadd.f32 %v969_v52, %v4663_v30  ;;  %v1098_v24 = vmax.f32 %v968_v26, 0.0  ;;  %v4320_v30 = vld [vmem:[%s5882_s5 + $0xb8] sm:$0xff]   ;;  %v4328_v26 = vld [vmem:[%s5882_s5 + $0x20] sm:$0xff]   ;;  %v5944_v52 = vld [vmem:[#allocation11_spill] sm:$0xff] }
 0x17b   : > { %v1097_v42 = vmax.f32 %v777_v47, 0.0  ;;  %v4991_v27 = vpack.c.bf16 %v1096_v53, %v1092_v37  ;;  %v4338_v46 = vld [vmem:[%s5882_s5] sm:$0xff]   ;;  %v5945_v47 = vld [vmem:[#allocation12_spill] sm:$0xff] }
 0x17c   : > { %v1099_v50 = vmax.f32 %v970_v51, 0.0  ;;  %v4993_v38 = vpack.c.bf16 %v1098_v24, %v1094_v31  ;;  %v5946_v31 = vld [vmem:[#allocation13_spill] sm:$0xff] }
 0x17d   : > { %v4987_v8 = vpack.c.bf16 %v1097_v42, %v1093_v14 }
 0x17e   : > { %v4989_v32 = vpack.c.bf16 %v1099_v50, %v1095_v18 }
 0x17f   : > { %2136 = vmatprep.mubr.bf16.mxu0 %v4987_v8 }
 0x180   : > { %2329 = vmatprep.mubr.bf16.mxu1 %v4989_v32  ;;  %2137 = vmatmul.mubr.bf16.gmra.mxu0 %v4991_v27 }
 0x181   : > { %2330 = vmatmul.mubr.bf16.gmra.mxu1 %v4993_v38  ;;  %2372 = vmatprep.mubr.bf16.mxu0 %v4681_v59  ;;  %v4322_v59 = vld [vmem:[%s5882_s5 + $0x30] sm:$0xff]  }
 0x182   : > { %2565 = vmatprep.mubr.bf16.mxu1 %v4683_v60  ;;  %v4324_v60 = vld [vmem:[%s5882_s5 + $0xb0] sm:$0xff]  }
 0x188   : > { %2373 = vmatmul.mubr.bf16.vlgmr.msra.gmra.mxu0 %v4685_v63  ;;  %v4325_v63 = vld [vmem:[%s5882_s5 + $0x68] sm:$0xff]  }
 0x189   : > { %2566 = vmatmul.mubr.bf16.vlgmr.msra.gmra.mxu1 %v4687_v1  ;;  %2382 = vmatprep.mubr.bf16.mxu0 %v4701_v39  ;;  %v4329_v1 = vld [vmem:[%s5882_s5 + $0xe8] sm:$0xff]  }
 0x18a   : > { %2575 = vmatprep.mubr.bf16.mxu1 %v4703_v40  ;;  %3840 = vmatpush3.bf16.msra.mxu0 %v4318_v29  ;;  %v4326_v39 = vld [vmem:[%s5882_s5 + $0x28] sm:$0xff]  }
 0x18b   : > { %3952 = vmatpush3.bf16.msra.mxu1 %v4320_v30  ;;  %3841 = vmatprep.subr.bf16.mxu0 %v4321_v41  ;;  %v4331_v40 = vld [vmem:[%s5882_s5 + $0xa8] sm:$0xff]   ;;  %v5948_v30 = vld [vmem:[#allocation15_spill] sm:$0xff]  ;;  %v5949_v41 = vld [vmem:[#allocation16_spill] sm:$0xff] }
 0x18c   : > { %3953 = vmatprep.subr.bf16.mxu1 %v4323_v25  ;;  %v5947_v29 = vld [vmem:[#allocation14_spill] sm:$0xff] }
 0x18e   : > { %3842 = vmatpush3.bf16.msra.mxu0 %v4322_v59 }
 0x18f   : > { %3954 = vmatpush3.bf16.msra.mxu1 %v4324_v60  ;;  %3843 = vmatprep.subr.bf16.mxu0 %v4325_v63 }
 0x190   : > { %3955 = vmatprep.subr.bf16.mxu1 %v4329_v1  ;;  %2383 = vmatmul.mubr.bf16.gmra.mxu0 %v4705_v43  ;;  %v4330_v43 = vld [vmem:[%s5882_s5 + $0x58] sm:$0xff]  }
 0x191   : > { %2576 = vmatmul.mubr.bf16.gmra.mxu1 %v4707_v44  ;;  %2392 = vmatprep.mubr.bf16.mxu0 %v4721_v16  ;;  %v4332_v44 = vld [vmem:[%s5882_s5 + $0x18] sm:$0xff]   ;;  %v4333_v16 = vld [vmem:[%s5882_s5 + $0x50] sm:$0xff]  }
 0x192   : > { %2585 = vmatprep.mubr.bf16.mxu1 %v4723_v17  ;;  %3844 = vmatpush3.bf16.msra.mxu0 %v4326_v39  ;;  %v4334_v17 = vld [vmem:[%s5882_s5 + $0x10] sm:$0xff]  }
 0x193   : > { %3956 = vmatpush3.bf16.msra.mxu1 %v4331_v40  ;;  %3845 = vmatprep.subr.bf16.mxu0 %v4327_v35 }
 0x194   : > { %3957 = vmatprep.subr.bf16.mxu1 %v4339_v22  ;;  %v5950_v22 = vld [vmem:[#allocation17_spill] sm:$0xff] }
 0x196   : > { %3846 = vmatpush3.bf16.msra.mxu0 %v4328_v26  ;;  %v5951_v26 = vld [vmem:[#allocation18_spill] sm:$0xff] }
 0x197   : > { %3958 = vmatpush3.bf16.msra.mxu1 %v4340_v34  ;;  %3847 = vmatprep.subr.bf16.mxu0 %v4330_v43  ;;  %v5952_v34 = vld [vmem:[#allocation19_spill] sm:$0xff]  ;;  %v5953_v43 = vld [vmem:[#allocation20_spill] sm:$0xff] }
 0x198   : > { %2393 = vmatmul.mubr.bf16.gmra.mxu0 %v4725_v20  ;;  %v4341_v20 = vld [vmem:[%s5882_s5 + $0xd8] sm:$0xff]  }
 0x199   : > { %2586 = vmatmul.mubr.bf16.gmra.mxu1 %v4727_v21  ;;  %2402 = vmatprep.mubr.bf16.mxu0 %v4741_v5  ;;  %v4342_v21 = vld [vmem:[%s5882_s5 + $0x98] sm:$0xff]   ;;  %v4336_v5 = vld [vmem:[%s5882_s5 + $0x8] sm:$0xff]  }
 0x19a   : > { %2595 = vmatprep.mubr.bf16.mxu1 %v4743_v6  ;;  %3848 = vmatpush3.bf16.msra.mxu0 %v4332_v44  ;;  %v4337_v6 = vld [vmem:[%s5882_s5 + $0x40] sm:$0xff]  }
 0x19b   : > { %3849 = vmatprep.subr.bf16.mxu0 %v4333_v16  ;;  %3959 = vmatprep.subr.bf16.mxu1 %v4341_v20 }
 0x19c   : > { %3960 = vmatpush3.bf16.msra.mxu1 %v4342_v21 }
 0x19e   : > { %3850 = vmatpush3.bf16.msra.mxu0 %v4334_v17 }
 0x19f   : > { %3851 = vmatprep.subr.bf16.mxu0 %v4335_v36 }
 0x1a0   : > { %2403 = vmatmul.mubr.bf16.gmra.mxu0 %v4745_v9  ;;  %v4343_v9 = vld [vmem:[%s5882_s5 + $0xd0] sm:$0xff]  }
 0x1a1   : > { %2596 = vmatmul.mubr.bf16.gmra.mxu1 %v4747_v10  ;;  %2412 = vmatprep.mubr.bf16.mxu0 %v4761_v57  ;;  %v4344_v10 = vld [vmem:[%s5882_s5 + $0x90] sm:$0xff]   ;;  %v4345_v57 = vld [vmem:[%s5882_s5 + $0xc8] sm:$0xff]  }
 0x1a2   : > { %2605 = vmatprep.mubr.bf16.mxu1 %v4763_v58  ;;  %3852 = vmatpush3.bf16.msra.mxu0 %v4336_v5  ;;  %v4346_v58 = vld [vmem:[%s5882_s5 + $0x88] sm:$0xff]  }
 0x1a3   : > { %3853 = vmatprep.subr.bf16.mxu0 %v4337_v6  ;;  %3961 = vmatprep.subr.bf16.mxu1 %v4343_v9  ;;  %v5955_v9 = vld [vmem:[#allocation22_spill] sm:$0xff] }
 0x1a4   : > { %3962 = vmatpush3.bf16.msra.mxu1 %v4344_v10  ;;  %v5956_v10 = vld [vmem:[#allocation23_spill] sm:$0xff] }
 0x1a5   : > { %3963 = vmatprep.subr.bf16.mxu1 %v4345_v57  ;;  %v5957_v57 = vld [vmem:[#allocation24_spill] sm:$0xff] }
 0x1a6   : > { %3854 = vmatpush3.bf16.msra.mxu0 %v4338_v46  ;;  %v5954_v46 = vld [vmem:[#allocation21_spill] sm:$0xff] }
 0x1a8   : > { %2413 = vmatmul.mubr.bf16.gmra.mxu0 %v4765_v2  ;;  %3964 = vmatpush3.bf16.msra.mxu1 %v4346_v58 }
 0x1a9   : > { %2606 = vmatmul.mubr.bf16.gmra.mxu1 %v4767_v3  ;;  %2422 = vmatprep.mubr.bf16.mxu0 %v4781_v54  ;;  %v5939_v54 = vld [vmem:[#allocation6_spill] sm:$0xff] }
 0x1aa   : > { %2615 = vmatprep.mubr.bf16.mxu1 %v4783_v55  ;;  %v5940_v55 = vld [vmem:[#allocation7_spill] sm:$0xff] }
 0x1b0   : > { %2423 = vmatmul.mubr.bf16.gmra.mxu0 %v4785_v62  ;;  %v5941_v62 = vld [vmem:[#allocation8_spill] sm:$0xff] }
 0x1b1   : > { %2616 = vmatmul.mubr.bf16.gmra.mxu1 %v4787_v7  ;;  %2432 = vmatprep.mubr.bf16.mxu0 %v4801_v56 }
 0x1b2   : > { %2625 = vmatprep.mubr.bf16.mxu1 %v4803_v61  ;;  %v4347_v61 = vld [vmem:[%s5882_s5 + $0xc0] sm:$0xff]  }
 0x1b3   : > { %3965 = vmatprep.subr.bf16.mxu1 %v4347_v61 }
 0x1b8   : > { %2433 = vmatmul.mubr.bf16.gmra.mxu0 %v4805_v12 }
 0x1b9   : > { %2626 = vmatmul.mubr.bf16.gmra.mxu1 %v4807_v13  ;;  %2442 = vmatprep.mubr.bf16.mxu0 %v4821_v11  ;;  %v4348_v11 = vld [vmem:[%s5882_s5 + $0x80] sm:$0xff]  }
 0x1ba   : > { %2635 = vmatprep.mubr.bf16.mxu1 %v4823_v15  ;;  %3966 = vmatpush3.bf16.msra.mxu1 %v4348_v11 }
 0x1c0   : > { %2443 = vmatmul.mubr.bf16.gmra.mxu0 %v4825_v19 }
 0x1c1   : > { %2636 = vmatmul.mubr.bf16.gmra.mxu1 %v4827_v0  ;;  %2452 = vmatprep.mubr.bf16.mxu0 %v4841_v45 }
 0x1c2   : > { %2645 = vmatprep.mubr.bf16.mxu1 %v4843_v28  ;;  %v5942_v28 = vld [vmem:[#allocation9_spill] sm:$0xff] }
 0x1c8   : > { %v5117_v2 = vpop.f32.mrf.mxu0  ;;  %2453 = vmatmul.mubr.bf16.gmra.mxu0 %v4845_v33  ;;  %v5943_v33 = vld [vmem:[#allocation10_spill] sm:$0xff] }
 0x1c9   : > { %v5119_v3 = vpop.f32.mrf.mxu1  ;;  %2646 = vmatmul.mubr.bf16.gmra.mxu1 %v5939_v54  ;;  %2462 = vmatprep.mubr.bf16.mxu0 %v5940_v55 }
 0x1ca   : > { %2655 = vmatprep.mubr.bf16.mxu1 %v5941_v62  ;;  %v5125_v7 = vpop.f32.mrf.mxu0 }
 0x1cb   : > { %v5127_v56 = vpop.f32.mrf.mxu1 }
 0x1cc   : > { %v5132_v12 = vpop.f32.mrf.mxu0 }
 0x1cd   : > { %v5134_v13 = vpop.f32.mrf.mxu1 }
 0x1ce   : > { %v1994_v15 = vpop.f32.mrf.mxu0 }
 0x1cf   : > { %v5139_v19 = vpop.f32.mrf.mxu1 }
 0x1d0   : > { %v5141_v0 = vpop.f32.mrf.mxu0  ;;  %2463 = vmatmul.mubr.bf16.gmra.mxu0 %v5942_v28  ;;  %v5224_v28 = vld [vmem:[%s5881_s4] sm:$0xf] }
 0x1d1   : > { %v5143_v45 = vpop.f32.mrf.mxu1  ;;  %2656 = vmatmul.mubr.bf16.gmra.mxu1 %v5943_v33  ;;  %2472 = vmatprep.mubr.bf16.mxu0 %v5944_v52  ;;  %5958 = vst [vmem:[#allocation6_spill] sm:$0xff] %v5224_v28 }
 0x1d2   : > { %2665 = vmatprep.mubr.bf16.mxu1 %v5945_v47  ;;  %v5149_v51 = vpop.f32.mrf.mxu0  ;;  %v5959_v47 = vld [vmem:[#allocation25_spill] sm:$0xff] }
 0x1d3   : > { %v5151_v53 = vpop.f32.mrf.mxu1 }
 0x1d4   : > { %v5153_v24 = vpop.f32.mrf.mxu0 }
 0x1d5   : > { %v5155_v14 = vpop.f32.mrf.mxu1 }
 0x1d6   : > { %v5157_v18 = vpop.f32.mrf.mxu0 }
 0x1d7   : > { %v5159_v42 = vpop.f32.mrf.mxu1 }
 0x1d8   : > { %v5161_v50 = vpop.f32.mrf.mxu0  ;;  %2473 = vmatmul.mubr.bf16.gmra.mxu0 %v5946_v31  ;;  %v5960_v31 = vld [vmem:[#allocation26_spill] sm:$0xff] }
 0x1d9   : > { %v5163_v37 = vpop.f32.mrf.mxu1  ;;  %2666 = vmatmul.mubr.bf16.gmra.mxu1 %v5947_v29  ;;  %2482 = vmatprep.mubr.bf16.mxu0 %v5948_v30  ;;  %v5961_v29 = vld [vmem:[#allocation5_spill] sm:$0xff] }
 0x1da   : > { %2675 = vmatprep.mubr.bf16.mxu1 %v5949_v41  ;;  %v5169_v25 = vpop.f32.mrf.mxu0  ;;  %v5962_v30 = vsub.s32 1, %v5961_v29 }
 0x1db   : > { %v5171_v59 = vpop.f32.mrf.mxu1 }
 0x1dc   : > { %v5173_v60 = vpop.f32.mrf.mxu0  ;;  %v5235_v41 = vrot.slane %v5224_v28, %v5962_v30 }
 0x1dd   : > { %v5175_v63 = vpop.f32.mrf.mxu1 }
 0x1de   : > { %v5177_v1 = vpop.f32.mrf.mxu0 }
 0x1df   : > { %v5179_v39 = vpop.f32.mrf.mxu1 }
 0x1e0   : > { %v5181_v40 = vpop.f32.mrf.mxu0  ;;  %2483 = vmatmul.mubr.bf16.gmra.mxu0 %v5950_v22 }
 0x1e1   : > { %v5183_v35 = vpop.f32.mrf.mxu1  ;;  %2676 = vmatmul.mubr.bf16.gmra.mxu1 %v5951_v26  ;;  %2492 = vmatprep.mubr.bf16.mxu0 %v5952_v34  ;;  %v1995_v34 = vadd.f32 %v1994_v15, %v5235_v41 }
 0x1e2   : > { %2685 = vmatprep.mubr.bf16.mxu1 %v5953_v43  ;;  %v5189_v44 = vpop.f32.mrf.mxu0 }
 0x1e3   : > { %v5191_v16 = vpop.f32.mrf.mxu1 }
 0x1e4   : > { %v5193_v17 = vpop.f32.mrf.mxu0 }
 0x1e5   : > { %v5195_v36 = vpop.f32.mrf.mxu1 }
 0x1e6   : > { %v5197_v20 = vpop.f32.mrf.mxu0 }
 0x1e7   : > { %v5199_v21 = vpop.f32.mrf.mxu1 }
 0x1e8   : > { %v5201_v5 = vpop.f32.mrf.mxu0  ;;  %2493 = vmatmul.mubr.bf16.gmra.mxu0 %v5954_v46 }
 0x1e9   : > { %v5203_v6 = vpop.f32.mrf.mxu1  ;;  %2686 = vmatmul.mubr.bf16.gmra.mxu1 %v5955_v9  ;;  %2502 = vmatprep.mubr.bf16.mxu0 %v5956_v10  ;;  %v1991_v9 = vadd.f32 %v5125_v7, %v5235_v41 }
 0x1ea   : > { %2695 = vmatprep.mubr.bf16.mxu1 %v5957_v57  ;;  %v5209_v58 = vpop.f32.mrf.mxu0 }
 0x1eb   : > { %v5211_v54 = vpop.f32.mrf.mxu1  ;;  %v2184_v7 = vadd.f32 %v5127_v56, %v1991_v9 }
 0x1ec   : > { %v5213_v55 = vpop.f32.mrf.mxu0 }
 0x1ed   : > { %v5215_v62 = vpop.f32.mrf.mxu1 }
 0x1ee   : > { %v5217_v61 = vpop.f32.mrf.mxu0 }
 0x1ef   : > { %v5219_v11 = vpop.f32.mrf.mxu1 }
 0x1f0   : > { %v5226_v33 = vpop.f32.mrf.mxu0  ;;  %2503 = vmatmul.mubr.bf16.gmra.mxu0 %v5959_v47 }
 0x1f1   : > { %v5228_v52 = vpop.f32.mrf.mxu1  ;;  %2696 = vmatmul.mubr.bf16.gmra.mxu1 %v5960_v31  ;;  %2512 = vmatprep.mubr.bf16.mxu0 %v4967_v4  ;;  %v2188_v4 = vadd.f32 %v5139_v19, %v1995_v34 }
 0x1f2   : > { %2705 = vmatprep.mubr.bf16.mxu1 %v4969_v48  ;;  %v5239_v22 = vpop.f32.mrf.mxu0  ;;  %v5963_v48 = vsub.s32 0, %v5961_v29 }
 0x1f3   : > { %v5241_v26 = vpop.f32.mrf.mxu1 }
 0x1f4   : > { %v5244_v43 = vpop.f32.mrf.mxu0  ;;  %v5258_v47 = vrot.slane %v5224_v28, %v5963_v48  ;;  %v2731_v48 = vmax.f32 %v2188_v4, 0.0  ;;  %v2005_v28 = vadd.f32 %v5157_v18, %v5235_v41 }
 0x1f5   : > { %v5246_v46 = vpop.f32.mrf.mxu1 }
 0x1f6   : > { %v5250_v10 = vpop.f32.mrf.mxu0  ;;  %v1993_v19 = vadd.f32 %v5132_v12, %v5258_v47  ;;  %v2198_v4 = vadd.f32 %v5159_v42, %v2005_v28  ;;  %v2015_v28 = vadd.f32 %v5177_v1, %v5235_v41 }
 0x1f7   : > { %v5252_v57 = vpop.f32.mrf.mxu1 }
 0x1f8   : > { %v5260_v31 = vpop.f32.mrf.mxu0  ;;  %2513 = vmatmul.mubr.bf16.gmra.mxu0 %v4971_v49  ;;  %v1989_v49 = vadd.f32 %v5117_v2, %v5258_v47  ;;  %v2186_v12 = vadd.f32 %v5134_v13, %v1993_v19  ;;  %v2208_v1 = vadd.f32 %v5179_v39, %v2015_v28  ;;  %v2009_v28 = vadd.f32 %v5161_v50, %v5258_v47 }
 0x1f9   : > { %5964 = vst [vmem:[#allocation7_spill] sm:$0xff] %v5260_v31  ;;  %v5262_v15 = vpop.f32.mrf.mxu1  ;;  %2706 = vmatmul.mubr.bf16.gmra.mxu1 %v4973_v23  ;;  %2522 = vmatprep.mubr.bf16.mxu0 %v4987_v8  ;;  %v2727_v8 = vmax.f32 %v2184_v7, 0.0  ;;  %v2003_v7 = vadd.f32 %v5153_v24, %v5258_v47  ;;  %v2011_v24 = vadd.f32 %v5169_v25, %v5235_v41 }
 0x1fa   : > { %5965 = vst [vmem:[#allocation8_spill] sm:$0xff] %v5262_v15  ;;  %2715 = vmatprep.mubr.bf16.mxu1 %v4989_v32  ;;  %v5271_v30 = vpop.f32.mrf.mxu0  ;;  %v2001_v32 = vadd.f32 %v5149_v51, %v5235_v41  ;;  %v2182_v15 = vadd.f32 %v5119_v3, %v1989_v49  ;;  %v2730_v13 = vmax.f32 %v2186_v12, 0.0  ;;  %v2739_v3 = vmax.f32 %v2198_v4, 0.0 }
 0x1fb   : > { %v5273_v34 = vpop.f32.mrf.mxu1  ;;  %v2855_v18 = vpack.c.bf16 %v2731_v48, %v2727_v8  ;;  %v2747_v39 = vmax.f32 %v2208_v1, 0.0  ;;  %v2202_v50 = vadd.f32 %v5163_v37, %v2009_v28  ;;  %v2035_v37 = vadd.f32 %v5217_v61, %v5235_v41 }
 0x1fc   : > { %v5279_v23 = vpop.f32.mrf.mxu0  ;;  %v2194_v51 = vadd.f32 %v5151_v53, %v2001_v32  ;;  %v2726_v48 = vmax.f32 %v2182_v15, 0.0  ;;  %v2196_v32 = vadd.f32 %v5155_v14, %v2003_v7  ;;  %v2013_v14 = vadd.f32 %v5173_v60, %v5258_v47 }
 0x1fd   : > { %v5281_v56 = vpop.f32.mrf.mxu1  ;;  %v2021_v60 = vadd.f32 %v5189_v44, %v5235_v41  ;;  %v2228_v61 = vadd.f32 %v5219_v11, %v2035_v37  ;;  %v2029_v37 = vadd.f32 %v5201_v5, %v5258_v47 }
 0x1fe   : > { %v5286_v9 = vpop.f32.mrf.mxu0  ;;  %v2735_v49 = vmax.f32 %v2194_v51, 0.0  ;;  %v2854_v8 = vpack.c.bf16 %v2730_v13, %v2726_v48  ;;  %v2204_v51 = vadd.f32 %v5171_v59, %v2011_v24  ;;  %v2738_v25 = vmax.f32 %v2196_v32, 0.0 }
 0x1ff   : > { %v5288_v29 = vpop.f32.mrf.mxu1  ;;  %v2206_v24 = vadd.f32 %v5175_v63, %v2013_v14  ;;  %v2023_v63 = vadd.f32 %v5193_v17, %v5258_v47  ;;  %v2031_v17 = vadd.f32 %v5209_v58, %v5235_v41  ;;  %v2763_v11 = vmax.f32 %v2228_v61, 0.0 }
 0x200   : > { %v5292_v2 = vpop.f32.mrf.mxu0  ;;  %2523 = vmatmul.mubr.bf16.gmra.mxu0 %v4991_v27  ;;  %v1999_v27 = vadd.f32 %v5141_v0, %v5258_v47  ;;  %v2859_v15 = vpack.c.bf16 %v2739_v3, %v2735_v49  ;;  %v2222_v5 = vadd.f32 %v5203_v6, %v2029_v37  ;;  %v2055_v6 = vadd.f32 %v5286_v9, %v5235_v41 }
 0x201   : > { %v5294_v31 = vpop.f32.mrf.mxu1  ;;  %2716 = vmatmul.mubr.bf16.gmra.mxu1 %v4993_v38  ;;  %3213 = vmatprep.mubr.bf16.mxu0 %v2855_v18  ;;  %v2746_v44 = vmax.f32 %v2206_v24, 0.0 }
 0x202   : > { %5966 = vst [vmem:[#allocation9_spill] sm:$0xff] %v5294_v31  ;;  %v5301_v19 = vpop.f32.mrf.mxu0  ;;  %v2192_v0 = vadd.f32 %v5143_v45, %v1999_v27  ;;  %v2025_v45 = vadd.f32 %v5197_v20, %v5235_v41  ;;  %v2743_v27 = vmax.f32 %v2204_v51, 0.0  ;;  %v2214_v51 = vadd.f32 %v5191_v16, %v2021_v60 }
 0x203   : > { %v5303_v42 = vpop.f32.mrf.mxu1  ;;  %v2216_v60 = vadd.f32 %v5195_v36, %v2023_v63  ;;  %v2033_v36 = vadd.f32 %v5213_v55, %v5258_v47  ;;  %v2041_v55 = vadd.f32 %v5239_v22, %v5235_v41  ;;  %v2248_v9 = vadd.f32 %v5288_v29, %v2055_v6  ;;  %v5969_v6 = vld [vmem:[#allocation7_spill] sm:$0xff] }
 0x204   : > { %v5309_v38 = vpop.f32.mrf.mxu0  ;;  %v2734_v3 = vmax.f32 %v2192_v0, 0.0  ;;  %v2218_v20 = vadd.f32 %v5199_v21, %v2025_v45  ;;  %v2863_v1 = vpack.c.bf16 %v2747_v39, %v2743_v27  ;;  %v2742_v39 = vmax.f32 %v2202_v50, 0.0 }
 0x205   : > { %v5311_v53 = vpop.f32.mrf.mxu1  ;;  %v2019_v45 = vadd.f32 %v5181_v40, %v5258_v47  ;;  %v2751_v28 = vmax.f32 %v2214_v51, 0.0  ;;  %v2224_v51 = vadd.f32 %v5211_v54, %v2031_v17  ;;  %v2754_v58 = vmax.f32 %v2216_v60, 0.0 }
 0x206   : > { %v5316_v12 = vpop.f32.mrf.mxu0  ;;  %v2858_v49 = vpack.c.bf16 %v2738_v25, %v2734_v3  ;;  %v2755_v21 = vmax.f32 %v2218_v20, 0.0  ;;  %v2862_v27 = vpack.c.bf16 %v2746_v44, %v2742_v39  ;;  %v2226_v17 = vadd.f32 %v5215_v62, %v2033_v36 }
 0x207   : > { %v5318_v4 = vpop.f32.mrf.mxu1  ;;  %v2212_v40 = vadd.f32 %v5183_v35, %v2019_v45  ;;  %v2045_v35 = vadd.f32 %v5250_v10, %v5235_v41  ;;  %v2759_v45 = vmax.f32 %v2224_v51, 0.0  ;;  %v2234_v51 = vadd.f32 %v5241_v26, %v2041_v55 }
 0x208   : > { %v5322_v18 = vpop.f32.mrf.mxu0  ;;  %3214 = vmatmul.mubr.bf16.vlgmr.msra.gmra.mxu0 %v2854_v8  ;;  %v2867_v20 = vpack.c.bf16 %v2755_v21, %v2751_v28  ;;  %v2762_v22 = vmax.f32 %v2226_v17, 0.0  ;;  %v2043_v62 = vadd.f32 %v5244_v43, %v5258_v47  ;;  %v2051_v43 = vadd.f32 %v5271_v30, %v5235_v41 }
 0x209   : > { %v5324_v31 = vpop.f32.mrf.mxu1  ;;  %3221 = vmatprep.mubr.bf16.mxu0 %v2859_v15  ;;  %v2750_v21 = vmax.f32 %v2212_v40, 0.0  ;;  %v2238_v10 = vadd.f32 %v5252_v57, %v2045_v35  ;;  %v2871_v61 = vpack.c.bf16 %v2763_v11, %v2759_v45  ;;  %v2758_v11 = vmax.f32 %v2222_v5, 0.0 }
 0x20a   : > { %v5329_v13 = vpop.f32.mrf.mxu0  ;;  %v2039_v35 = vadd.f32 %v5226_v33, %v5258_v47  ;;  %v2767_v37 = vmax.f32 %v2234_v51, 0.0  ;;  %v2236_v55 = vadd.f32 %v5246_v46, %v2043_v62  ;;  %v2244_v51 = vadd.f32 %v5273_v34, %v2051_v43 }
 0x20b   : > { %v5331_v7 = vpop.f32.mrf.mxu1  ;;  %v2866_v28 = vpack.c.bf16 %v2754_v58, %v2750_v21  ;;  %v2771_v57 = vmax.f32 %v2238_v10, 0.0  ;;  %v2870_v45 = vpack.c.bf16 %v2762_v22, %v2758_v11  ;;  %v2053_v46 = vadd.f32 %v5279_v23, %v5258_v47 }
 0x20c   : > { %v5337_v48 = vpop.f32.mrf.mxu0  ;;  %v2232_v33 = vadd.f32 %v5228_v52, %v2039_v35  ;;  %v2770_v30 = vmax.f32 %v2236_v55, 0.0  ;;  %v2779_v29 = vmax.f32 %v2248_v9, 0.0  ;;  %v2065_v52 = vadd.f32 %v5316_v12, %v5235_v41 }
 0x20d   : > { %v5339_v59 = vpop.f32.mrf.mxu1  ;;  %v2875_v10 = vpack.c.bf16 %v2771_v57, %v2767_v37  ;;  %v2049_v11 = vadd.f32 %v5969_v6, %v5258_v47  ;;  %v2775_v37 = vmax.f32 %v2244_v51, 0.0  ;;  %v2061_v23 = vadd.f32 %v5301_v19, %v5235_v41 }
 0x20e   : > { %v5344_v8 = vpop.f32.mrf.mxu0  ;;  %v2766_v57 = vmax.f32 %v2232_v33, 0.0  ;;  %v2258_v12 = vadd.f32 %v5318_v4, %v2065_v52  ;;  %v5970_v33 = vld [vmem:[#allocation8_spill] sm:$0xff] }
 0x20f   : > { %v5346_v32 = vpop.f32.mrf.mxu1  ;;  %v2242_v6 = vadd.f32 %v5970_v33, %v2049_v11  ;;  %v2254_v51 = vadd.f32 %v5303_v42, %v2061_v23  ;;  %v5972_v33 = vld [vmem:[#allocation9_spill] sm:$0xff] }
 0x210   : > { %v5350_v15 = vpop.f32.mrf.mxu0  ;;  %3222 = vmatmul.mubr.bf16.gmra.mxu0 %v2858_v49  ;;  %v2874_v43 = vpack.c.bf16 %v2770_v30, %v2766_v57  ;;  %v2787_v4 = vmax.f32 %v2258_v12, 0.0  ;;  %v2059_v57 = vadd.f32 %v5292_v2, %v5258_v47 }
 0x211   : > { %v5352_v0 = vpop.f32.mrf.mxu1  ;;  %3229 = vmatprep.mubr.bf16.mxu0 %v2863_v1  ;;  %v2774_v52 = vmax.f32 %v2242_v6, 0.0 }
 0x212   : > { %v5357_v25 = vpop.f32.mrf.mxu0  ;;  %v2252_v2 = vadd.f32 %v5972_v33, %v2059_v57 }
 0x213   : > { %v5359_v14 = vpop.f32.mrf.mxu1 }
 0x214   : > { %v5365_v3 = vpop.f32.mrf.mxu0 }
 0x215   : > { %v5367_v16 = vpop.f32.mrf.mxu1 }
 0x216   : > { %v5372_v49 = vpop.f32.mrf.mxu0 }
 0x217   : > { %v5374_v24 = vpop.f32.mrf.mxu1 }
 0x218   : > { %v5378_v1 = vpop.f32.mrf.mxu0  ;;  %3230 = vmatmul.mubr.bf16.gmra.mxu0 %v2862_v27 }
 0x219   : > { %v5380_v50 = vpop.f32.mrf.mxu1  ;;  %3237 = vmatprep.mubr.bf16.mxu0 %v2867_v20 }
 0x21a   : > { %v5385_v44 = vpop.f32.mrf.mxu0 }
 0x21b   : > { %v5387_v63 = vpop.f32.mrf.mxu1 }
 0x21c   : > { %v5393_v39 = vpop.f32.mrf.mxu0 }
 0x21d   : > { %v5395_v54 = vpop.f32.mrf.mxu1 }
 0x21e   : > { %v5400_v27 = vpop.f32.mrf.mxu0 }
 0x21f   : > { %v5402_v60 = vpop.f32.mrf.mxu1 }
 0x220   : > { %v5406_v20 = vpop.f32.mrf.mxu0  ;;  %3238 = vmatmul.mubr.bf16.gmra.mxu0 %v2866_v28 }
 0x221   : > { %v5408_v40 = vpop.f32.mrf.mxu1  ;;  %3245 = vmatprep.mubr.bf16.mxu0 %v2871_v61 }
 0x222   : > { %v5413_v58 = vpop.f32.mrf.mxu0 }
 0x223   : > { %v5415_v36 = vpop.f32.mrf.mxu1 }
 0x224   : > { %v5421_v21 = vpop.f32.mrf.mxu0 }
 0x225   : > { %v5423_v26 = vpop.f32.mrf.mxu1 }
 0x226   : > { %v5428_v28 = vpop.f32.mrf.mxu0 }
 0x227   : > { %v5430_v17 = vpop.f32.mrf.mxu1 }
 0x228   : > { %v5434_v61 = vpop.f32.mrf.mxu0  ;;  %3246 = vmatmul.mubr.bf16.gmra.mxu0 %v2870_v45  ;;  %v2246_v45 = vadd.f32 %v5281_v56, %v2053_v46  ;;  %v2063_v56 = vadd.f32 %v5309_v38, %v5258_v47  ;;  %v2071_v38 = vadd.f32 %v5329_v13, %v5235_v41 }
 0x229   : > { %5967 = vst [vmem:[#allocation10_spill] sm:$0xff] %v5434_v61  ;;  %v5436_v5 = vpop.f32.mrf.mxu1  ;;  %3253 = vmatprep.mubr.bf16.mxu0 %v2875_v10  ;;  %v2879_v10 = vpack.c.bf16 %v2779_v29, %v2775_v37  ;;  %v2075_v29 = vadd.f32 %v5344_v8, %v5235_v41  ;;  %v2783_v37 = vmax.f32 %v2254_v51, 0.0 }
 0x22a   : > { %5968 = vst [vmem:[#allocation11_spill] sm:$0xff] %v5436_v5  ;;  %v5441_v22 = vpop.f32.mrf.mxu0  ;;  %v2778_v19 = vmax.f32 %v2246_v45, 0.0  ;;  %v2264_v51 = vadd.f32 %v5331_v7, %v2071_v38 }
 0x22b   : > { %v5443_v62 = vpop.f32.mrf.mxu1  ;;  %v2268_v8 = vadd.f32 %v5346_v32, %v2075_v29  ;;  %v2782_v29 = vmax.f32 %v2252_v2, 0.0 }
 0x22c   : > { %v5449_v35 = vpop.f32.mrf.mxu0  ;;  %v2878_v23 = vpack.c.bf16 %v2778_v19, %v2774_v52  ;;  %v2069_v52 = vadd.f32 %v5322_v18, %v5258_v47 }
 0x22d   : > { %v5451_v34 = vpop.f32.mrf.mxu1  ;;  %v2795_v32 = vmax.f32 %v2268_v8, 0.0 }
 0x22e   : > { %v5456_v55 = vpop.f32.mrf.mxu0  ;;  %v2262_v18 = vadd.f32 %v5324_v31, %v2069_v52 }
 0x22f   : > { %v5458_v9 = vpop.f32.mrf.mxu1 }
 0x230   : > { %v5462_v5 = vpop.f32.mrf.mxu0  ;;  %3254 = vmatmul.mubr.bf16.gmra.mxu0 %v2874_v43  ;;  %v2256_v43 = vadd.f32 %v5311_v53, %v2063_v56  ;;  %v2073_v53 = vadd.f32 %v5337_v48, %v5258_v47  ;;  %v2081_v48 = vadd.f32 %v5357_v25, %v5235_v41 }
 0x231   : > { %v5464_v61 = vpop.f32.mrf.mxu1  ;;  %3261 = vmatprep.mubr.bf16.mxu0 %v2879_v10  ;;  %v2883_v10 = vpack.c.bf16 %v2787_v4, %v2783_v37  ;;  %v2085_v4 = vadd.f32 %v5372_v49, %v5235_v41  ;;  %v2791_v37 = vmax.f32 %v2264_v51, 0.0 }
 0x232   : > { %5971 = vst [vmem:[#allocation12_spill] sm:$0xff] %v5464_v61  ;;  %v5469_v30 = vpop.f32.mrf.mxu0  ;;  %v2786_v13 = vmax.f32 %v2256_v43, 0.0  ;;  %v2274_v51 = vadd.f32 %v5359_v14, %v2081_v48  ;;  %v2091_v14 = vadd.f32 %v5385_v44, %v5235_v41 }
 0x233   : > { %v5471_v46 = vpop.f32.mrf.mxu1  ;;  %v2278_v49 = vadd.f32 %v5374_v24, %v2085_v4  ;;  %v2079_v4 = vadd.f32 %v5350_v15, %v5258_v47 }
 0x234   : > { %v5477_v11 = vpop.f32.mrf.mxu0  ;;  %v2882_v38 = vpack.c.bf16 %v2786_v13, %v2782_v29  ;;  %v2095_v13 = vadd.f32 %v5400_v27, %v5235_v41 }
 0x235   : > { %v5479_v42 = vpop.f32.mrf.mxu1  ;;  %v2803_v31 = vmax.f32 %v2278_v49, 0.0  ;;  %v2272_v44 = vadd.f32 %v5352_v0, %v2079_v4  ;;  %v2105_v0 = vadd.f32 %v5428_v28, %v5235_v41 }
 0x236   : > { %v5484_v45 = vpop.f32.mrf.mxu0  ;;  %v2288_v48 = vadd.f32 %v5402_v60, %v2095_v13  ;;  %v2093_v13 = vadd.f32 %v5393_v39, %v5258_v47  ;;  %v2101_v39 = vadd.f32 %v5413_v58, %v5235_v41  ;;  %v2099_v58 = vadd.f32 %v5406_v20, %v5258_v47 }
 0x237   : > { %v5486_v12 = vpop.f32.mrf.mxu1  ;;  %v2798_v4 = vmax.f32 %v2272_v44, 0.0  ;;  %v2298_v44 = vadd.f32 %v5430_v17, %v2105_v0  ;;  %v2103_v17 = vadd.f32 %v5421_v21, %v5258_v47 }
 0x238   : > { %v5490_v6 = vpop.f32.mrf.mxu0  ;;  %3262 = vmatmul.mubr.bf16.gmra.mxu0 %v2878_v23  ;;  %v2266_v23 = vadd.f32 %v5339_v59, %v2073_v53  ;;  %v2083_v59 = vadd.f32 %v5365_v3, %v5258_v47  ;;  %v2799_v3 = vmax.f32 %v2274_v51, 0.0 }
 0x239   : > { %v5492_v61 = vpop.f32.mrf.mxu1  ;;  %3269 = vmatprep.mubr.bf16.mxu0 %v2883_v10  ;;  %v2887_v10 = vpack.c.bf16 %v2795_v32, %v2791_v37  ;;  %v2790_v32 = vmax.f32 %v2262_v18, 0.0  ;;  %v5981_v18 = vld [vmem:[#allocation6_spill] sm:$0xff]  ;;  %v2819_v0 = vmax.f32 %v2298_v44, 0.0 }
 0x23a   : > { %5973 = vst [vmem:[#allocation13_spill] sm:$0xff] %v5492_v61  ;;  %v5497_v19 = vpop.f32.mrf.mxu0  ;;  %v2794_v25 = vmax.f32 %v2266_v23, 0.0  ;;  %v2276_v27 = vadd.f32 %v5367_v16, %v2083_v59  ;;  %v2891_v49 = vpack.c.bf16 %v2803_v31, %v2799_v3  ;;  %v2811_v31 = vmax.f32 %v2288_v48, 0.0 }
 0x23b   : > { %v5499_v56 = vpop.f32.mrf.mxu1 }
 0x23c   : > { %v5505_v57 = vpop.f32.mrf.mxu0  ;;  %v2886_v37 = vpack.c.bf16 %v2794_v25, %v2790_v32  ;;  %v2802_v59 = vmax.f32 %v2276_v27, 0.0 }
 0x23d   : > { %v5507_v7 = vpop.f32.mrf.mxu1 }
 0x23e   : > { %v5512_v43 = vpop.f32.mrf.mxu0 }
 0x23f   : > { %v5514_v8 = vpop.f32.mrf.mxu1 }
 0x240   : > { %v5518_v33 = vpop.f32.mrf.mxu0  ;;  %3270 = vmatmul.mubr.bf16.gmra.mxu0 %v2882_v38 }
 0x241   : > { %5974 = vst [vmem:[#allocation14_spill] sm:$0xff] %v5518_v33  ;;  %v5520_v2 = vpop.f32.mrf.mxu1  ;;  %3277 = vmatprep.mubr.bf16.mxu0 %v2887_v10  ;;  %v5979_v10 = vld [vmem:[#allocation5_spill] sm:$0xff] }
 0x242   : > { %5975 = vst [vmem:[#allocation15_spill] sm:$0xff] %v5520_v2  ;;  %v5527_v53 = vpop.f32.mrf.mxu0  ;;  %v5980_v15 = vsub.s32 3, %v5979_v10  ;;  %v5982_v51 = vsub.s32 2, %v5979_v10 }
 0x243   : > { %v5529_v24 = vpop.f32.mrf.mxu1 }
 0x244   : > { %5976 = vst [vmem:[#allocation16_spill] sm:$0xff] %v5529_v24  ;;  %v5535_v29 = vpop.f32.mrf.mxu0  ;;  %v5548_v2 = vrot.slane %v5981_v18, %v5980_v15  ;;  %v5555_v16 = vrot.slane %v5981_v18, %v5982_v51  ;;  %v2890_v15 = vpack.c.bf16 %v2802_v59, %v2798_v4  ;;  %v2286_v18 = vadd.f32 %v5395_v54, %v2093_v13 }
 0x245   : > { %5977 = vst [vmem:[#allocation17_spill] sm:$0xff] %v5535_v29  ;;  %v5537_v52 = vpop.f32.mrf.mxu1  ;;  %v2294_v54 = vadd.f32 %v5415_v36, %v2101_v39  ;;  %v2111_v36 = vadd.f32 %v5441_v22, %v5235_v41 }
 0x246   : > { %5978 = vst [vmem:[#allocation18_spill] sm:$0xff] %v5537_v52  ;;  %v5541_v38 = vpop.f32.mrf.mxu0  ;;  %v2284_v52 = vadd.f32 %v5387_v63, %v2091_v14  ;;  %v2089_v14 = vadd.f32 %v5378_v1, %v5258_v47  ;;  %v2810_v13 = vmax.f32 %v2286_v18, 0.0 }
 0x247   : > { %v5543_v23 = vpop.f32.mrf.mxu1 }
 0x248   : > { %v2374_v60 = vpop.f32.mrf.mxu0  ;;  %3278 = vmatmul.mubr.bf16.gmra.mxu0 %v2886_v37  ;;  %v2807_v10 = vmax.f32 %v2284_v52, 0.0 }
 0x249   : > { %v2567_v25 = vpop.f32.mrf.mxu1  ;;  %3285 = vmatprep.mubr.bf16.mxu0 %v2891_v49  ;;  %v2375_v37 = vadd.f32 %v2374_v60, %v5555_v16  ;;  %v2282_v60 = vadd.f32 %v5380_v50, %v2089_v14 }
 0x24a   : > { %v2376_v32 = vpop.f32.mrf.mxu0 }
 0x24b   : > { %v2569_v3 = vpop.f32.mrf.mxu1  ;;  %v2377_v63 = vadd.f32 %v2376_v32, %v5548_v2  ;;  %v2895_v32 = vpack.c.bf16 %v2811_v31, %v2807_v10  ;;  %v2568_v29 = vadd.f32 %v2567_v25, %v2375_v37  ;;  %v2115_v31 = vadd.f32 %v5456_v55, %v5235_v41 }
 0x24c   : > { %v2378_v49 = vpop.f32.mrf.mxu0  ;;  %v2806_v20 = vmax.f32 %v2282_v60, 0.0  ;;  %v2815_v55 = vmax.f32 %v2294_v54, 0.0  ;;  %v2113_v54 = vadd.f32 %v5449_v35, %v5258_v47 }
 0x24d   : > { %v2571_v27 = vpop.f32.mrf.mxu1  ;;  %v2379_v48 = vadd.f32 %v2378_v49, %v5555_v16  ;;  %v2570_v33 = vadd.f32 %v2569_v3, %v2377_v63  ;;  %v2728_v10 = vmax.f32 %v2568_v29, 0.0  ;;  %v2308_v18 = vadd.f32 %v5458_v9, %v2115_v31 }
 0x24e   : > { %v2380_v28 = vpop.f32.mrf.mxu0  ;;  %v2899_v44 = vpack.c.bf16 %v2819_v0, %v2815_v55 }
 0x24f   : > { %v2573_v51 = vpop.f32.mrf.mxu1  ;;  %v2572_v1 = vadd.f32 %v2571_v27, %v2379_v48  ;;  %v2381_v52 = vadd.f32 %v2380_v28, %v5548_v2  ;;  %v2729_v63 = vmax.f32 %v2570_v33, 0.0  ;;  %v2292_v27 = vadd.f32 %v5408_v40, %v2099_v58 }
 0x250   : > { %v2384_v24 = vpop.f32.mrf.mxu0  ;;  %3286 = vmatmul.mubr.bf16.gmra.mxu0 %v2890_v15  ;;  %v2894_v15 = vpack.c.bf16 %v2810_v13, %v2806_v20  ;;  %v2296_v33 = vadd.f32 %v5423_v26, %v2103_v17  ;;  %v2304_v40 = vadd.f32 %v5443_v62, %v2111_v36  ;;  %v2121_v36 = vadd.f32 %v5469_v30, %v5235_v41 }
 0x251   : > { %v2577_v61 = vpop.f32.mrf.mxu1  ;;  %v2574_v59 = vadd.f32 %v2573_v51, %v2381_v52  ;;  %3293 = vmatprep.mubr.bf16.mxu0 %v2895_v32  ;;  %v2732_v3 = vmax.f32 %v2572_v1, 0.0  ;;  %v2385_v37 = vadd.f32 %v2384_v24, %v5555_v16  ;;  %v2814_v58 = vmax.f32 %v2292_v27, 0.0 }
 0x252   : > { %v2386_v50 = vpop.f32.mrf.mxu0  ;;  %v2818_v9 = vmax.f32 %v2296_v33, 0.0 }
 0x253   : > { %v2579_v25 = vpop.f32.mrf.mxu1  ;;  %v2733_v4 = vmax.f32 %v2574_v59, 0.0  ;;  %v2387_v14 = vadd.f32 %v2386_v50, %v5548_v2  ;;  %v2856_v28 = vpack.c.bf16 %v2732_v3, %v2728_v10  ;;  %v2578_v1 = vadd.f32 %v2577_v61, %v2385_v37 }
 0x254   : > { %v2388_v49 = vpop.f32.mrf.mxu0  ;;  %v2827_v59 = vmax.f32 %v2308_v18, 0.0  ;;  %v2125_v3 = vadd.f32 %v5484_v45, %v5235_v41  ;;  %v2898_v45 = vpack.c.bf16 %v2818_v9, %v2814_v58 }
 0x255   : > { %v2581_v21 = vpop.f32.mrf.mxu1  ;;  %v2389_v39 = vadd.f32 %v2388_v49, %v5555_v16  ;;  %v2857_v48 = vpack.c.bf16 %v2733_v4, %v2729_v63  ;;  %v2580_v22 = vadd.f32 %v2579_v25, %v2387_v14  ;;  %v5983_v25 = vld [vmem:[#allocation10_spill] sm:$0xff]  ;;  %v2823_v63 = vmax.f32 %v2304_v40, 0.0 }
 0x256   : > { %v2390_v51 = vpop.f32.mrf.mxu0  ;;  %v2109_v0 = vadd.f32 %v5983_v25, %v5258_v47  ;;  %v2736_v4 = vmax.f32 %v2578_v1, 0.0  ;;  %v2306_v49 = vadd.f32 %v5451_v34, %v2113_v54  ;;  %v2119_v34 = vadd.f32 %v5462_v5, %v5258_v47 }
 0x257   : > { %v2583_v32 = vpop.f32.mrf.mxu1  ;;  %v2582_v29 = vadd.f32 %v2581_v21, %v2389_v39  ;;  %v2391_v24 = vadd.f32 %v2390_v51, %v5548_v2  ;;  %3374 = vmatprep.mubr.bf16.mxu1 %v2857_v48  ;;  %v2737_v62 = vmax.f32 %v2580_v22, 0.0  ;;  %v2903_v39 = vpack.c.bf16 %v2827_v59, %v2823_v63 }
 0x258   : > { %v2394_v52 = vpop.f32.mrf.mxu0  ;;  %3294 = vmatmul.mubr.bf16.gmra.mxu0 %v2894_v15  ;;  %3375 = vmatmul.mubr.bf16.vlgmr.msra.gmra.mxu1 %v2856_v28  ;;  %v2318_v48 = vadd.f32 %v5486_v12, %v2125_v3  ;;  %v5984_v28 = vld [vmem:[#allocation11_spill] sm:$0xff]  ;;  %v2826_v12 = vmax.f32 %v2306_v49, 0.0  ;;  %v2135_v40 = vadd.f32 %v5512_v43, %v5235_v41 }
 0x259   : > { %v2587_v60 = vpop.f32.mrf.mxu1  ;;  %v2584_v26 = vadd.f32 %v2583_v32, %v2391_v24  ;;  %3301 = vmatprep.mubr.bf16.mxu0 %v2899_v44  ;;  %v2740_v13 = vmax.f32 %v2582_v29, 0.0  ;;  %v2395_v14 = vadd.f32 %v2394_v52, %v5555_v16  ;;  %v2302_v51 = vadd.f32 %v5984_v28, %v2109_v0 }
 0x25a   : > { %v2396_v17 = vpop.f32.mrf.mxu0  ;;  %v2314_v29 = vadd.f32 %v5471_v46, %v2121_v36  ;;  %v2123_v44 = vadd.f32 %v5477_v11, %v5258_v47  ;;  %v2835_v58 = vmax.f32 %v2318_v48, 0.0  ;;  %v2131_v46 = vadd.f32 %v5497_v19, %v5235_v41 }
 0x25b   : > { %v2589_v31 = vpop.f32.mrf.mxu1  ;;  %v2741_v61 = vmax.f32 %v2584_v26, 0.0  ;;  %v2397_v50 = vadd.f32 %v2396_v17, %v5548_v2  ;;  %v2860_v21 = vpack.c.bf16 %v2740_v13, %v2736_v4  ;;  %v2588_v30 = vadd.f32 %v2587_v60, %v2395_v14 }
 0x25c   : > { %v2398_v20 = vpop.f32.mrf.mxu0  ;;  %v2822_v5 = vmax.f32 %v2302_v51, 0.0  ;;  %v2831_v43 = vmax.f32 %v2314_v29, 0.0  ;;  %v2316_v25 = vadd.f32 %v5479_v42, %v2123_v44  ;;  %v2328_v0 = vadd.f32 %v5514_v8, %v2135_v40 }
 0x25d   : > { %v2591_v35 = vpop.f32.mrf.mxu1  ;;  %v2399_v10 = vadd.f32 %v2398_v20, %v5555_v16  ;;  %v2861_v37 = vpack.c.bf16 %v2741_v61, %v2737_v62  ;;  %v2590_v15 = vadd.f32 %v2589_v31, %v2397_v50  ;;  %v2744_v59 = vmax.f32 %v2588_v30, 0.0  ;;  %v5985_v31 = vld [vmem:[#allocation12_spill] sm:$0xff] }
 0x25e   : > { %v2400_v27 = vpop.f32.mrf.mxu0  ;;  %v2312_v3 = vadd.f32 %v5985_v31, %v2119_v34  ;;  %v2902_v50 = vpack.c.bf16 %v2826_v12, %v2822_v5  ;;  %v2907_v36 = vpack.c.bf16 %v2835_v58, %v2831_v43  ;;  %v2834_v8 = vmax.f32 %v2316_v25, 0.0 }
 0x25f   : > { %v2593_v55 = vpop.f32.mrf.mxu1  ;;  %v2592_v33 = vadd.f32 %v2591_v35, %v2399_v10  ;;  %v2401_v18 = vadd.f32 %v2400_v27, %v5548_v2  ;;  %3382 = vmatprep.mubr.bf16.mxu1 %v2861_v37  ;;  %v2745_v26 = vmax.f32 %v2590_v15, 0.0  ;;  %v2324_v10 = vadd.f32 %v5499_v56, %v2131_v46 }
 0x260   : > { %v2404_v32 = vpop.f32.mrf.mxu0  ;;  %3302 = vmatmul.mubr.bf16.gmra.mxu0 %v2898_v45  ;;  %3383 = vmatmul.mubr.bf16.gmra.mxu1 %v2860_v21  ;;  %v2830_v21 = vmax.f32 %v2312_v3, 0.0  ;;  %v2133_v27 = vadd.f32 %v5505_v57, %v5258_v47  ;;  %v2129_v51 = vadd.f32 %v5490_v6, %v5258_v47  ;;  %v2141_v29 = vadd.f32 %v5527_v53, %v5235_v41 }
 0x261   : > { %v2597_v22 = vpop.f32.mrf.mxu1  ;;  %v2594_v24 = vadd.f32 %v2593_v55, %v2401_v18  ;;  %3309 = vmatprep.mubr.bf16.mxu0 %v2903_v39  ;;  %v2748_v1 = vmax.f32 %v2592_v33, 0.0  ;;  %v2405_v13 = vadd.f32 %v2404_v32, %v5555_v16  ;;  %v2843_v55 = vmax.f32 %v2328_v0, 0.0 }
 0x262   : > { %v2406_v52 = vpop.f32.mrf.mxu0  ;;  %v2145_v33 = vadd.f32 %v5541_v38, %v5235_v41  ;;  %v2839_v30 = vmax.f32 %v2324_v10, 0.0  ;;  %v2906_v38 = vpack.c.bf16 %v2834_v8, %v2830_v21  ;;  %v2326_v44 = vadd.f32 %v5507_v7, %v2133_v27 }
 0x263   : > { %v2599_v60 = vpop.f32.mrf.mxu1  ;;  %v2749_v9 = vmax.f32 %v2594_v24, 0.0  ;;  %v2407_v54 = vadd.f32 %v2406_v52, %v5548_v2  ;;  %v2864_v63 = vpack.c.bf16 %v2748_v1, %v2744_v59  ;;  %v2598_v37 = vadd.f32 %v2597_v22, %v2405_v13  ;;  %v5987_v59 = vld [vmem:[#allocation16_spill] sm:$0xff] }
 0x264   : > { %v2408_v17 = vpop.f32.mrf.mxu0  ;;  %v2338_v6 = vadd.f32 %v5543_v23, %v2145_v33  ;;  %v2334_v7 = vadd.f32 %v5987_v59, %v2141_v29 }
 0x265   : > { %v2601_v11 = vpop.f32.mrf.mxu1  ;;  %v2409_v62 = vadd.f32 %v2408_v17, %v5555_v16  ;;  %v2865_v61 = vpack.c.bf16 %v2749_v9, %v2745_v26  ;;  %v2600_v19 = vadd.f32 %v2599_v60, %v2407_v54  ;;  %v2752_v32 = vmax.f32 %v2598_v37, 0.0  ;;  %v5986_v54 = vld [vmem:[#allocation13_spill] sm:$0xff] }
 0x266   : > { %v2410_v4 = vpop.f32.mrf.mxu0  ;;  %v2911_v60 = vpack.c.bf16 %v2843_v55, %v2839_v30  ;;  %v2322_v5 = vadd.f32 %v5986_v54, %v2129_v51  ;;  %v2842_v17 = vmax.f32 %v2326_v44, 0.0 }
 0x267   : > { %v2603_v14 = vpop.f32.mrf.mxu1  ;;  %v2602_v20 = vadd.f32 %v2601_v11, %v2409_v62  ;;  %v2411_v35 = vadd.f32 %v2410_v4, %v5548_v2  ;;  %3390 = vmatprep.mubr.bf16.mxu1 %v2865_v61  ;;  %v2753_v56 = vmax.f32 %v2600_v19, 0.0  ;;  %v5988_v11 = vld [vmem:[#allocation17_spill] sm:$0xff]  ;;  %v2851_v62 = vmax.f32 %v2338_v6, 0.0 }
 0x268   : > { %v2414_v45 = vpop.f32.mrf.mxu0  ;;  %3310 = vmatmul.mubr.bf16.gmra.mxu0 %v2902_v50  ;;  %3391 = vmatmul.mubr.bf16.gmra.mxu1 %v2864_v63  ;;  %v2143_v23 = vadd.f32 %v5988_v11, %v5258_v47  ;;  %v2838_v0 = vmax.f32 %v2322_v5, 0.0  ;;  %v5989_v63 = vld [vmem:[#allocation14_spill] sm:$0xff] }
 0x269   : > { %v2607_v49 = vpop.f32.mrf.mxu1  ;;  %v2604_v42 = vadd.f32 %v2603_v14, %v2411_v35  ;;  %3317 = vmatprep.mubr.bf16.mxu0 %v2907_v36  ;;  %v2756_v39 = vmax.f32 %v2602_v20, 0.0  ;;  %v2415_v22 = vadd.f32 %v2414_v45, %v5555_v16  ;;  %v2139_v4 = vadd.f32 %v5989_v63, %v5258_v47 }
 0x26a   : > { %v2416_v48 = vpop.f32.mrf.mxu0  ;;  %v2847_v36 = vmax.f32 %v2334_v7, 0.0  ;;  %v2910_v45 = vpack.c.bf16 %v2842_v17, %v2838_v0 }
 0x26b   : > { %v2609_v15 = vpop.f32.mrf.mxu1  ;;  %v2757_v18 = vmax.f32 %v2604_v42, 0.0  ;;  %v2417_v28 = vadd.f32 %v2416_v48, %v5548_v2  ;;  %v2868_v40 = vpack.c.bf16 %v2756_v39, %v2752_v32  ;;  %v2608_v41 = vadd.f32 %v2607_v49, %v2415_v22  ;;  %v5990_v49 = vld [vmem:[#allocation18_spill] sm:$0xff] }
 0x26c   : > { %v2418_v34 = vpop.f32.mrf.mxu0  ;;  %v2336_v21 = vadd.f32 %v5990_v49, %v2143_v23  ;;  %v2915_v47 = vpack.c.bf16 %v2851_v62, %v2847_v36 }
 0x26d   : > { %v2611_v57 = vpop.f32.mrf.mxu1  ;;  %v2419_v24 = vadd.f32 %v2418_v34, %v5555_v16  ;;  %v2869_v12 = vpack.c.bf16 %v2757_v18, %v2753_v56  ;;  %v2610_v58 = vadd.f32 %v2609_v15, %v2417_v28  ;;  %v2760_v14 = vmax.f32 %v2608_v41, 0.0  ;;  %v5991_v15 = vld [vmem:[#allocation15_spill] sm:$0xff] }
 0x26e   : > { %v2420_v1 = vpop.f32.mrf.mxu0  ;;  %v2332_v33 = vadd.f32 %v5991_v15, %v2139_v4  ;;  %v2850_v30 = vmax.f32 %v2336_v21, 0.0 }
 0x26f   : > { %v2613_v52 = vpop.f32.mrf.mxu1  ;;  %v2612_v26 = vadd.f32 %v2611_v57, %v2419_v24  ;;  %v2421_v9 = vadd.f32 %v2420_v1, %v5548_v2  ;;  %3398 = vmatprep.mubr.bf16.mxu1 %v2869_v12  ;;  %v2761_v61 = vmax.f32 %v2610_v58, 0.0 }
 0x270   : > { %v2424_v53 = vpop.f32.mrf.mxu0  ;;  %3318 = vmatmul.mubr.bf16.gmra.mxu0 %v2906_v38  ;;  %3399 = vmatmul.mubr.bf16.gmra.mxu1 %v2868_v40  ;;  %v2846_v12 = vmax.f32 %v2332_v33, 0.0 }
 0x271   : > { %v2617_v46 = vpop.f32.mrf.mxu1  ;;  %v2614_v13 = vadd.f32 %v2613_v52, %v2421_v9  ;;  %3325 = vmatprep.mubr.bf16.mxu0 %v2911_v60  ;;  %v2764_v31 = vmax.f32 %v2612_v26, 0.0  ;;  %v2425_v19 = vadd.f32 %v2424_v53, %v5555_v16 }
 0x272   : > { %v2426_v3 = vpop.f32.mrf.mxu0  ;;  %v2914_v6 = vpack.c.bf16 %v2850_v30, %v2846_v12 }
 0x273   : > { %v2619_v43 = vpop.f32.mrf.mxu1  ;;  %v2765_v50 = vmax.f32 %v2614_v13, 0.0  ;;  %v2427_v25 = vadd.f32 %v2426_v3, %v5548_v2  ;;  %v2872_v42 = vpack.c.bf16 %v2764_v31, %v2760_v14  ;;  %v2618_v56 = vadd.f32 %v2617_v46, %v2425_v19 }
 0x274   : > { %v2428_v20 = vpop.f32.mrf.mxu0 }
 0x275   : > { %v2621_v35 = vpop.f32.mrf.mxu1  ;;  %v2873_v10 = vpack.c.bf16 %v2765_v50, %v2761_v61  ;;  %v2429_v37 = vadd.f32 %v2428_v20, %v5555_v16  ;;  %v2620_v55 = vadd.f32 %v2619_v43, %v2427_v25  ;;  %v2768_v38 = vmax.f32 %v2618_v56, 0.0 }
 0x276   : > { %v2430_v8 = vpop.f32.mrf.mxu0 }
 0x277   : > { %v2623_v27 = vpop.f32.mrf.mxu1  ;;  %v2622_v39 = vadd.f32 %v2621_v35, %v2429_v37  ;;  %v2431_v48 = vadd.f32 %v2430_v8, %v5548_v2  ;;  %3406 = vmatprep.mubr.bf16.mxu1 %v2873_v10  ;;  %v2769_v57 = vmax.f32 %v2620_v55, 0.0 }
 0x278   : > { %v2434_v18 = vpop.f32.mrf.mxu0  ;;  %3326 = vmatmul.mubr.bf16.gmra.mxu0 %v2910_v45  ;;  %3407 = vmatmul.mubr.bf16.gmra.mxu1 %v2872_v42 }
 0x279   : > { %v2627_v28 = vpop.f32.mrf.mxu1  ;;  %v2624_v51 = vadd.f32 %v2623_v27, %v2431_v48  ;;  %3333 = vmatprep.mubr.bf16.mxu0 %v2915_v47  ;;  %v2772_v32 = vmax.f32 %v2622_v39, 0.0  ;;  %v2435_v44 = vadd.f32 %v2434_v18, %v5555_v16 }
 0x27a   : > { %v2436_v22 = vpop.f32.mrf.mxu0 }
 0x27b   : > { %v2629_v34 = vpop.f32.mrf.mxu1  ;;  %v2773_v29 = vmax.f32 %v2624_v51, 0.0  ;;  %v2437_v24 = vadd.f32 %v2436_v22, %v5548_v2  ;;  %v2876_v58 = vpack.c.bf16 %v2772_v32, %v2768_v38  ;;  %v2628_v53 = vadd.f32 %v2627_v28, %v2435_v44 }
 0x27c   : > { %v2438_v40 = vpop.f32.mrf.mxu0 }
 0x27d   : > { %v2631_v1 = vpop.f32.mrf.mxu1  ;;  %v2877_v52 = vpack.c.bf16 %v2773_v29, %v2769_v57  ;;  %v2439_v60 = vadd.f32 %v2438_v40, %v5555_v16  ;;  %v2630_v54 = vadd.f32 %v2629_v34, %v2437_v24  ;;  %v2776_v43 = vmax.f32 %v2628_v53, 0.0 }
 0x27e   : > { %v2440_v26 = vpop.f32.mrf.mxu0 }
 0x27f   : > { %v2633_v9 = vpop.f32.mrf.mxu1  ;;  %v2632_v5 = vadd.f32 %v2631_v1, %v2439_v60  ;;  %v2441_v41 = vadd.f32 %v2440_v26, %v5548_v2  ;;  %3414 = vmatprep.mubr.bf16.mxu1 %v2877_v52  ;;  %v2777_v23 = vmax.f32 %v2630_v54, 0.0 }
 0x280   : > { %v2444_v46 = vpop.f32.mrf.mxu0  ;;  %3334 = vmatmul.mubr.bf16.gmra.mxu0 %v2914_v6  ;;  %3415 = vmatmul.mubr.bf16.gmra.mxu1 %v2876_v58 }
 0x281   : > { %v2637_v59 = vpop.f32.mrf.mxu1  ;;  %v2634_v7 = vadd.f32 %v2633_v9, %v2441_v41  ;;  %v2780_v13 = vmax.f32 %v2632_v5, 0.0  ;;  %v2445_v62 = vadd.f32 %v2444_v46, %v5555_v16 }
 0x282   : > { %v2446_v17 = vpop.f32.mrf.mxu0 }
 0x283   : > { %v2639_v11 = vpop.f32.mrf.mxu1  ;;  %v2781_v31 = vmax.f32 %v2634_v7, 0.0  ;;  %v2447_v3 = vadd.f32 %v2446_v17, %v5548_v2  ;;  %v2880_v63 = vpack.c.bf16 %v2780_v13, %v2776_v43  ;;  %v2638_v36 = vadd.f32 %v2637_v59, %v2445_v62 }
 0x284   : > { %v2448_v61 = vpop.f32.mrf.mxu0 }
 0x285   : > { %v2641_v50 = vpop.f32.mrf.mxu1  ;;  %v2881_v25 = vpack.c.bf16 %v2781_v31, %v2777_v23  ;;  %v2449_v0 = vadd.f32 %v2448_v61, %v5555_v16  ;;  %v2640_v19 = vadd.f32 %v2639_v11, %v2447_v3  ;;  %v2784_v39 = vmax.f32 %v2638_v36, 0.0 }
 0x286   : > { %v2450_v4 = vpop.f32.mrf.mxu0 }
 0x287   : > { %v2643_v14 = vpop.f32.mrf.mxu1  ;;  %v2642_v20 = vadd.f32 %v2641_v50, %v2449_v0  ;;  %v2451_v35 = vadd.f32 %v2450_v4, %v5548_v2  ;;  %3422 = vmatprep.mubr.bf16.mxu1 %v2881_v25  ;;  %v2785_v8 = vmax.f32 %v2640_v19, 0.0 }
 0x288   : > { %v2454_v10 = vpop.f32.mrf.mxu0  ;;  %3423 = vmatmul.mubr.bf16.gmra.mxu1 %v2880_v63 }
 0x289   : > { %v2647_v37 = vpop.f32.mrf.mxu1  ;;  %v2644_v45 = vadd.f32 %v2643_v14, %v2451_v35  ;;  %v2788_v49 = vmax.f32 %v2642_v20, 0.0  ;;  %v2455_v48 = vadd.f32 %v2454_v10, %v5555_v16 }
 0x28a   : > { %v2456_v21 = vpop.f32.mrf.mxu0 }
 0x28b   : > { %v2649_v42 = vpop.f32.mrf.mxu1  ;;  %v2789_v27 = vmax.f32 %v2644_v45, 0.0  ;;  %v2457_v55 = vadd.f32 %v2456_v21, %v5548_v2  ;;  %v2884_v18 = vpack.c.bf16 %v2788_v49, %v2784_v39  ;;  %v2648_v34 = vadd.f32 %v2647_v37, %v2455_v48 }
 0x28c   : > { %v2458_v47 = vpop.f32.mrf.mxu0 }
 0x28d   : > { %v2651_v15 = vpop.f32.mrf.mxu1  ;;  %v2885_v33 = vpack.c.bf16 %v2789_v27, %v2785_v8  ;;  %v2459_v56 = vadd.f32 %v2458_v47, %v5555_v16  ;;  %v2650_v30 = vadd.f32 %v2649_v42, %v2457_v55  ;;  %v2792_v60 = vmax.f32 %v2648_v34, 0.0 }
 0x28e   : > { %v2460_v28 = vpop.f32.mrf.mxu0 }
 0x28f   : > { %v2653_v51 = vpop.f32.mrf.mxu1  ;;  %v2652_v32 = vadd.f32 %v2651_v15, %v2459_v56  ;;  %v2461_v22 = vadd.f32 %v2460_v28, %v5548_v2  ;;  %3430 = vmatprep.mubr.bf16.mxu1 %v2885_v33  ;;  %v2793_v40 = vmax.f32 %v2650_v30, 0.0 }
 0x290   : > { %v2464_v57 = vpop.f32.mrf.mxu0  ;;  %3431 = vmatmul.mubr.bf16.gmra.mxu1 %v2884_v18 }
 0x291   : > { %v2657_v29 = vpop.f32.mrf.mxu1  ;;  %v2654_v24 = vadd.f32 %v2653_v51, %v2461_v22  ;;  %v2796_v12 = vmax.f32 %v2652_v32, 0.0  ;;  %v2465_v6 = vadd.f32 %v2464_v57, %v5555_v16 }
 0x292   : > { %v2466_v38 = vpop.f32.mrf.mxu0 }
 0x293   : > { %v2659_v44 = vpop.f32.mrf.mxu1  ;;  %v2797_v1 = vmax.f32 %v2654_v24, 0.0  ;;  %v2467_v52 = vadd.f32 %v2466_v38, %v5548_v2  ;;  %v2888_v5 = vpack.c.bf16 %v2796_v12, %v2792_v60  ;;  %v2658_v13 = vadd.f32 %v2657_v29, %v2465_v6 }
 0x294   : > { %v2468_v58 = vpop.f32.mrf.mxu0 }
 0x295   : > { %v2661_v26 = vpop.f32.mrf.mxu1  ;;  %v2889_v9 = vpack.c.bf16 %v2797_v1, %v2793_v40  ;;  %v2469_v54 = vadd.f32 %v2468_v58, %v5555_v16  ;;  %v2660_v46 = vadd.f32 %v2659_v44, %v2467_v52  ;;  %v2800_v25 = vmax.f32 %v2658_v13, 0.0 }
 0x296   : > { %v2470_v41 = vpop.f32.mrf.mxu0 }
 0x297   : > { %v2663_v53 = vpop.f32.mrf.mxu1  ;;  %v2662_v59 = vadd.f32 %v2661_v26, %v2469_v54  ;;  %v2471_v7 = vadd.f32 %v2470_v41, %v5548_v2  ;;  %3438 = vmatprep.mubr.bf16.mxu1 %v2889_v9  ;;  %v2801_v62 = vmax.f32 %v2660_v46, 0.0 }
 0x298   : > { %v2474_v17 = vpop.f32.mrf.mxu0  ;;  %3439 = vmatmul.mubr.bf16.gmra.mxu1 %v2888_v5 }
 0x299   : > { %v2667_v11 = vpop.f32.mrf.mxu1  ;;  %v2664_v23 = vadd.f32 %v2663_v53, %v2471_v7  ;;  %v2804_v31 = vmax.f32 %v2662_v59, 0.0  ;;  %v2475_v0 = vadd.f32 %v2474_v17, %v5555_v16 }
 0x29a   : > { %v2476_v3 = vpop.f32.mrf.mxu0 }
 0x29b   : > { %v2669_v43 = vpop.f32.mrf.mxu1  ;;  %v2805_v61 = vmax.f32 %v2664_v23, 0.0  ;;  %v2477_v50 = vadd.f32 %v2476_v3, %v5548_v2  ;;  %v2892_v20 = vpack.c.bf16 %v2804_v31, %v2800_v25  ;;  %v2668_v49 = vadd.f32 %v2667_v11, %v2475_v0 }
 0x29c   : > { %v2478_v63 = vpop.f32.mrf.mxu0 }
 0x29d   : > { %v2671_v4 = vpop.f32.mrf.mxu1  ;;  %v2893_v14 = vpack.c.bf16 %v2805_v61, %v2801_v62  ;;  %v2479_v19 = vadd.f32 %v2478_v63, %v5555_v16  ;;  %v2670_v10 = vadd.f32 %v2669_v43, %v2477_v50  ;;  %v2808_v33 = vmax.f32 %v2668_v49, 0.0 }
 0x29e   : > { %v2480_v35 = vpop.f32.mrf.mxu0 }
 0x29f   : > { %v2673_v36 = vpop.f32.mrf.mxu1  ;;  %v2672_v37 = vadd.f32 %v2671_v4, %v2479_v19  ;;  %v2481_v45 = vadd.f32 %v2480_v35, %v5548_v2  ;;  %3446 = vmatprep.mubr.bf16.mxu1 %v2893_v14  ;;  %v2809_v48 = vmax.f32 %v2670_v10, 0.0 }
 0x2a0   : > { %v2484_v21 = vpop.f32.mrf.mxu0  ;;  %3447 = vmatmul.mubr.bf16.gmra.mxu1 %v2892_v20 }
 0x2a1   : > { %v2677_v42 = vpop.f32.mrf.mxu1  ;;  %v2674_v8 = vadd.f32 %v2673_v36, %v2481_v45  ;;  %v2812_v27 = vmax.f32 %v2672_v37, 0.0  ;;  %v2485_v56 = vadd.f32 %v2484_v21, %v5555_v16 }
 0x2a2   : > { %v2486_v55 = vpop.f32.mrf.mxu0 }
 0x2a3   : > { %v2679_v39 = vpop.f32.mrf.mxu1  ;;  %v2813_v47 = vmax.f32 %v2674_v8, 0.0  ;;  %v2487_v15 = vadd.f32 %v2486_v55, %v5548_v2  ;;  %v2896_v32 = vpack.c.bf16 %v2812_v27, %v2808_v33  ;;  %v2678_v12 = vadd.f32 %v2677_v42, %v2485_v56 }
 0x2a4   : > { %v2488_v18 = vpop.f32.mrf.mxu0 }
 0x2a5   : > { %v2681_v28 = vpop.f32.mrf.mxu1  ;;  %v2897_v51 = vpack.c.bf16 %v2813_v47, %v2809_v48  ;;  %v2489_v30 = vadd.f32 %v2488_v18, %v5555_v16  ;;  %v2680_v57 = vadd.f32 %v2679_v39, %v2487_v15  ;;  %v2816_v9 = vmax.f32 %v2678_v12, 0.0 }
 0x2a6   : > { %v2490_v22 = vpop.f32.mrf.mxu0 }
 0x2a7   : > { %v2683_v34 = vpop.f32.mrf.mxu1  ;;  %v2682_v29 = vadd.f32 %v2681_v28, %v2489_v30  ;;  %v2491_v24 = vadd.f32 %v2490_v22, %v5548_v2  ;;  %3454 = vmatprep.mubr.bf16.mxu1 %v2897_v51  ;;  %v2817_v6 = vmax.f32 %v2680_v57, 0.0 }
 0x2a8   : > { %v2494_v38 = vpop.f32.mrf.mxu0  ;;  %3455 = vmatmul.mubr.bf16.gmra.mxu1 %v2896_v32 }
 0x2a9   : > { %v2687_v44 = vpop.f32.mrf.mxu1  ;;  %v2684_v40 = vadd.f32 %v2683_v34, %v2491_v24  ;;  %v2820_v1 = vmax.f32 %v2682_v29, 0.0  ;;  %v2495_v54 = vadd.f32 %v2494_v38, %v5555_v16 }
 0x2aa   : > { %v2496_v52 = vpop.f32.mrf.mxu0 }
 0x2ab   : > { %v2689_v60 = vpop.f32.mrf.mxu1  ;;  %v2821_v58 = vmax.f32 %v2684_v40, 0.0  ;;  %v2497_v26 = vadd.f32 %v2496_v52, %v5548_v2  ;;  %v2900_v59 = vpack.c.bf16 %v2820_v1, %v2816_v9  ;;  %v2688_v31 = vadd.f32 %v2687_v44, %v2495_v54 }
 0x2ac   : > { %v2498_v5 = vpop.f32.mrf.mxu0 }
 0x2ad   : > { %v2691_v41 = vpop.f32.mrf.mxu1  ;;  %v2901_v53 = vpack.c.bf16 %v2821_v58, %v2817_v6  ;;  %v2499_v46 = vadd.f32 %v2498_v5, %v5555_v16  ;;  %v2690_v17 = vadd.f32 %v2689_v60, %v2497_v26  ;;  %v2824_v14 = vmax.f32 %v2688_v31, 0.0 }
 0x2ae   : > { %v2500_v7 = vpop.f32.mrf.mxu0 }
 0x2af   : > { %v2693_v13 = vpop.f32.mrf.mxu1  ;;  %v2692_v11 = vadd.f32 %v2691_v41, %v2499_v46  ;;  %v2501_v23 = vadd.f32 %v2500_v7, %v5548_v2  ;;  %3462 = vmatprep.mubr.bf16.mxu1 %v2901_v53  ;;  %v2825_v0 = vmax.f32 %v2690_v17, 0.0 }
 0x2b0   : > { %v2504_v3 = vpop.f32.mrf.mxu0  ;;  %3463 = vmatmul.mubr.bf16.gmra.mxu1 %v2900_v59 }
 0x2b1   : > { %v2697_v43 = vpop.f32.mrf.mxu1  ;;  %v2694_v62 = vadd.f32 %v2693_v13, %v2501_v23  ;;  %v2828_v61 = vmax.f32 %v2692_v11, 0.0  ;;  %v2505_v19 = vadd.f32 %v2504_v3, %v5555_v16 }
 0x2b2   : > { %v2506_v50 = vpop.f32.mrf.mxu0 }
 0x2b3   : > { %v2699_v25 = vpop.f32.mrf.mxu1  ;;  %v2829_v63 = vmax.f32 %v2694_v62, 0.0  ;;  %v2507_v4 = vadd.f32 %v2506_v50, %v5548_v2  ;;  %v2904_v37 = vpack.c.bf16 %v2828_v61, %v2824_v14  ;;  %v2698_v27 = vadd.f32 %v2697_v43, %v2505_v19 }
 0x2b4   : > { %v2508_v20 = vpop.f32.mrf.mxu0 }
 0x2b5   : > { %v2701_v35 = vpop.f32.mrf.mxu1  ;;  %v2905_v36 = vpack.c.bf16 %v2829_v63, %v2825_v0  ;;  %v2509_v10 = vadd.f32 %v2508_v20, %v5555_v16  ;;  %v2700_v21 = vadd.f32 %v2699_v25, %v2507_v4  ;;  %v2832_v51 = vmax.f32 %v2698_v27, 0.0 }
 0x2b6   : > { %v2510_v45 = vpop.f32.mrf.mxu0 }
 0x2b7   : > { %v2703_v49 = vpop.f32.mrf.mxu1  ;;  %v2702_v42 = vadd.f32 %v2701_v35, %v2509_v10  ;;  %v2511_v8 = vadd.f32 %v2510_v45, %v5548_v2  ;;  %3470 = vmatprep.mubr.bf16.mxu1 %v2905_v36  ;;  %v2833_v56 = vmax.f32 %v2700_v21, 0.0 }
 0x2b8   : > { %v2514_v55 = vpop.f32.mrf.mxu0  ;;  %3471 = vmatmul.mubr.bf16.gmra.mxu1 %v2904_v37 }
 0x2b9   : > { %v2707_v39 = vpop.f32.mrf.mxu1  ;;  %v2704_v48 = vadd.f32 %v2703_v49, %v2511_v8  ;;  %v2836_v47 = vmax.f32 %v2702_v42, 0.0  ;;  %v2515_v30 = vadd.f32 %v2514_v55, %v5555_v16 }
 0x2ba   : > { %v2516_v15 = vpop.f32.mrf.mxu0 }
 0x2bb   : > { %v2709_v33 = vpop.f32.mrf.mxu1  ;;  %v2837_v18 = vmax.f32 %v2704_v48, 0.0  ;;  %v2517_v28 = vadd.f32 %v2516_v15, %v5548_v2  ;;  %v2908_v29 = vpack.c.bf16 %v2836_v47, %v2832_v51  ;;  %v2708_v1 = vadd.f32 %v2707_v39, %v2515_v30 }
 0x2bc   : > { %v2518_v32 = vpop.f32.mrf.mxu0 }
 0x2bd   : > { %v2711_v22 = vpop.f32.mrf.mxu1  ;;  %v2909_v34 = vpack.c.bf16 %v2837_v18, %v2833_v56  ;;  %v2519_v57 = vadd.f32 %v2518_v32, %v5555_v16  ;;  %v2710_v38 = vadd.f32 %v2709_v33, %v2517_v28  ;;  %v2840_v53 = vmax.f32 %v2708_v1, 0.0  ;;  %v5732_v1 = vld [vmem:[%s5883_s6] ss:$0 sm:$0xff] }
 0x2be   : > { %v2520_v24 = vpop.f32.mrf.mxu0 }
 0x2bf   : > { %v2713_v12 = vpop.f32.mrf.mxu1  ;;  %v2712_v44 = vadd.f32 %v2711_v22, %v2519_v57  ;;  %v2521_v40 = vadd.f32 %v2520_v24, %v5548_v2  ;;  %3478 = vmatprep.mubr.bf16.mxu1 %v2909_v34  ;;  %v2841_v54 = vmax.f32 %v2710_v38, 0.0 }
 0x2c0   : > { %v2524_v52 = vpop.f32.mrf.mxu0  ;;  %3479 = vmatmul.mubr.bf16.gmra.mxu1 %v2908_v29 }
 0x2c1   : > { %v2717_v60 = vpop.f32.mrf.mxu1  ;;  %v2714_v6 = vadd.f32 %v2713_v12, %v2521_v40  ;;  %v2844_v58 = vmax.f32 %v2712_v44, 0.0  ;;  %v2525_v46 = vadd.f32 %v2524_v52, %v5555_v16 }
 0x2c2   : > { %v2526_v26 = vpop.f32.mrf.mxu0 }
 0x2c3   : > { %v2719_v9 = vpop.f32.mrf.mxu1  ;;  %v2845_v5 = vmax.f32 %v2714_v6, 0.0  ;;  %v2527_v41 = vadd.f32 %v2526_v26, %v5548_v2  ;;  %v2912_v11 = vpack.c.bf16 %v2844_v58, %v2840_v53  ;;  %v2718_v62 = vadd.f32 %v2717_v60, %v2525_v46 }
 0x2c4   : > { %v2528_v59 = vpop.f32.mrf.mxu0 }
 0x2c5   : > { %v2721_v7 = vpop.f32.mrf.mxu1  ;;  %v2913_v13 = vpack.c.bf16 %v2845_v5, %v2841_v54  ;;  %v2529_v17 = vadd.f32 %v2528_v59, %v5555_v16  ;;  %v2720_v31 = vadd.f32 %v2719_v9, %v2527_v41  ;;  %v2848_v19 = vmax.f32 %v2718_v62, 0.0 }
 0x2c6   : > { %v2530_v23 = vpop.f32.mrf.mxu0 }
 0x2c7   : > { %v2722_v3 = vadd.f32 %v2721_v7, %v2529_v17  ;;  %v2531_v43 = vadd.f32 %v2530_v23, %v5548_v2  ;;  %3486 = vmatprep.mubr.bf16.mxu1 %v2913_v13  ;;  %v2723_v61 = vpop.f32.mrf.mxu1  ;;  %v2849_v4 = vmax.f32 %v2720_v31, 0.0 }
 0x2c8   : > { %v3855_v50 = vpop.f32.mrf.mxu0  ;;  %3487 = vmatmul.mubr.bf16.gmra.mxu1 %v2912_v11 }
 0x2c9   : > { %v2724_v25 = vadd.f32 %v2723_v61, %v2531_v43  ;;  %v2852_v0 = vmax.f32 %v2722_v3, 0.0 }
 0x2ca   : > { %v3856_v63 = vpop.f32.mrf.mxu0 }
 0x2cb   : > { %v2853_v14 = vmax.f32 %v2724_v25, 0.0  ;;  %v2916_v16 = vpack.c.bf16 %v2852_v0, %v2848_v19  ;;  %v3857_v40 = vadd.f32 %v3856_v63, %v3855_v50 }
 0x2cc   : > { %v3858_v20 = vpop.f32.mrf.mxu0 }
 0x2cd   : > { %v2917_v35 = vpack.c.bf16 %v2853_v14, %v2849_v4  ;;  %v3216_v58 = vadd.f32 %v3857_v40, %v5732_v1 }
 0x2ce   : > { %v3859_v36 = vpop.f32.mrf.mxu0 }
 0x2cf   : > { %3494 = vmatprep.mubr.bf16.mxu1 %v2917_v35  ;;  %v3860_v26 = vadd.f32 %v3859_v36, %v3858_v20 }
 0x2d0   : > { %v3861_v10 = vpop.f32.mrf.mxu0  ;;  %3495 = vmatmul.mubr.bf16.gmra.mxu1 %v2916_v16 }
 0x2d1   : > { %v3219_v46 = vadd.f32 %v3860_v26, %v5732_v1 }
 0x2d2   : > { %v3862_v37 = vpop.f32.mrf.mxu0 }
 0x2d3   : > { %v3863_v59 = vadd.f32 %v3862_v37, %v3861_v10 }
 0x2d4   : > { %v3864_v2 = vpop.f32.mrf.mxu0 }
 0x2d5   : > { %v3224_v31 = vadd.f32 %v3863_v59, %v5732_v1 }
 0x2d6   : > { %v3865_v45 = vpop.f32.mrf.mxu0 }
 0x2d7   : > { %v3866_v3 = vadd.f32 %v3865_v45, %v3864_v2 }
 0x2d8   : > { %v3867_v49 = vpop.f32.mrf.mxu0 }
 0x2d9   : > { %v3227_v0 = vadd.f32 %v3866_v3, %v5732_v1 }
 0x2da   : > { %v3868_v21 = vpop.f32.mrf.mxu0 }
 0x2db   : > { %v3869_v63 = vadd.f32 %v3868_v21, %v3867_v49 }
 0x2dc   : > { %v3870_v42 = vpop.f32.mrf.mxu0 }
 0x2dd   : > { %v3232_v16 = vadd.f32 %v3869_v63, %v5732_v1 }
 0x2de   : > { %v3871_v8 = vpop.f32.mrf.mxu0 }
 0x2df   : > { %v3872_v36 = vadd.f32 %v3871_v8, %v3870_v42 }
 0x2e0   : > { %v5687_v27 = vpop.f32.mrf.mxu0 }
 0x2e1   : > { %v3235_v49 = vadd.f32 %v3872_v36, %v5732_v1 }
 0x2e2   : > { %v5689_v55 = vpop.f32.mrf.mxu0 }
 0x2e3   : > { %v3875_v21 = vadd.f32 %v5689_v55, %v5687_v27 }
 0x2e4   : > { %v5691_v39 = vpop.f32.mrf.mxu0 }
 0x2e5   : > { %v3240_v26 = vadd.f32 %v3875_v21, %v5732_v1 }
 0x2e6   : > { %v5693_v48 = vpop.f32.mrf.mxu0 }
 0x2e8   : > { %v5695_v47 = vpop.f32.mrf.mxu0 }
 0x2ea   : > { %v5697_v15 = vpop.f32.mrf.mxu0 }
 0x2eb   : > { %v3881_v59 = vadd.f32 %v5697_v15, %v5695_v47 }
 0x2ec   : > { %v5699_v33 = vpop.f32.mrf.mxu0 }
 0x2ee   : > { %v5701_v56 = vpop.f32.mrf.mxu0 }
 0x2f0   : > { %v5703_v18 = vpop.f32.mrf.mxu0 }
 0x2f2   : > { %v5705_v28 = vpop.f32.mrf.mxu0 }
 0x2f4   : > { %v5707_v51 = vpop.f32.mrf.mxu0 }
 0x2f6   : > { %v5709_v30 = vpop.f32.mrf.mxu0 }
 0x2f8   : > { %v5711_v32 = vpop.f32.mrf.mxu0 }
 0x2fa   : > { %v5713_v22 = vpop.f32.mrf.mxu0 }
 0x2fc   : > { %v5715_v34 = vpop.f32.mrf.mxu0 }
 0x2fe   : > { %v5717_v57 = vpop.f32.mrf.mxu0 }
 0x300   : > { %v5719_v29 = vpop.f32.mrf.mxu0 }
 0x302   : > { %v5721_v24 = vpop.f32.mrf.mxu0 }
 0x304   : > { %v5723_v12 = vpop.f32.mrf.mxu0 }
 0x306   : > { %v5725_v38 = vpop.f32.mrf.mxu0 }
 0x308   : > { %v5727_v44 = vpop.f32.mrf.mxu0 }
 0x30a   : > { %v5734_v52 = vpop.f32.mrf.mxu0 }
 0x30c   : > { %v5737_v54 = vpop.f32.mrf.mxu0 }
 0x30e   : > { %v5748_v13 = vpop.f32.mrf.mxu0 }
 0x310   : > { %v5752_v62 = vpop.f32.mrf.mxu0 }
 0x312   : > { %v5756_v14 = vpop.f32.mrf.mxu0 }
 0x314   : > { %v5760_v37 = vpop.f32.mrf.mxu0 }
 0x318   : > { %v3967_v60 = vpop.f32.mrf.mxu1 }
 0x31a   : > { %v3968_v6 = vpop.f32.mrf.mxu1 }
 0x31b   : > { %v3969_v9 = vadd.f32 %v3968_v6, %v3967_v60  ;;  %v5766_v6 = vpop.f32.mrf.mxu0 }
 0x31c   : > { %v3970_v5 = vpop.f32.mrf.mxu1 }
 0x31d   : > { %v3377_v41 = vadd.f32 %v3969_v9, %v3216_v58  ;;  %v3878_v9 = vadd.f32 %v5693_v48, %v5691_v39 }
 0x31e   : > { %v3971_v53 = vpop.f32.mrf.mxu1 }
 0x31f   : > { %3503 = vst [vmem:[%s5744_s18] sm:$0xff] %v3377_v41  ;;  %v3972_v7 = vadd.f32 %v3971_v53, %v3970_v5  ;;  %v5772_v41 = vpop.f32.mrf.mxu0 }
 0x320   : > { %v3973_v17 = vpop.f32.mrf.mxu1 }
 0x321   : > { %v3380_v11 = vadd.f32 %v3972_v7, %v3219_v46  ;;  %v3243_v46 = vadd.f32 %v3878_v9, %v5732_v1  ;;  %v3899_v9 = vadd.f32 %v5721_v24, %v5719_v29 }
 0x322   : > { %v3974_v23 = vpop.f32.mrf.mxu1 }
 0x323   : > { %3504 = vst [vmem:[%s5744_s18 + $0x8] sm:$0xff] %v3380_v11  ;;  %v3975_v43 = vadd.f32 %v3974_v23, %v3973_v17  ;;  %v5778_v17 = vpop.f32.mrf.mxu0  ;;  %v3248_v23 = vadd.f32 %v3881_v59, %v5732_v1 }
 0x324   : > { %v3976_v61 = vpop.f32.mrf.mxu1 }
 0x325   : > { %v3385_v50 = vadd.f32 %v3975_v43, %v3224_v31  ;;  %v3884_v31 = vadd.f32 %v5701_v56, %v5699_v33  ;;  %v5784_v43 = vpop.f32.mrf.mxu0 }
 0x326   : > { %v3977_v25 = vpop.f32.mrf.mxu1 }
 0x327   : > { %3505 = vst [vmem:[%s5744_s18 + $0x10] sm:$0xff] %v3385_v50  ;;  %v3978_v4 = vadd.f32 %v3977_v25, %v3976_v61  ;;  %v3251_v50 = vadd.f32 %v3884_v31, %v5732_v1  ;;  %v3887_v25 = vadd.f32 %v5705_v28, %v5703_v18  ;;  %v5790_v63 = vpop.f32.mrf.mxu0 }
 0x328   : > { %v3979_v19 = vpop.f32.mrf.mxu1 }
 0x329   : > { %v3388_v20 = vadd.f32 %v3978_v4, %v3227_v0 }
 0x32a   : > { %v3980_v35 = vpop.f32.mrf.mxu1 }
 0x32b   : > { %3506 = vst [vmem:[%s5744_s18 + $0x18] sm:$0xff] %v3388_v20  ;;  %v3981_v10 = vadd.f32 %v3980_v35, %v3979_v19  ;;  %v3256_v19 = vadd.f32 %v3887_v25, %v5732_v1  ;;  %v3890_v20 = vadd.f32 %v5709_v30, %v5707_v51 }
 0x32c   : > { %v3982_v2 = vpop.f32.mrf.mxu1 }
 0x32d   : > { %v3393_v45 = vadd.f32 %v3981_v10, %v3232_v16  ;;  %v5796_v16 = vpop.f32.mrf.mxu0  ;;  %v3259_v10 = vadd.f32 %v3890_v20, %v5732_v1 }
 0x32e   : > { %v3983_v40 = vpop.f32.mrf.mxu1 }
 0x32f   : > { %3507 = vst [vmem:[%s5744_s18 + $0x20] sm:$0xff] %v3393_v45  ;;  %v3984_v60 = vadd.f32 %v3983_v40, %v3982_v2  ;;  %v3893_v2 = vadd.f32 %v5713_v22, %v5711_v32  ;;  %v5802_v40 = vpop.f32.mrf.mxu0 }
 0x330   : > { %v3985_v58 = vpop.f32.mrf.mxu1 }
 0x331   : > { %v3396_v42 = vadd.f32 %v3984_v60, %v3235_v49  ;;  %v3264_v21 = vadd.f32 %v3893_v2, %v5732_v1  ;;  %v3896_v60 = vadd.f32 %v5717_v57, %v5715_v34 }
 0x332   : > { %v3986_v8 = vpop.f32.mrf.mxu1 }
 0x333   : > { %3508 = vst [vmem:[%s5744_s18 + $0x28] sm:$0xff] %v3396_v42  ;;  %v3987_v5 = vadd.f32 %v3986_v8, %v3985_v58  ;;  %v5808_v42 = vpop.f32.mrf.mxu0 }
 0x334   : > { %v3988_v53 = vpop.f32.mrf.mxu1 }
 0x335   : > { %v3401_v27 = vadd.f32 %v3987_v5, %v3240_v26  ;;  %v3267_v26 = vadd.f32 %v3896_v60, %v5732_v1 }
 0x336   : > { %v3989_v55 = vpop.f32.mrf.mxu1 }
 0x337   : > { %3509 = vst [vmem:[%s5744_s18 + $0x30] sm:$0xff] %v3401_v27  ;;  %v3990_v7 = vadd.f32 %v3989_v55, %v3988_v53  ;;  %v5814_v53 = vpop.f32.mrf.mxu0  ;;  %v3272_v55 = vadd.f32 %v3899_v9, %v5732_v1 }
 0x338   : > { %v3991_v11 = vpop.f32.mrf.mxu1 }
 0x339   : > { %v3404_v39 = vadd.f32 %v3990_v7, %v3243_v46  ;;  %v3902_v46 = vadd.f32 %v5725_v38, %v5723_v12  ;;  %v5820_v7 = vpop.f32.mrf.mxu0 }
 0x33a   : > { %v3992_v48 = vpop.f32.mrf.mxu1 }
 0x33b   : > { %3510 = vst [vmem:[%s5744_s18 + $0x38] sm:$0xff] %v3404_v39  ;;  %v3993_v3 = vadd.f32 %v3992_v48, %v3991_v11  ;;  %v3275_v39 = vadd.f32 %v3902_v46, %v5732_v1  ;;  %v3905_v48 = vadd.f32 %v5734_v52, %v5727_v44  ;;  %v3928_v31 = vpop.f32.mrf.mxu0  ;;  %v3911_v52 = vadd.f32 %v5756_v14, %v5752_v62 }
 0x33c   : > { %v3994_v61 = vpop.f32.mrf.mxu1  ;;  %v3917_v14 = vadd.f32 %v5778_v17, %v5772_v41  ;;  %v3923_v17 = vadd.f32 %v5802_v40, %v5796_v16  ;;  %v3929_v40 = vadd.f32 %v3928_v31, %v5820_v7 }
 0x33d   : > { %v3409_v47 = vadd.f32 %v3993_v3, %v3248_v23  ;;  %v3280_v38 = vadd.f32 %v3905_v48, %v5732_v1 }
 0x33e   : > { %v3995_v15 = vpop.f32.mrf.mxu1 }
 0x33f   : > { %3511 = vst [vmem:[%s5744_s18 + $0x40] sm:$0xff] %v3409_v47  ;;  %v3996_v0 = vadd.f32 %v3995_v15, %v3994_v61  ;;  %v3908_v47 = vadd.f32 %v5748_v13, %v5737_v54  ;;  %v3288_v54 = vadd.f32 %v3911_v52, %v5732_v1  ;;  %v3914_v13 = vadd.f32 %v5766_v6, %v5760_v37 }
 0x340   : > { %v3997_v4 = vpop.f32.mrf.mxu1  ;;  %v3296_v37 = vadd.f32 %v3917_v14, %v5732_v1  ;;  %v3920_v6 = vadd.f32 %v5790_v63, %v5784_v43  ;;  %v3304_v43 = vadd.f32 %v3923_v17, %v5732_v1  ;;  %v3926_v63 = vadd.f32 %v5814_v53, %v5808_v42 }
 0x341   : > { %v3412_v33 = vadd.f32 %v3996_v0, %v3251_v50  ;;  %v3930_v50 = vpop.f32.mrf.mxu0  ;;  %v3283_v44 = vadd.f32 %v3908_v47, %v5732_v1  ;;  %v3291_v62 = vadd.f32 %v3914_v13, %v5732_v1  ;;  %v3312_v42 = vadd.f32 %v3929_v40, %v5732_v1 }
 0x342   : > { %v3998_v56 = vpop.f32.mrf.mxu1  ;;  %v3299_v41 = vadd.f32 %v3920_v6, %v5732_v1  ;;  %v3307_v16 = vadd.f32 %v3926_v63, %v5732_v1 }
 0x343   : > { %3512 = vst [vmem:[%s5744_s18 + $0x48] sm:$0xff] %v3412_v33  ;;  %v3999_v35 = vadd.f32 %v3998_v56, %v3997_v4  ;;  %v3931_v56 = vpop.f32.mrf.mxu0 }
 0x344   : > { %v4000_v36 = vpop.f32.mrf.mxu1  ;;  %v3932_v53 = vadd.f32 %v3931_v56, %v3930_v50 }
 0x345   : > { %v3417_v18 = vadd.f32 %v3999_v35, %v3256_v19 }
 0x346   : > { %v4001_v28 = vpop.f32.mrf.mxu1 }
 0x347   : > { %3513 = vst [vmem:[%s5744_s18 + $0x50] sm:$0xff] %v3417_v18  ;;  %v4002_v45 = vadd.f32 %v4001_v28, %v4000_v36  ;;  %v3933_v18 = vpop.f32.mrf.mxu0 }
 0x348   : > { %v4003_v49 = vpop.f32.mrf.mxu1 }
 0x349   : > { %v3420_v51 = vadd.f32 %v4002_v45, %v3259_v10 }
 0x34a   : > { %v4004_v30 = vpop.f32.mrf.mxu1 }
 0x34b   : > { %3514 = vst [vmem:[%s5744_s18 + $0x58] sm:$0xff] %v3420_v51  ;;  %v4005_v58 = vadd.f32 %v4004_v30, %v4003_v49  ;;  %v3934_v49 = vpop.f32.mrf.mxu0 }
 0x34c   : > { %v4006_v8 = vpop.f32.mrf.mxu1  ;;  %v3935_v7 = vadd.f32 %v3934_v49, %v3933_v18 }
 0x34d   : > { %v3425_v32 = vadd.f32 %v4005_v58, %v3264_v21  ;;  %v3936_v58 = vpop.f32.mrf.mxu0 }
 0x34e   : > { %v4007_v22 = vpop.f32.mrf.mxu1  ;;  %v3320_v52 = vadd.f32 %v3935_v7, %v5732_v1 }
 0x34f   : > { %3515 = vst [vmem:[%s5744_s18 + $0x60] sm:$0xff] %v3425_v32  ;;  %v4008_v5 = vadd.f32 %v4007_v22, %v4006_v8  ;;  %v3937_v9 = vpop.f32.mrf.mxu0 }
 0x350   : > { %v4009_v27 = vpop.f32.mrf.mxu1  ;;  %v3938_v50 = vadd.f32 %v3937_v9, %v3936_v58 }
 0x351   : > { %v3428_v34 = vadd.f32 %v4008_v5, %v3267_v26 }
 0x352   : > { %v4010_v57 = vpop.f32.mrf.mxu1 }
 0x353   : > { %3516 = vst [vmem:[%s5744_s18 + $0x68] sm:$0xff] %v3428_v34  ;;  %v4011_v59 = vadd.f32 %v4010_v57, %v4009_v27 }
 0x354   : > { %v4012_v11 = vpop.f32.mrf.mxu1 }
 0x355   : > { %v3433_v29 = vadd.f32 %v4011_v59, %v3272_v55  ;;  %v3939_v55 = vpop.f32.mrf.mxu0 }
 0x356   : > { %v4013_v24 = vpop.f32.mrf.mxu1 }
 0x357   : > { %3517 = vst [vmem:[%s5744_s18 + $0x70] sm:$0xff] %v3433_v29  ;;  %v4014_v23 = vadd.f32 %v4013_v24, %v4012_v11  ;;  %v3940_v24 = vpop.f32.mrf.mxu0 }
 0x358   : > { %v4015_v3 = vpop.f32.mrf.mxu1  ;;  %v3941_v13 = vadd.f32 %v3940_v24, %v3939_v55 }
 0x359   : > { %v3436_v61 = vadd.f32 %v4014_v23, %v3275_v39 }
 0x35a   : > { %v4016_v12 = vpop.f32.mrf.mxu1 }
 0x35b   : > { %3518 = vst [vmem:[%s5744_s18 + $0x78] sm:$0xff] %v3436_v61  ;;  %v4017_v15 = vadd.f32 %v4016_v12, %v4015_v3  ;;  %v3942_v61 = vpop.f32.mrf.mxu0 }
 0x35c   : > { %v4018_v25 = vpop.f32.mrf.mxu1 }
 0x35d   : > { %v3441_v0 = vadd.f32 %v4017_v15, %v3280_v38  ;;  %v3315_v15 = vadd.f32 %v3932_v53, %v5732_v1 }
 0x35e   : > { %v4019_v4 = vpop.f32.mrf.mxu1 }
 0x35f   : > { %3519 = vst [vmem:[%s5744_s18 + $0x80] sm:$0xff] %v3441_v0  ;;  %v4020_v33 = vadd.f32 %v4019_v4, %v4018_v25  ;;  %v3943_v25 = vpop.f32.mrf.mxu0 }
 0x360   : > { %v4021_v19 = vpop.f32.mrf.mxu1  ;;  %v3944_v14 = vadd.f32 %v3943_v25, %v3942_v61 }
 0x361   : > { %v3444_v20 = vadd.f32 %v4020_v33, %v3283_v44  ;;  %v3945_v56 = vpop.f32.mrf.mxu0 }
 0x362   : > { %v4022_v35 = vpop.f32.mrf.mxu1 }
 0x363   : > { %3520 = vst [vmem:[%s5744_s18 + $0x88] sm:$0xff] %v3444_v20  ;;  %v4023_v36 = vadd.f32 %v4022_v35, %v4021_v19  ;;  %v3946_v18 = vpop.f32.mrf.mxu0 }
 0x364   : > { %v4024_v28 = vpop.f32.mrf.mxu1  ;;  %v3947_v6 = vadd.f32 %v3946_v18, %v3945_v56 }
 0x365   : > { %v3449_v10 = vadd.f32 %v4023_v36, %v3288_v54  ;;  %v3323_v54 = vadd.f32 %v3938_v50, %v5732_v1  ;;  %v3948_v49 = vpop.f32.mrf.mxu0 }
 0x366   : > { %v4025_v2 = vpop.f32.mrf.mxu1 }
 0x367   : > { %3521 = vst [vmem:[%s5744_s18 + $0x90] sm:$0xff] %v3449_v10  ;;  %v4026_v45 = vadd.f32 %v4025_v2, %v4024_v28  ;;  %v3949_v58 = vpop.f32.mrf.mxu0 }
 0x368   : > { %v4027_v51 = vpop.f32.mrf.mxu1  ;;  %v3950_v17 = vadd.f32 %v3949_v58, %v3948_v49 }
 0x369   : > { %v3452_v30 = vadd.f32 %v4026_v45, %v3291_v62  ;;  %v3328_v62 = vadd.f32 %v3941_v13, %v5732_v1 }
 0x36a   : > { %v4028_v21 = vpop.f32.mrf.mxu1 }
 0x36b   : > { %3522 = vst [vmem:[%s5744_s18 + $0x98] sm:$0xff] %v3452_v30  ;;  %v4029_v60 = vadd.f32 %v4028_v21, %v4027_v51 }
 0x36c   : > { %v4030_v8 = vpop.f32.mrf.mxu1 }
 0x36d   : > { %v3457_v32 = vadd.f32 %v4029_v60, %v3296_v37  ;;  %v3331_v37 = vadd.f32 %v3944_v14, %v5732_v1 }
 0x36e   : > { %v4031_v22 = vpop.f32.mrf.mxu1 }
 0x36f   : > { %3523 = vst [vmem:[%s5744_s18 + $0xa0] sm:$0xff] %v3457_v32  ;;  %v4032_v26 = vadd.f32 %v4031_v22, %v4030_v8 }
 0x370   : > { %v4033_v5 = vpop.f32.mrf.mxu1 }
 0x371   : > { %v3460_v27 = vadd.f32 %v4032_v26, %v3299_v41  ;;  %v3336_v41 = vadd.f32 %v3947_v6, %v5732_v1 }
 0x372   : > { %v4034_v34 = vpop.f32.mrf.mxu1 }
 0x373   : > { %3524 = vst [vmem:[%s5744_s18 + $0xa8] sm:$0xff] %v3460_v27  ;;  %v4035_v57 = vadd.f32 %v4034_v34, %v4033_v5  ;;  %v3339_v34 = vadd.f32 %v3950_v17, %v5732_v1 }
 0x374   : > { %v4036_v46 = vpop.f32.mrf.mxu1 }
 0x375   : > { %v3465_v59 = vadd.f32 %v4035_v57, %v3304_v43 }
 0x376   : > { %v4037_v11 = vpop.f32.mrf.mxu1 }
 0x377   : > { %3525 = vst [vmem:[%s5744_s18 + $0xb0] sm:$0xff] %v3465_v59  ;;  %v4038_v29 = vadd.f32 %v4037_v11, %v4036_v46 }
 0x378   : > { %v4039_v39 = vpop.f32.mrf.mxu1 }
 0x379   : > { %v3468_v48 = vadd.f32 %v4038_v29, %v3307_v16 }
 0x37a   : > { %v4040_v23 = vpop.f32.mrf.mxu1 }
 0x37b   : > { %3526 = vst [vmem:[%s5744_s18 + $0xb8] sm:$0xff] %v3468_v48  ;;  %v4041_v3 = vadd.f32 %v4040_v23, %v4039_v39 }
 0x37c   : > { %v4042_v12 = vpop.f32.mrf.mxu1 }
 0x37d   : > { %v3473_v38 = vadd.f32 %v4041_v3, %v3312_v42 }
 0x37e   : > { %v4043_v47 = vpop.f32.mrf.mxu1 }
 0x37f   : > { %3527 = vst [vmem:[%s5744_s18 + $0xc0] sm:$0xff] %v3473_v38  ;;  %v4044_v31 = vadd.f32 %v4043_v47, %v4042_v12 }
 0x380   : > { %v4045_v0 = vpop.f32.mrf.mxu1 }
 0x381   : > { %v3476_v4 = vadd.f32 %v4044_v31, %v3315_v15 }
 0x382   : > { %v4046_v44 = vpop.f32.mrf.mxu1 }
 0x383   : > { %3528 = vst [vmem:[%s5744_s18 + $0xc8] sm:$0xff] %v3476_v4  ;;  %v4047_v33 = vadd.f32 %v4046_v44, %v4045_v0 }
 0x384   : > { %v4048_v19 = vpop.f32.mrf.mxu1 }
 0x385   : > { %v3481_v20 = vadd.f32 %v4047_v33, %v3320_v52 }
 0x386   : > { %v4049_v35 = vpop.f32.mrf.mxu1 }
 0x387   : > { %3529 = vst [vmem:[%s5744_s18 + $0xd0] sm:$0xff] %v3481_v20  ;;  %v4050_v36 = vadd.f32 %v4049_v35, %v4048_v19 }
 0x388   : > { %v4051_v28 = vpop.f32.mrf.mxu1 }
 0x389   : > { %v3484_v10 = vadd.f32 %v4050_v36, %v3323_v54 }
 0x38a   : > { %v4052_v2 = vpop.f32.mrf.mxu1 }
 0x38b   : > { %3530 = vst [vmem:[%s5744_s18 + $0xd8] sm:$0xff] %v3484_v10  ;;  %v4053_v45 = vadd.f32 %v4052_v2, %v4051_v28 }
 0x38c   : > { %v4054_v51 = vpop.f32.mrf.mxu1 }
 0x38d   : > { %v3489_v30 = vadd.f32 %v4053_v45, %v3328_v62 }
 0x38e   : > { %v4055_v21 = vpop.f32.mrf.mxu1 }
 0x38f   : > { %3531 = vst [vmem:[%s5744_s18 + $0xe0] sm:$0xff] %v3489_v30  ;;  %v4056_v60 = vadd.f32 %v4055_v21, %v4054_v51 }
 0x390   : > { %v4057_v8 = vpop.f32.mrf.mxu1 }
 0x391   : > { %v3492_v32 = vadd.f32 %v4056_v60, %v3331_v37 }
 0x392   : > { %v4058_v22 = vpop.f32.mrf.mxu1 }
 0x393   : > { %3532 = vst [vmem:[%s5744_s18 + $0xe8] sm:$0xff] %v3492_v32  ;;  %v4059_v26 = vadd.f32 %v4058_v22, %v4057_v8 }
 0x394   : > { %v4060_v9 = vpop.f32.mrf.mxu1 }
 0x395   : > { %v3497_v5 = vadd.f32 %v4059_v26, %v3336_v41 }
 0x396   : > { %v4061_v27 = vpop.f32.mrf.mxu1 }
 0x397   : > { %3533 = vst [vmem:[%s5744_s18 + $0xf0] sm:$0xff] %v3497_v5  ;;  %v4062_v43 = vadd.f32 %v4061_v27, %v4060_v9 }
 0x399   : > { %v3500_v63 = vadd.f32 %v4062_v43, %v3339_v34 }
 0x39b   : > { %3534 = vst [vmem:[%s5744_s18 + $0xf8] sm:$0xff] %v3500_v63 }
 0x39c PF: > { %s18_s24 = sadd.s32 1, %s4385_s24  }
 0x39d   : > { %p15_p1 = scmp.ge.s32.totalorder %s18_s24, 4  }
 0x39f   :  { %17 = sbr.rel (!%p15_p1) target bundleno = 1 (0x1), region = 83 }
 0x3a4   :  { %3557 = vsyncpa [#allocation3], 1 }
 0x3a5   :  { %3559 = vsyncpa [#allocation3 + $0x1], 1 }

</bundles_post_ra>
